<compile_context>
chip_gen: v7x
topology: tpu7x:2x2x1
jax: 0.10.0
libtpu: 0.0.40
codegen_flags: <defaults>
</compile_context>

<pallas_src>
import functools
import math

import jax
import jax.numpy as jnp
from jax import lax
from jax.experimental import pallas as pl
from jax.experimental.pallas import tpu as pltpu


# ---------------------------------------------------------------------------
# Kernel 1: LayerNorm + fused Q/K/V projection, written out per head.
# ---------------------------------------------------------------------------
def _qkv_projection_kernel(
    x_ref, gamma_ref, beta_ref,
    wq_ref, bq_ref, wk_ref, bk_ref, wv_ref, bv_ref,
    q_ref, k_ref, v_ref,
    *, n_heads, d_head, eps):
  x = x_ref[0]                                               # (ts, D) f32
  # Single-pass LayerNorm statistics (one cross-lane reduce fewer).
  mean = jnp.mean(x, axis=-1, keepdims=True)
  var = jnp.mean(x * x, axis=-1, keepdims=True) - mean * mean
  xn = ((x - mean) * lax.rsqrt(var + eps) * gamma_ref[...]
        + beta_ref[...]).astype(jnp.bfloat16)                # (ts, D) bf16

  def project(w_ref, b_ref, out_ref):
    # Full-width (ts, D) @ (D, H*dh): N = H*dh fills the MXU columns.
    p = (jnp.dot(xn, w_ref[...], preferred_element_type=jnp.float32)
         + b_ref[...]).astype(jnp.bfloat16)                  # (ts, H*dh)
    for h in range(n_heads):                                 # static sub-slab copies
      out_ref[0, h] = p[:, h * d_head:(h + 1) * d_head]

  project(wq_ref, bq_ref, q_ref)   # 1/sqrt(d_head) pre-folded into wq/bq
  project(wk_ref, bk_ref, k_ref)
  project(wv_ref, bv_ref, v_ref)


# ---------------------------------------------------------------------------
# Kernel 2: flash attention (online softmax) + fused output projection.
# ---------------------------------------------------------------------------
def _flash_attention_kernel(
    q_ref, k_ref, v_ref, wo_ref, bo_ref,
    o_ref,
    m_s, l_s, acc_s, ctx_s,
    *, n_heads, d_head):
  ki = pl.program_id(2)
  nk = pl.num_programs(2)

  @pl.when(ki == 0)
  def _init():
    m_s[...] = jnp.full(m_s.shape, -jnp.inf, dtype=m_s.dtype)
    l_s[...] = jnp.zeros(l_s.shape, dtype=l_s.dtype)
    acc_s[...] = jnp.zeros(acc_s.shape, dtype=acc_s.dtype)

  def head_step(h, carry):
    qh = q_ref[0, h]                                         # (tq, dh) bf16
    kh = k_ref[0, h]                                         # (tk, dh) bf16
    vh = v_ref[0, h]                                         # (tk, dh) bf16
    # scores[q, k] = q . k   (scale already folded into q)
    s = lax.dot_general(qh, kh, (((1,), (1,)), ((), ())),
                        preferred_element_type=jnp.float32)  # (tq, tk) f32
    m_prev = m_s[h]
    m_new = jnp.maximum(m_prev, jnp.max(s, axis=-1, keepdims=True))
    alpha = jnp.exp(m_prev - m_new)
    p = jnp.exp(s - m_new)
    l_s[h] = alpha * l_s[h] + jnp.sum(p, axis=-1, keepdims=True)
    acc_s[h] = alpha * acc_s[h] + jnp.dot(p.astype(jnp.bfloat16), vh,
                                          preferred_element_type=jnp.float32)
    m_s[h] = m_new
    return carry

  # fori_loop bounds per-head live ranges (vs fully unrolled Python loop).
  lax.fori_loop(0, n_heads, head_step, 0, unroll=2)

  @pl.when(ki == nk - 1)
  def _finalize():
    # Assemble normalized per-head contexts into one (tq, H*dh) bf16 scratch.
    for h in range(n_heads):                                 # static lane-offset stores
      inv_l = pl.reciprocal(l_s[h], approx=True)             # EUP slot
      ctx_s[:, h * d_head:(h + 1) * d_head] = (acc_s[h] * inv_l).astype(jnp.bfloat16)
    # Single fused output projection, K = H*dh contraction, lane-dense output.
    y = jnp.dot(ctx_s[...], wo_ref[...], preferred_element_type=jnp.float32)
    o_ref[0] = (y + bo_ref[...]).astype(o_ref.dtype)


# ---------------------------------------------------------------------------
# Wrapper
# ---------------------------------------------------------------------------
def self_attention_pallas(x, params, *, n_heads, d_head,
                          block_q=256, block_kv=256, block_s=256):
  """x: (B, S, d_model) float32.  params in torch-like layout (see make_params)."""
  B, S, D = x.shape
  H, dh = n_heads, d_head
  HD = H * dh
  block_q = min(block_q, S)
  block_kv = min(block_kv, S)
  block_s = min(block_s, S)
  assert S % block_q == 0 and S % block_kv == 0 and S % block_s == 0, \
      "S must be divisible by the chosen tile sizes"

  inv_scale = jnp.float32(1.0 / math.sqrt(d_head))

  # Keep the torch (D, HD)/(HD, D) weight layout (full-width fused matmuls);
  # fold the attention scale into the Q projection; weights bf16, biases f32.
  wq = (params['wq'] * inv_scale).astype(jnp.bfloat16)
  wk = params['wk'].astype(jnp.bfloat16)
  wv = params['wv'].astype(jnp.bfloat16)
  wo = params['wo'].astype(jnp.bfloat16)
  bq = (params['bq'] * inv_scale).reshape(1, HD).astype(jnp.float32)
  bk = params['bk'].reshape(1, HD).astype(jnp.float32)
  bv = params['bv'].reshape(1, HD).astype(jnp.float32)
  bo = params['bo'].reshape(1, D).astype(jnp.float32)
  gamma = params['gamma'].reshape(1, D).astype(jnp.float32)
  beta = params['beta'].reshape(1, D).astype(jnp.float32)

  vmem_limit = 48 * 1024 * 1024  # generous for 256-tiles, still inside v7x 64 MiB

  # ----------------- Kernel 1: LayerNorm + QKV projection -----------------
  def whole1(arr):
    nd = arr.ndim
    return pl.BlockSpec(arr.shape, lambda b, si, _n=nd: (0,) * _n)

  qkv_cost = pl.CostEstimate(
      flops=int(2 * B * S * D * 3 * HD),
      transcendentals=int(B * S),   # rsqrt per row
      bytes_accessed=int(B * S * D * 4 + 3 * (D * HD * 2 + HD * 4)
                         + 2 * D * 4 + 3 * B * S * HD * 2))

  q, k, v = pl.pallas_call(
      functools.partial(_qkv_projection_kernel, n_heads=H, d_head=dh, eps=1e-5),
      out_shape=(jax.ShapeDtypeStruct((B, H, S, dh), jnp.bfloat16),
                 jax.ShapeDtypeStruct((B, H, S, dh), jnp.bfloat16),
                 jax.ShapeDtypeStruct((B, H, S, dh), jnp.bfloat16)),
      grid=(B, S // block_s),
      in_specs=[
          pl.BlockSpec((1, block_s, D), lambda b, si: (b, si, 0)),
          whole1(gamma), whole1(beta),
          whole1(wq), whole1(bq),
          whole1(wk), whole1(bk),
          whole1(wv), whole1(bv),
      ],
      out_specs=(
          pl.BlockSpec((1, H, block_s, dh), lambda b, si: (b, 0, si, 0)),
          pl.BlockSpec((1, H, block_s, dh), lambda b, si: (b, 0, si, 0)),
          pl.BlockSpec((1, H, block_s, dh), lambda b, si: (b, 0, si, 0)),
      ),
      compiler_params=pltpu.CompilerParams(
          dimension_semantics=("parallel", "parallel"),
          vmem_limit_bytes=vmem_limit),
      cost_estimate=qkv_cost,
  )(x, gamma, beta, wq, bq, wk, bk, wv, bv)

  # -------------- Kernel 2: flash attention + output projection -----------
  def whole2(arr):
    nd = arr.ndim
    return pl.BlockSpec(arr.shape, lambda b, qi, ki, _n=nd: (0,) * _n)

  kv_resweeps = S // block_q   # K/V are streamed once per query tile
  attn_cost = pl.CostEstimate(
      flops=int(2 * B * H * S * S * dh * 2 + 2 * B * S * HD * D),
      transcendentals=int(B * H * S * S),
      bytes_accessed=int(B * S * HD * 2                        # Q (read once)
                         + 2 * B * S * HD * 2 * kv_resweeps    # K, V re-streamed
                         + HD * D * 2 + D * 4
                         + B * S * D * x.dtype.itemsize))

  out = pl.pallas_call(
      functools.partial(_flash_attention_kernel, n_heads=H, d_head=dh),
      out_shape=jax.ShapeDtypeStruct((B, S, D), x.dtype),
      grid=(B, S // block_q, S // block_kv),
      in_specs=[
          pl.BlockSpec((1, H, block_q, dh), lambda b, qi, ki: (b, 0, qi, 0)),
          pl.BlockSpec((1, H, block_kv, dh), lambda b, qi, ki: (b, 0, ki, 0)),
          pl.BlockSpec((1, H, block_kv, dh), lambda b, qi, ki: (b, 0, ki, 0)),
          whole2(wo), whole2(bo),
      ],
      out_specs=pl.BlockSpec((1, block_q, D), lambda b, qi, ki: (b, qi, 0)),
      scratch_shapes=[
          pltpu.VMEM((H, block_q, 1), jnp.float32),    # running max
          pltpu.VMEM((H, block_q, 1), jnp.float32),    # running sum
          pltpu.VMEM((H, block_q, dh), jnp.float32),   # context accumulator
          pltpu.VMEM((block_q, HD), jnp.bfloat16),     # assembled context
      ],
      compiler_params=pltpu.CompilerParams(
          dimension_semantics=("parallel", "parallel", "arbitrary"),
          vmem_limit_bytes=vmem_limit),
      cost_estimate=attn_cost,
  )(q, k, v, wo, bo)

  return out


# ---------------------------------------------------------------------------
# Pure-JAX f32 reference (matches the PyTorch forward, dropout = identity).
# ---------------------------------------------------------------------------
def _reference(x, params, *, n_heads, d_head):
  B, S, D = x.shape
  H, dh = n_heads, d_head
  mean = jnp.mean(x, axis=-1, keepdims=True)
  var = jnp.mean((x - mean) ** 2, axis=-1, keepdims=True)
  xn = (x - mean) / jnp.sqrt(var + 1e-5)
  xn = xn * params['gamma'] + params['beta']
  q = (xn @ params['wq'] + params['bq']).reshape(B, S, H, dh)
  k = (xn @ params['wk'] + params['bk']).reshape(B, S, H, dh)
  v = (xn @ params['wv'] + params['bv']).reshape(B, S, H, dh)
  scores = jnp.einsum('bihd,bjhd->bhij', q, k) / jnp.sqrt(jnp.float32(dh))
  att = jax.nn.softmax(scores, axis=-1)
  out = jnp.einsum('bhij,bjhd->bihd', att, v).reshape(B, S, H * dh)
  return out @ params['wo'] + params['bo']


def make_params(key, d_model, n_heads, d_head):
  HD = n_heads * d_head
  ks = jax.random.split(key, 8)
  init = lambda k, shape: (0.02 * jax.random.normal(k, shape)).astype(jnp.float32)
  return {
      'gamma': jnp.ones((d_model,), jnp.float32),
      'beta': jnp.zeros((d_model,), jnp.float32),
      'wq': init(ks[0], (d_model, HD)), 'bq': init(ks[1], (HD,)),
      'wk': init(ks[2], (d_model, HD)), 'bk': init(ks[3], (HD,)),
      'wv': init(ks[4], (d_model, HD)), 'bv': init(ks[5], (HD,)),
      'wo': init(ks[6], (HD, d_model)), 'bo': init(ks[7], (d_model,)),
  }


if __name__ == "__main__":
  # Small but lane-dense shapes: d_model multiple of 128, S multiple of tiles.
  B, S = 2, 128
  d_model, n_heads, d_head = 128, 8, 64   # module defaults for heads / d_head

  key = jax.random.PRNGKey(0)
  kx, kp = jax.random.split(key)
  x = jax.random.normal(kx, (B, S, d_model), dtype=jnp.float32)
  params = make_params(kp, d_model, n_heads, d_head)

  # 64-tiles -> grids (2,2) and (2,2,2): exercises the online-softmax
  # accumulation across KV tiles and reuse of the precomputed K/V across
  # multiple query tiles.
  out = self_attention_pallas(x, params, n_heads=n_heads, d_head=d_head,
                              block_q=64, block_kv=64, block_s=64)
  out = jax.block_until_ready(out)

  ref = _reference(x, params, n_heads=n_heads, d_head=d_head)
  assert out.shape == (B, S, d_model)
  max_err = float(jnp.max(jnp.abs(out - ref)))
  # bf16 MXU inputs (f32 accumulation) + approx reciprocal -> loosened tolerance.
  assert jnp.allclose(out, ref, atol=1e-2, rtol=5e-2), \
      f"mismatch vs reference (max abs err {max_err})"

  print("KERNEL_OK")
</pallas_src>

<mosaic_0001>
module attributes {stable_mosaic.version = 11 : i64} {
  func.func @_qkv_projection_kernel(%arg0: i32, %arg1: i32, %arg2: memref<1x64x128xf32, #tpu.memory_space<vmem>>, %arg3: memref<1x128xf32, #tpu.memory_space<vmem>>, %arg4: memref<1x128xf32, #tpu.memory_space<vmem>>, %arg5: memref<128x512xbf16, #tpu.memory_space<vmem>>, %arg6: memref<1x512xf32, #tpu.memory_space<vmem>>, %arg7: memref<128x512xbf16, #tpu.memory_space<vmem>>, %arg8: memref<1x512xf32, #tpu.memory_space<vmem>>, %arg9: memref<128x512xbf16, #tpu.memory_space<vmem>>, %arg10: memref<1x512xf32, #tpu.memory_space<vmem>>, %arg11: memref<1x8x64x64xbf16, #tpu.memory_space<vmem>>, %arg12: memref<1x8x64x64xbf16, #tpu.memory_space<vmem>>, %arg13: memref<1x8x64x64xbf16, #tpu.memory_space<vmem>>) attributes {dimension_semantics = [#tpu.dimension_semantics<parallel>, #tpu.dimension_semantics<parallel>], iteration_bounds = array<i64: 2, 2>, scalar_prefetch = 0 : i64, scratch_operands = 0 : i64, tpu.core_type = #tpu.core_type<tc>, window_params = [{transform_indices = @transform_0, window_bounds = array<i64: 1, 64, 128>}, {pipeline_mode = #tpu.pipeline_mode<synchronous>, transform_indices = @transform_1, window_bounds = array<i64: 1, 128>}, {pipeline_mode = #tpu.pipeline_mode<synchronous>, transform_indices = @transform_2, window_bounds = array<i64: 1, 128>}, {pipeline_mode = #tpu.pipeline_mode<synchronous>, transform_indices = @transform_3, window_bounds = array<i64: 128, 512>}, {pipeline_mode = #tpu.pipeline_mode<synchronous>, transform_indices = @transform_4, window_bounds = array<i64: 1, 512>}, {pipeline_mode = #tpu.pipeline_mode<synchronous>, transform_indices = @transform_5, window_bounds = array<i64: 128, 512>}, {pipeline_mode = #tpu.pipeline_mode<synchronous>, transform_indices = @transform_6, window_bounds = array<i64: 1, 512>}, {pipeline_mode = #tpu.pipeline_mode<synchronous>, transform_indices = @transform_7, window_bounds = array<i64: 128, 512>}, {pipeline_mode = #tpu.pipeline_mode<synchronous>, transform_indices = @transform_8, window_bounds = array<i64: 1, 512>}, {transform_indices = @transform_9, window_bounds = array<i64: 1, 8, 64, 64>}, {transform_indices = @transform_10, window_bounds = array<i64: 1, 8, 64, 64>}, {transform_indices = @transform_11, window_bounds = array<i64: 1, 8, 64, 64>}]} {
    %c0 = arith.constant 0 : index
    %c0_0 = arith.constant 0 : index
    %c0_1 = arith.constant 0 : index
    %0 = vector.load %arg2[%c0, %c0_0, %c0_1] : memref<1x64x128xf32, #tpu.memory_space<vmem>>, vector<1x64x128xf32>
    %1 = vector.shape_cast %0 : vector<1x64x128xf32> to vector<64x128xf32>
    %cst = arith.constant dense<0.000000e+00> : vector<64xf32>
    %2 = vector.multi_reduction <add>, %1, %cst [1] : vector<64x128xf32> to vector<64xf32>
    %3 = vector.shape_cast %2 : vector<64xf32> to vector<64x1xf32>
    %cst_2 = arith.constant 1.280000e+02 : f32
    %4 = vector.broadcast %cst_2 : f32 to vector<64x1xf32>
    %5 = arith.divf %3, %4 : vector<64x1xf32>
    %6 = arith.mulf %1, %1 : vector<64x128xf32>
    %cst_3 = arith.constant dense<0.000000e+00> : vector<64xf32>
    %7 = vector.multi_reduction <add>, %6, %cst_3 [1] : vector<64x128xf32> to vector<64xf32>
    %8 = vector.shape_cast %7 : vector<64xf32> to vector<64x1xf32>
    %cst_4 = arith.constant 1.280000e+02 : f32
    %9 = vector.broadcast %cst_4 : f32 to vector<64x1xf32>
    %10 = arith.divf %8, %9 : vector<64x1xf32>
    %11 = arith.mulf %5, %5 : vector<64x1xf32>
    %12 = arith.subf %10, %11 : vector<64x1xf32>
    %13 = vector.broadcast %5 : vector<64x1xf32> to vector<64x128xf32>
    %14 = arith.subf %1, %13 : vector<64x128xf32>
    %cst_5 = arith.constant 9.99999974E-6 : f32
    %15 = vector.broadcast %cst_5 : f32 to vector<64x1xf32>
    %16 = arith.addf %12, %15 : vector<64x1xf32>
    %17 = math.rsqrt %16 : vector<64x1xf32>
    %18 = vector.broadcast %17 : vector<64x1xf32> to vector<64x128xf32>
    %19 = arith.mulf %14, %18 : vector<64x128xf32>
    %c0_6 = arith.constant 0 : index
    %c0_7 = arith.constant 0 : index
    %20 = vector.load %arg3[%c0_6, %c0_7] : memref<1x128xf32, #tpu.memory_space<vmem>>, vector<1x128xf32>
    %21 = vector.broadcast %20 : vector<1x128xf32> to vector<64x128xf32>
    %22 = arith.mulf %19, %21 : vector<64x128xf32>
    %c0_8 = arith.constant 0 : index
    %c0_9 = arith.constant 0 : index
    %23 = vector.load %arg4[%c0_8, %c0_9] : memref<1x128xf32, #tpu.memory_space<vmem>>, vector<1x128xf32>
    %24 = vector.broadcast %23 : vector<1x128xf32> to vector<64x128xf32>
    %25 = arith.addf %22, %24 : vector<64x128xf32>
    %26 = arith.truncf %25 : vector<64x128xf32> to vector<64x128xbf16>
    %c0_10 = arith.constant 0 : index
    %c0_11 = arith.constant 0 : index
    %27 = vector.load %arg5[%c0_10, %c0_11] : memref<128x512xbf16, #tpu.memory_space<vmem>>, vector<128x512xbf16>
    %cst_12 = arith.constant dense<0.000000e+00> : vector<64x512xf32>
    %28 = tpu.matmul %26, %27, %cst_12 {dimension_numbers = #tpu.dot_dimension_numbers<[1], [0], [0], [1], [0, 0, 1, 1], [], []>} : vector<64x128xbf16>, vector<128x512xbf16>, vector<64x512xf32> -> vector<64x512xf32>
    %c0_13 = arith.constant 0 : index
    %c0_14 = arith.constant 0 : index
    %29 = vector.load %arg6[%c0_13, %c0_14] : memref<1x512xf32, #tpu.memory_space<vmem>>, vector<1x512xf32>
    %30 = vector.broadcast %29 : vector<1x512xf32> to vector<64x512xf32>
    %31 = arith.addf %28, %30 : vector<64x512xf32>
    %32 = arith.truncf %31 : vector<64x512xf32> to vector<64x512xbf16>
    %33 = vector.extract_strided_slice %32 {offsets = [0, 0], sizes = [64, 64], strides = [1, 1]} : vector<64x512xbf16> to vector<64x64xbf16>
    %c0_15 = arith.constant 0 : index
    %c0_16 = arith.constant 0 : index
    %c0_17 = arith.constant 0 : index
    %c0_18 = arith.constant 0 : index
    %34 = vector.load %arg11[%c0_15, %c0_16, %c0_17, %c0_18] : memref<1x8x64x64xbf16, #tpu.memory_space<vmem>>, vector<1x1x64x64xbf16>
    %35 = vector.shape_cast %34 : vector<1x1x64x64xbf16> to vector<64x64xbf16>
    %36 = vector.shape_cast %33 : vector<64x64xbf16> to vector<1x1x64x64xbf16>
    tpu.vector_store %arg11[%c0_15, %c0_16, %c0_17, %c0_18], %36 {strides = array<i32>} : memref<1x8x64x64xbf16, #tpu.memory_space<vmem>>, vector<1x1x64x64xbf16>,
    %37 = vector.extract_strided_slice %32 {offsets = [0, 64], sizes = [64, 64], strides = [1, 1]} : vector<64x512xbf16> to vector<64x64xbf16>
    %c0_19 = arith.constant 0 : index
    %c1 = arith.constant 1 : index
    %c0_20 = arith.constant 0 : index
    %c0_21 = arith.constant 0 : index
    %38 = vector.load %arg11[%c0_19, %c1, %c0_20, %c0_21] : memref<1x8x64x64xbf16, #tpu.memory_space<vmem>>, vector<1x1x64x64xbf16>
    %39 = vector.shape_cast %38 : vector<1x1x64x64xbf16> to vector<64x64xbf16>
    %40 = vector.shape_cast %37 : vector<64x64xbf16> to vector<1x1x64x64xbf16>
    tpu.vector_store %arg11[%c0_19, %c1, %c0_20, %c0_21], %40 {strides = array<i32>} : memref<1x8x64x64xbf16, #tpu.memory_space<vmem>>, vector<1x1x64x64xbf16>,
    %41 = vector.extract_strided_slice %32 {offsets = [0, 128], sizes = [64, 64], strides = [1, 1]} : vector<64x512xbf16> to vector<64x64xbf16>
    %c0_22 = arith.constant 0 : index
    %c2 = arith.constant 2 : index
    %c0_23 = arith.constant 0 : index
    %c0_24 = arith.constant 0 : index
    %42 = vector.load %arg11[%c0_22, %c2, %c0_23, %c0_24] : memref<1x8x64x64xbf16, #tpu.memory_space<vmem>>, vector<1x1x64x64xbf16>
    %43 = vector.shape_cast %42 : vector<1x1x64x64xbf16> to vector<64x64xbf16>
    %44 = vector.shape_cast %41 : vector<64x64xbf16> to vector<1x1x64x64xbf16>
    tpu.vector_store %arg11[%c0_22, %c2, %c0_23, %c0_24], %44 {strides = array<i32>} : memref<1x8x64x64xbf16, #tpu.memory_space<vmem>>, vector<1x1x64x64xbf16>,
    %45 = vector.extract_strided_slice %32 {offsets = [0, 192], sizes = [64, 64], strides = [1, 1]} : vector<64x512xbf16> to vector<64x64xbf16>
    %c0_25 = arith.constant 0 : index
    %c3 = arith.constant 3 : index
    %c0_26 = arith.constant 0 : index
    %c0_27 = arith.constant 0 : index
    %46 = vector.load %arg11[%c0_25, %c3, %c0_26, %c0_27] : memref<1x8x64x64xbf16, #tpu.memory_space<vmem>>, vector<1x1x64x64xbf16>
    %47 = vector.shape_cast %46 : vector<1x1x64x64xbf16> to vector<64x64xbf16>
    %48 = vector.shape_cast %45 : vector<64x64xbf16> to vector<1x1x64x64xbf16>
    tpu.vector_store %arg11[%c0_25, %c3, %c0_26, %c0_27], %48 {strides = array<i32>} : memref<1x8x64x64xbf16, #tpu.memory_space<vmem>>, vector<1x1x64x64xbf16>,
    %49 = vector.extract_strided_slice %32 {offsets = [0, 256], sizes = [64, 64], strides = [1, 1]} : vector<64x512xbf16> to vector<64x64xbf16>
    %c0_28 = arith.constant 0 : index
    %c4 = arith.constant 4 : index
    %c0_29 = arith.constant 0 : index
    %c0_30 = arith.constant 0 : index
    %50 = vector.load %arg11[%c0_28, %c4, %c0_29, %c0_30] : memref<1x8x64x64xbf16, #tpu.memory_space<vmem>>, vector<1x1x64x64xbf16>
    %51 = vector.shape_cast %50 : vector<1x1x64x64xbf16> to vector<64x64xbf16>
    %52 = vector.shape_cast %49 : vector<64x64xbf16> to vector<1x1x64x64xbf16>
    tpu.vector_store %arg11[%c0_28, %c4, %c0_29, %c0_30], %52 {strides = array<i32>} : memref<1x8x64x64xbf16, #tpu.memory_space<vmem>>, vector<1x1x64x64xbf16>,
    %53 = vector.extract_strided_slice %32 {offsets = [0, 320], sizes = [64, 64], strides = [1, 1]} : vector<64x512xbf16> to vector<64x64xbf16>
    %c0_31 = arith.constant 0 : index
    %c5 = arith.constant 5 : index
    %c0_32 = arith.constant 0 : index
    %c0_33 = arith.constant 0 : index
    %54 = vector.load %arg11[%c0_31, %c5, %c0_32, %c0_33] : memref<1x8x64x64xbf16, #tpu.memory_space<vmem>>, vector<1x1x64x64xbf16>
    %55 = vector.shape_cast %54 : vector<1x1x64x64xbf16> to vector<64x64xbf16>
    %56 = vector.shape_cast %53 : vector<64x64xbf16> to vector<1x1x64x64xbf16>
    tpu.vector_store %arg11[%c0_31, %c5, %c0_32, %c0_33], %56 {strides = array<i32>} : memref<1x8x64x64xbf16, #tpu.memory_space<vmem>>, vector<1x1x64x64xbf16>,
    %57 = vector.extract_strided_slice %32 {offsets = [0, 384], sizes = [64, 64], strides = [1, 1]} : vector<64x512xbf16> to vector<64x64xbf16>
    %c0_34 = arith.constant 0 : index
    %c6 = arith.constant 6 : index
    %c0_35 = arith.constant 0 : index
    %c0_36 = arith.constant 0 : index
    %58 = vector.load %arg11[%c0_34, %c6, %c0_35, %c0_36] : memref<1x8x64x64xbf16, #tpu.memory_space<vmem>>, vector<1x1x64x64xbf16>
    %59 = vector.shape_cast %58 : vector<1x1x64x64xbf16> to vector<64x64xbf16>
    %60 = vector.shape_cast %57 : vector<64x64xbf16> to vector<1x1x64x64xbf16>
    tpu.vector_store %arg11[%c0_34, %c6, %c0_35, %c0_36], %60 {strides = array<i32>} : memref<1x8x64x64xbf16, #tpu.memory_space<vmem>>, vector<1x1x64x64xbf16>,
    %61 = vector.extract_strided_slice %32 {offsets = [0, 448], sizes = [64, 64], strides = [1, 1]} : vector<64x512xbf16> to vector<64x64xbf16>
    %c0_37 = arith.constant 0 : index
    %c7 = arith.constant 7 : index
    %c0_38 = arith.constant 0 : index
    %c0_39 = arith.constant 0 : index
    %62 = vector.load %arg11[%c0_37, %c7, %c0_38, %c0_39] : memref<1x8x64x64xbf16, #tpu.memory_space<vmem>>, vector<1x1x64x64xbf16>
    %63 = vector.shape_cast %62 : vector<1x1x64x64xbf16> to vector<64x64xbf16>
    %64 = vector.shape_cast %61 : vector<64x64xbf16> to vector<1x1x64x64xbf16>
    tpu.vector_store %arg11[%c0_37, %c7, %c0_38, %c0_39], %64 {strides = array<i32>} : memref<1x8x64x64xbf16, #tpu.memory_space<vmem>>, vector<1x1x64x64xbf16>,
    %c0_40 = arith.constant 0 : index
    %c0_41 = arith.constant 0 : index
    %65 = vector.load %arg7[%c0_40, %c0_41] : memref<128x512xbf16, #tpu.memory_space<vmem>>, vector<128x512xbf16>
    %cst_42 = arith.constant dense<0.000000e+00> : vector<64x512xf32>
    %66 = tpu.matmul %26, %65, %cst_42 {dimension_numbers = #tpu.dot_dimension_numbers<[1], [0], [0], [1], [0, 0, 1, 1], [], []>} : vector<64x128xbf16>, vector<128x512xbf16>, vector<64x512xf32> -> vector<64x512xf32>
    %c0_43 = arith.constant 0 : index
    %c0_44 = arith.constant 0 : index
    %67 = vector.load %arg8[%c0_43, %c0_44] : memref<1x512xf32, #tpu.memory_space<vmem>>, vector<1x512xf32>
    %68 = vector.broadcast %67 : vector<1x512xf32> to vector<64x512xf32>
    %69 = arith.addf %66, %68 : vector<64x512xf32>
    %70 = arith.truncf %69 : vector<64x512xf32> to vector<64x512xbf16>
    %71 = vector.extract_strided_slice %70 {offsets = [0, 0], sizes = [64, 64], strides = [1, 1]} : vector<64x512xbf16> to vector<64x64xbf16>
    %c0_45 = arith.constant 0 : index
    %c0_46 = arith.constant 0 : index
    %c0_47 = arith.constant 0 : index
    %c0_48 = arith.constant 0 : index
    %72 = vector.load %arg12[%c0_45, %c0_46, %c0_47, %c0_48] : memref<1x8x64x64xbf16, #tpu.memory_space<vmem>>, vector<1x1x64x64xbf16>
    %73 = vector.shape_cast %72 : vector<1x1x64x64xbf16> to vector<64x64xbf16>
    %74 = vector.shape_cast %71 : vector<64x64xbf16> to vector<1x1x64x64xbf16>
    tpu.vector_store %arg12[%c0_45, %c0_46, %c0_47, %c0_48], %74 {strides = array<i32>} : memref<1x8x64x64xbf16, #tpu.memory_space<vmem>>, vector<1x1x64x64xbf16>,
    %75 = vector.extract_strided_slice %70 {offsets = [0, 64], sizes = [64, 64], strides = [1, 1]} : vector<64x512xbf16> to vector<64x64xbf16>
    %c0_49 = arith.constant 0 : index
    %c1_50 = arith.constant 1 : index
    %c0_51 = arith.constant 0 : index
    %c0_52 = arith.constant 0 : index
    %76 = vector.load %arg12[%c0_49, %c1_50, %c0_51, %c0_52] : memref<1x8x64x64xbf16, #tpu.memory_space<vmem>>, vector<1x1x64x64xbf16>
    %77 = vector.shape_cast %76 : vector<1x1x64x64xbf16> to vector<64x64xbf16>
    %78 = vector.shape_cast %75 : vector<64x64xbf16> to vector<1x1x64x64xbf16>
    tpu.vector_store %arg12[%c0_49, %c1_50, %c0_51, %c0_52], %78 {strides = array<i32>} : memref<1x8x64x64xbf16, #tpu.memory_space<vmem>>, vector<1x1x64x64xbf16>,
    %79 = vector.extract_strided_slice %70 {offsets = [0, 128], sizes = [64, 64], strides = [1, 1]} : vector<64x512xbf16> to vector<64x64xbf16>
    %c0_53 = arith.constant 0 : index
    %c2_54 = arith.constant 2 : index
    %c0_55 = arith.constant 0 : index
    %c0_56 = arith.constant 0 : index
    %80 = vector.load %arg12[%c0_53, %c2_54, %c0_55, %c0_56] : memref<1x8x64x64xbf16, #tpu.memory_space<vmem>>, vector<1x1x64x64xbf16>
    %81 = vector.shape_cast %80 : vector<1x1x64x64xbf16> to vector<64x64xbf16>
    %82 = vector.shape_cast %79 : vector<64x64xbf16> to vector<1x1x64x64xbf16>
    tpu.vector_store %arg12[%c0_53, %c2_54, %c0_55, %c0_56], %82 {strides = array<i32>} : memref<1x8x64x64xbf16, #tpu.memory_space<vmem>>, vector<1x1x64x64xbf16>,
    %83 = vector.extract_strided_slice %70 {offsets = [0, 192], sizes = [64, 64], strides = [1, 1]} : vector<64x512xbf16> to vector<64x64xbf16>
    %c0_57 = arith.constant 0 : index
    %c3_58 = arith.constant 3 : index
    %c0_59 = arith.constant 0 : index
    %c0_60 = arith.constant 0 : index
    %84 = vector.load %arg12[%c0_57, %c3_58, %c0_59, %c0_60] : memref<1x8x64x64xbf16, #tpu.memory_space<vmem>>, vector<1x1x64x64xbf16>
    %85 = vector.shape_cast %84 : vector<1x1x64x64xbf16> to vector<64x64xbf16>
    %86 = vector.shape_cast %83 : vector<64x64xbf16> to vector<1x1x64x64xbf16>
    tpu.vector_store %arg12[%c0_57, %c3_58, %c0_59, %c0_60], %86 {strides = array<i32>} : memref<1x8x64x64xbf16, #tpu.memory_space<vmem>>, vector<1x1x64x64xbf16>,
    %87 = vector.extract_strided_slice %70 {offsets = [0, 256], sizes = [64, 64], strides = [1, 1]} : vector<64x512xbf16> to vector<64x64xbf16>
    %c0_61 = arith.constant 0 : index
    %c4_62 = arith.constant 4 : index
    %c0_63 = arith.constant 0 : index
    %c0_64 = arith.constant 0 : index
    %88 = vector.load %arg12[%c0_61, %c4_62, %c0_63, %c0_64] : memref<1x8x64x64xbf16, #tpu.memory_space<vmem>>, vector<1x1x64x64xbf16>
    %89 = vector.shape_cast %88 : vector<1x1x64x64xbf16> to vector<64x64xbf16>
    %90 = vector.shape_cast %87 : vector<64x64xbf16> to vector<1x1x64x64xbf16>
    tpu.vector_store %arg12[%c0_61, %c4_62, %c0_63, %c0_64], %90 {strides = array<i32>} : memref<1x8x64x64xbf16, #tpu.memory_space<vmem>>, vector<1x1x64x64xbf16>,
    %91 = vector.extract_strided_slice %70 {offsets = [0, 320], sizes = [64, 64], strides = [1, 1]} : vector<64x512xbf16> to vector<64x64xbf16>
    %c0_65 = arith.constant 0 : index
    %c5_66 = arith.constant 5 : index
    %c0_67 = arith.constant 0 : index
    %c0_68 = arith.constant 0 : index
    %92 = vector.load %arg12[%c0_65, %c5_66, %c0_67, %c0_68] : memref<1x8x64x64xbf16, #tpu.memory_space<vmem>>, vector<1x1x64x64xbf16>
    %93 = vector.shape_cast %92 : vector<1x1x64x64xbf16> to vector<64x64xbf16>
    %94 = vector.shape_cast %91 : vector<64x64xbf16> to vector<1x1x64x64xbf16>
    tpu.vector_store %arg12[%c0_65, %c5_66, %c0_67, %c0_68], %94 {strides = array<i32>} : memref<1x8x64x64xbf16, #tpu.memory_space<vmem>>, vector<1x1x64x64xbf16>,
    %95 = vector.extract_strided_slice %70 {offsets = [0, 384], sizes = [64, 64], strides = [1, 1]} : vector<64x512xbf16> to vector<64x64xbf16>
    %c0_69 = arith.constant 0 : index
    %c6_70 = arith.constant 6 : index
    %c0_71 = arith.constant 0 : index
    %c0_72 = arith.constant 0 : index
    %96 = vector.load %arg12[%c0_69, %c6_70, %c0_71, %c0_72] : memref<1x8x64x64xbf16, #tpu.memory_space<vmem>>, vector<1x1x64x64xbf16>
    %97 = vector.shape_cast %96 : vector<1x1x64x64xbf16> to vector<64x64xbf16>
    %98 = vector.shape_cast %95 : vector<64x64xbf16> to vector<1x1x64x64xbf16>
    tpu.vector_store %arg12[%c0_69, %c6_70, %c0_71, %c0_72], %98 {strides = array<i32>} : memref<1x8x64x64xbf16, #tpu.memory_space<vmem>>, vector<1x1x64x64xbf16>,
    %99 = vector.extract_strided_slice %70 {offsets = [0, 448], sizes = [64, 64], strides = [1, 1]} : vector<64x512xbf16> to vector<64x64xbf16>
    %c0_73 = arith.constant 0 : index
    %c7_74 = arith.constant 7 : index
    %c0_75 = arith.constant 0 : index
    %c0_76 = arith.constant 0 : index
    %100 = vector.load %arg12[%c0_73, %c7_74, %c0_75, %c0_76] : memref<1x8x64x64xbf16, #tpu.memory_space<vmem>>, vector<1x1x64x64xbf16>
    %101 = vector.shape_cast %100 : vector<1x1x64x64xbf16> to vector<64x64xbf16>
    %102 = vector.shape_cast %99 : vector<64x64xbf16> to vector<1x1x64x64xbf16>
    tpu.vector_store %arg12[%c0_73, %c7_74, %c0_75, %c0_76], %102 {strides = array<i32>} : memref<1x8x64x64xbf16, #tpu.memory_space<vmem>>, vector<1x1x64x64xbf16>,
    %c0_77 = arith.constant 0 : index
    %c0_78 = arith.constant 0 : index
    %103 = vector.load %arg9[%c0_77, %c0_78] : memref<128x512xbf16, #tpu.memory_space<vmem>>, vector<128x512xbf16>
    %cst_79 = arith.constant dense<0.000000e+00> : vector<64x512xf32>
    %104 = tpu.matmul %26, %103, %cst_79 {dimension_numbers = #tpu.dot_dimension_numbers<[1], [0], [0], [1], [0, 0, 1, 1], [], []>} : vector<64x128xbf16>, vector<128x512xbf16>, vector<64x512xf32> -> vector<64x512xf32>
    %c0_80 = arith.constant 0 : index
    %c0_81 = arith.constant 0 : index
    %105 = vector.load %arg10[%c0_80, %c0_81] : memref<1x512xf32, #tpu.memory_space<vmem>>, vector<1x512xf32>
    %106 = vector.broadcast %105 : vector<1x512xf32> to vector<64x512xf32>
    %107 = arith.addf %104, %106 : vector<64x512xf32>
    %108 = arith.truncf %107 : vector<64x512xf32> to vector<64x512xbf16>
    %109 = vector.extract_strided_slice %108 {offsets = [0, 0], sizes = [64, 64], strides = [1, 1]} : vector<64x512xbf16> to vector<64x64xbf16>
    %c0_82 = arith.constant 0 : index
    %c0_83 = arith.constant 0 : index
    %c0_84 = arith.constant 0 : index
    %c0_85 = arith.constant 0 : index
    %110 = vector.load %arg13[%c0_82, %c0_83, %c0_84, %c0_85] : memref<1x8x64x64xbf16, #tpu.memory_space<vmem>>, vector<1x1x64x64xbf16>
    %111 = vector.shape_cast %110 : vector<1x1x64x64xbf16> to vector<64x64xbf16>
    %112 = vector.shape_cast %109 : vector<64x64xbf16> to vector<1x1x64x64xbf16>
    tpu.vector_store %arg13[%c0_82, %c0_83, %c0_84, %c0_85], %112 {strides = array<i32>} : memref<1x8x64x64xbf16, #tpu.memory_space<vmem>>, vector<1x1x64x64xbf16>,
    %113 = vector.extract_strided_slice %108 {offsets = [0, 64], sizes = [64, 64], strides = [1, 1]} : vector<64x512xbf16> to vector<64x64xbf16>
    %c0_86 = arith.constant 0 : index
    %c1_87 = arith.constant 1 : index
    %c0_88 = arith.constant 0 : index
    %c0_89 = arith.constant 0 : index
    %114 = vector.load %arg13[%c0_86, %c1_87, %c0_88, %c0_89] : memref<1x8x64x64xbf16, #tpu.memory_space<vmem>>, vector<1x1x64x64xbf16>
    %115 = vector.shape_cast %114 : vector<1x1x64x64xbf16> to vector<64x64xbf16>
    %116 = vector.shape_cast %113 : vector<64x64xbf16> to vector<1x1x64x64xbf16>
    tpu.vector_store %arg13[%c0_86, %c1_87, %c0_88, %c0_89], %116 {strides = array<i32>} : memref<1x8x64x64xbf16, #tpu.memory_space<vmem>>, vector<1x1x64x64xbf16>,
    %117 = vector.extract_strided_slice %108 {offsets = [0, 128], sizes = [64, 64], strides = [1, 1]} : vector<64x512xbf16> to vector<64x64xbf16>
    %c0_90 = arith.constant 0 : index
    %c2_91 = arith.constant 2 : index
    %c0_92 = arith.constant 0 : index
    %c0_93 = arith.constant 0 : index
    %118 = vector.load %arg13[%c0_90, %c2_91, %c0_92, %c0_93] : memref<1x8x64x64xbf16, #tpu.memory_space<vmem>>, vector<1x1x64x64xbf16>
    %119 = vector.shape_cast %118 : vector<1x1x64x64xbf16> to vector<64x64xbf16>
    %120 = vector.shape_cast %117 : vector<64x64xbf16> to vector<1x1x64x64xbf16>
    tpu.vector_store %arg13[%c0_90, %c2_91, %c0_92, %c0_93], %120 {strides = array<i32>} : memref<1x8x64x64xbf16, #tpu.memory_space<vmem>>, vector<1x1x64x64xbf16>,
    %121 = vector.extract_strided_slice %108 {offsets = [0, 192], sizes = [64, 64], strides = [1, 1]} : vector<64x512xbf16> to vector<64x64xbf16>
    %c0_94 = arith.constant 0 : index
    %c3_95 = arith.constant 3 : index
    %c0_96 = arith.constant 0 : index
    %c0_97 = arith.constant 0 : index
    %122 = vector.load %arg13[%c0_94, %c3_95, %c0_96, %c0_97] : memref<1x8x64x64xbf16, #tpu.memory_space<vmem>>, vector<1x1x64x64xbf16>
    %123 = vector.shape_cast %122 : vector<1x1x64x64xbf16> to vector<64x64xbf16>
    %124 = vector.shape_cast %121 : vector<64x64xbf16> to vector<1x1x64x64xbf16>
    tpu.vector_store %arg13[%c0_94, %c3_95, %c0_96, %c0_97], %124 {strides = array<i32>} : memref<1x8x64x64xbf16, #tpu.memory_space<vmem>>, vector<1x1x64x64xbf16>,
    %125 = vector.extract_strided_slice %108 {offsets = [0, 256], sizes = [64, 64], strides = [1, 1]} : vector<64x512xbf16> to vector<64x64xbf16>
    %c0_98 = arith.constant 0 : index
    %c4_99 = arith.constant 4 : index
    %c0_100 = arith.constant 0 : index
    %c0_101 = arith.constant 0 : index
    %126 = vector.load %arg13[%c0_98, %c4_99, %c0_100, %c0_101] : memref<1x8x64x64xbf16, #tpu.memory_space<vmem>>, vector<1x1x64x64xbf16>
    %127 = vector.shape_cast %126 : vector<1x1x64x64xbf16> to vector<64x64xbf16>
    %128 = vector.shape_cast %125 : vector<64x64xbf16> to vector<1x1x64x64xbf16>
    tpu.vector_store %arg13[%c0_98, %c4_99, %c0_100, %c0_101], %128 {strides = array<i32>} : memref<1x8x64x64xbf16, #tpu.memory_space<vmem>>, vector<1x1x64x64xbf16>,
    %129 = vector.extract_strided_slice %108 {offsets = [0, 320], sizes = [64, 64], strides = [1, 1]} : vector<64x512xbf16> to vector<64x64xbf16>
    %c0_102 = arith.constant 0 : index
    %c5_103 = arith.constant 5 : index
    %c0_104 = arith.constant 0 : index
    %c0_105 = arith.constant 0 : index
    %130 = vector.load %arg13[%c0_102, %c5_103, %c0_104, %c0_105] : memref<1x8x64x64xbf16, #tpu.memory_space<vmem>>, vector<1x1x64x64xbf16>
    %131 = vector.shape_cast %130 : vector<1x1x64x64xbf16> to vector<64x64xbf16>
    %132 = vector.shape_cast %129 : vector<64x64xbf16> to vector<1x1x64x64xbf16>
    tpu.vector_store %arg13[%c0_102, %c5_103, %c0_104, %c0_105], %132 {strides = array<i32>} : memref<1x8x64x64xbf16, #tpu.memory_space<vmem>>, vector<1x1x64x64xbf16>,
    %133 = vector.extract_strided_slice %108 {offsets = [0, 384], sizes = [64, 64], strides = [1, 1]} : vector<64x512xbf16> to vector<64x64xbf16>
    %c0_106 = arith.constant 0 : index
    %c6_107 = arith.constant 6 : index
    %c0_108 = arith.constant 0 : index
    %c0_109 = arith.constant 0 : index
    %134 = vector.load %arg13[%c0_106, %c6_107, %c0_108, %c0_109] : memref<1x8x64x64xbf16, #tpu.memory_space<vmem>>, vector<1x1x64x64xbf16>
    %135 = vector.shape_cast %134 : vector<1x1x64x64xbf16> to vector<64x64xbf16>
    %136 = vector.shape_cast %133 : vector<64x64xbf16> to vector<1x1x64x64xbf16>
    tpu.vector_store %arg13[%c0_106, %c6_107, %c0_108, %c0_109], %136 {strides = array<i32>} : memref<1x8x64x64xbf16, #tpu.memory_space<vmem>>, vector<1x1x64x64xbf16>,
    %137 = vector.extract_strided_slice %108 {offsets = [0, 448], sizes = [64, 64], strides = [1, 1]} : vector<64x512xbf16> to vector<64x64xbf16>
    %c0_110 = arith.constant 0 : index
    %c7_111 = arith.constant 7 : index
    %c0_112 = arith.constant 0 : index
    %c0_113 = arith.constant 0 : index
    %138 = vector.load %arg13[%c0_110, %c7_111, %c0_112, %c0_113] : memref<1x8x64x64xbf16, #tpu.memory_space<vmem>>, vector<1x1x64x64xbf16>
    %139 = vector.shape_cast %138 : vector<1x1x64x64xbf16> to vector<64x64xbf16>
    %140 = vector.shape_cast %137 : vector<64x64xbf16> to vector<1x1x64x64xbf16>
    tpu.vector_store %arg13[%c0_110, %c7_111, %c0_112, %c0_113], %140 {strides = array<i32>} : memref<1x8x64x64xbf16, #tpu.memory_space<vmem>>, vector<1x1x64x64xbf16>,
    return
  }
  func.func @transform_0(%arg0: i32, %arg1: i32) -> (i32, i32, i32) {
    %c0_i32 = arith.constant 0 : i32
    %c0_i32_0 = arith.constant 0 : i32
    return %arg0, %arg1, %c0_i32 : i32, i32, i32
  }
  func.func @transform_1(%arg0: i32, %arg1: i32) -> (i32, i32) {
    %c0_i32 = arith.constant 0 : i32
    %c0_i32_0 = arith.constant 0 : i32
    %c0_i32_1 = arith.constant 0 : i32
    return %c0_i32, %c0_i32_0 : i32, i32
  }
  func.func @transform_2(%arg0: i32, %arg1: i32) -> (i32, i32) {
    %c0_i32 = arith.constant 0 : i32
    %c0_i32_0 = arith.constant 0 : i32
    %c0_i32_1 = arith.constant 0 : i32
    return %c0_i32, %c0_i32_0 : i32, i32
  }
  func.func @transform_3(%arg0: i32, %arg1: i32) -> (i32, i32) {
    %c0_i32 = arith.constant 0 : i32
    %c0_i32_0 = arith.constant 0 : i32
    %c0_i32_1 = arith.constant 0 : i32
    return %c0_i32, %c0_i32_0 : i32, i32
  }
  func.func @transform_4(%arg0: i32, %arg1: i32) -> (i32, i32) {
    %c0_i32 = arith.constant 0 : i32
    %c0_i32_0 = arith.constant 0 : i32
    %c0_i32_1 = arith.constant 0 : i32
    return %c0_i32, %c0_i32_0 : i32, i32
  }
  func.func @transform_5(%arg0: i32, %arg1: i32) -> (i32, i32) {
    %c0_i32 = arith.constant 0 : i32
    %c0_i32_0 = arith.constant 0 : i32
    %c0_i32_1 = arith.constant 0 : i32
    return %c0_i32, %c0_i32_0 : i32, i32
  }
  func.func @transform_6(%arg0: i32, %arg1: i32) -> (i32, i32) {
    %c0_i32 = arith.constant 0 : i32
    %c0_i32_0 = arith.constant 0 : i32
    %c0_i32_1 = arith.constant 0 : i32
    return %c0_i32, %c0_i32_0 : i32, i32
  }
  func.func @transform_7(%arg0: i32, %arg1: i32) -> (i32, i32) {
    %c0_i32 = arith.constant 0 : i32
    %c0_i32_0 = arith.constant 0 : i32
    %c0_i32_1 = arith.constant 0 : i32
    return %c0_i32, %c0_i32_0 : i32, i32
  }
  func.func @transform_8(%arg0: i32, %arg1: i32) -> (i32, i32) {
    %c0_i32 = arith.constant 0 : i32
    %c0_i32_0 = arith.constant 0 : i32
    %c0_i32_1 = arith.constant 0 : i32
    return %c0_i32, %c0_i32_0 : i32, i32
  }
  func.func @transform_9(%arg0: i32, %arg1: i32) -> (i32, i32, i32, i32) {
    %c0_i32 = arith.constant 0 : i32
    %c0_i32_0 = arith.constant 0 : i32
    %c0_i32_1 = arith.constant 0 : i32
    return %arg0, %c0_i32, %arg1, %c0_i32_0 : i32, i32, i32, i32
  }
  func.func @transform_10(%arg0: i32, %arg1: i32) -> (i32, i32, i32, i32) {
    %c0_i32 = arith.constant 0 : i32
    %c0_i32_0 = arith.constant 0 : i32
    %c0_i32_1 = arith.constant 0 : i32
    return %arg0, %c0_i32, %arg1, %c0_i32_0 : i32, i32, i32, i32
  }
  func.func @transform_11(%arg0: i32, %arg1: i32) -> (i32, i32, i32, i32) {
    %c0_i32 = arith.constant 0 : i32
    %c0_i32_0 = arith.constant 0 : i32
    %c0_i32_1 = arith.constant 0 : i32
    return %arg0, %c0_i32, %arg1, %c0_i32_0 : i32, i32, i32, i32
  }
}

</mosaic_0001>

<bundles_post_ra>
// kernel: tpu_custom_call.1
= control target key start
LH: loop header
LB: loop body
LE: loop exit
PB: predicated region body
PF: predicated region fallthrough
CT: control target
= control target key end

     0   :  { %s6319_s0 = inlined_call_operand.hbm [shape: f32[2,128,128], index: 0, kind: input, shape index: {}]   ;;  %s6320_s1 = inlined_call_operand.vmem [shape: f32[1,128], index: 1, kind: input, shape index: {}]   ;;  %s6321_s2 = inlined_call_operand.vmem [shape: f32[1,128], index: 2, kind: input, shape index: {}]   ;;  %s6322_s3 = inlined_call_operand.hbm [shape: bf16[128,512], index: 3, kind: input, shape index: {}]   ;;  %s6323_s4 = inlined_call_operand.vmem [shape: f32[1,512], index: 4, kind: input, shape index: {}]   ;;  %s6324_s5 = inlined_call_operand.hbm [shape: bf16[128,512], index: 5, kind: input, shape index: {}]   ;;  %s6325_s6 = inlined_call_operand.vmem [shape: f32[1,512], index: 6, kind: input, shape index: {}]   ;;  %s6326_s7 = inlined_call_operand.hbm [shape: bf16[128,512], index: 7, kind: input, shape index: {}]   ;;  %s6327_s8 = inlined_call_operand.vmem [shape: f32[1,512], index: 8, kind: input, shape index: {}]   ;;  %s6328_s9 = inlined_call_operand.vmem [shape: bf16[2,8,128,64], index: 9, kind: output, shape index: {0}]   ;;  %s6329_s10 = inlined_call_operand.vmem [shape: bf16[2,8,128,64], index: 10, kind: output, shape index: {1}]   ;;  %s6330_s11 = inlined_call_operand.vmem [shape: bf16[2,8,128,64], index: 11, kind: output, shape index: {2}]  }
   0x1   :  { %6336 = sst [smem:[#allocation18_spill]] %s6322_s3 }
   0x2   :  { %6337 = sst [smem:[#allocation19_spill]] %s6324_s5 }
   0x3   :  { %6338 = sst [smem:[#allocation20_spill]] %s6325_s6 }
   0x4   :  { %6339 = sst [smem:[#allocation21_spill]] %s6326_s7 }
   0x5   :  { %6340 = sst [smem:[#allocation22_spill]] %s6327_s8 }
   0x6   :  { %6341 = sst [smem:[#allocation23_spill]] %s6328_s9 }
   0x7   :  { %6342 = sst [smem:[#allocation24_spill]] %s6329_s10 }
   0x8   :  { %6343 = sst [smem:[#allocation25_spill]] %s6330_s11 }
   0x9   :  { %17 = vsyncpa [#allocation3], 0 }
   0xa   :  { %19 = vsyncpa [#allocation3 + $0x1], 0 }
   0xb   :  { %20 = vsyncpa [#allocation5], 0 }
   0xc   :  { %21 = vsyncpa [#allocation8], 0  ;;  %s4696_s17 = smov 0   ;;  %s4698_s18 = smov 0  }
   0xd   :  { %s4700_s19 = smov 0   ;;  %s4702_s20 = smov 0  }
   0xe   :  { %s4704_s21 = smov 0   ;;  %s4706_s22 = smov 0  }
   0xf   :  { %s4708_s23 = smov 0   ;;  %s4710_s24 = smov 0  }
  0x10 LB: > { %6344 = sst [smem:[#allocation15_spill]] %s4608_s20  ;;  %s3677_s25 = sadd.s32 4294967295, %s4624_s24   ;;  %s4624_s24 = sphi %s4710_s24, %s27_s24   ;;  %s4620_s23 = sphi %s4708_s23, %s6381_s23   ;;  %s4616_s22 = sphi %s4706_s22, %s6380_s22   ;;  %s4612_s21 = sphi %s4704_s21, %s6379_s21   ;;  %s4608_s20 = sphi %s4702_s20, %s6378_s20   ;;  %s4604_s19 = sphi %s4700_s19, %s6377_s19   ;;  %s4600_s18 = sphi %s4698_s18, %s6376_s18   ;;  %s4596_s17 = sphi %s4696_s17, %s6375_s17  }
  0x11   : > { %6345 = sst [smem:[#allocation16_spill]] %s4612_s21  ;;  %p61_p0 = scmp.ne.s32.totalorder %s4600_s18, %s4596_s17 }
  0x12   : > { %p4736_p1 = scmp.eq.s32.totalorder %s3677_s25, 0  ;;  %p4740_p2 = scmp.eq.s32.totalorder %s3677_s25, 3 }
  0x13   : > { %p3679_p3 = scmp.ge.s32.totalorder %s4624_s24, 1  ;;  %p324_p4 = scmp.lt.s32.totalorder %s4624_s24, 5 }
  0x14   : > { %s6346_s26 = scalar_select %p4736_p1, 1, 0 }
  0x15   : > { %s6347_s27 = scalar_select %p4740_p2, 1, 0 }
  0x16   : > { %p4748_p5 = por %p4736_p1, %p61_p0  ;;  %p4752_p6 = pnand %p3679_p3, %p324_p4 }
  0x17   : > { %s4626_s30 = smov [#allocation4]   ;;  %s4627_s14 = smov [#allocation6]  }
  0x18   : > { %s6348_s28 = scalar_select %p4748_p5, 1, 0 }
  0x19   : > { %s6349_s29 = scalar_select %p4752_p6, 1, 0 }
  0x1a   : > { %s342_s12 = sshll.u32 %s4626_s30, 4  ;;  %p4182_p7 = pneg %p4752_p6  ;;  %s343_s12 = int_to_ptr.vmem [resolvable:$true] %s342_s12 }
  0x1b   : > { %s358_s15 = sshll.u32 %s4627_s14, 4  ;;  %s6351_s3 = sld [smem:[#allocation18_spill]]  ;;  %s4764_s15 = int_to_ptr.vmem [resolvable:$true] %s358_s15 }
  0x1c   : > { %p4760_p8 = pnand %p4182_p7, %p4736_p1 }
  0x1e   : > { %p4774_p10 = pneg %p4760_p8 }
  0x21   : > { %s4436_s25 = scalar_lea.hbm %s6351_s3, 4096 }
  0x22   : > { %p4437_p9 = scmp.ne.s32.totalorder %s6351_s3, %s4436_s25  ;;  %p4443_p13 = scmp.lt.u32.totalorder %s4436_s25, %s6351_s3 }
  0x24   : > { %p4439_p11 = pnand %p4774_p10, %p4437_p9 }
  0x26   : > { %p4440_p12 = pneg %p4439_p11 }
  0x28   : > { %p4445_p0 = pnand %p4443_p13, %p4440_p12 }
  0x2a   : > { %4448 = shalt.err (!%p4445_p0)
}
  0x2b   : > { %s4449_s16 = scalar_lea.vmem %s343_s12, 4096  ;;  %p4457_p1 = scmp.lt.s32.totalorder %s343_s12, %s343_s12 }
  0x2c   : > { %p4450_p3 = scmp.ne.s32.totalorder %s343_s12, %s4449_s16  ;;  %p4458_p5 = scmp.lt.s32.totalorder %s4449_s16, %s4449_s16 }
  0x2e   : > { %p4452_p4 = pnand %p4450_p3, %p4774_p10  ;;  %p4459_p6 = por %p4458_p5, %p4457_p1 }
  0x30   : > { %p4453_p7 = pneg %p4452_p4 }
  0x32   : > { %p4460_p2 = pnand %p4459_p6, %p4453_p7 }
  0x34   : > { %4463 = shalt.err (!%p4460_p2)
}
  0x35   : > { %s4628_s10 = smov 256   ;;  %s4629_s11 = smov 16  }
  0x36   : > { %4185 = dma.hbm_to_vmem [thread:$0]  (!%p4760_p8), %s6351_s3, 4096, %s343_s12, [#allocation5], %s4628_s10, %s4628_s10, %s4629_s11  }
  0x37   : > { %s6353_s5 = sld [smem:[#allocation19_spill]] }
  0x3d   : > { %s4464_s21 = scalar_lea.hbm %s6353_s5, 4096 }
  0x3e   : > { %p4465_p1 = scmp.ne.s32.totalorder %s6353_s5, %s4464_s21  ;;  %p4471_p6 = scmp.lt.u32.totalorder %s4464_s21, %s6353_s5 }
  0x40   : > { %p4467_p2 = pnand %p4465_p1, %p4774_p10 }
  0x42   : > { %p4468_p5 = pneg %p4467_p2 }
  0x44   : > { %p4473_p9 = pnand %p4471_p6, %p4468_p5 }
  0x46   : > { %4476 = shalt.err (!%p4473_p9)
}
  0x47   : > { %s4477_s12 = scalar_lea.vmem %s4764_s15, 4096  ;;  %p4485_p0 = scmp.lt.s32.totalorder %s4764_s15, %s4764_s15 }
  0x48   : > { %p4478_p11 = scmp.ne.s32.totalorder %s4764_s15, %s4477_s12  ;;  %p4486_p3 = scmp.lt.s32.totalorder %s4477_s12, %s4477_s12 }
  0x4a   : > { %p4480_p12 = pnand %p4478_p11, %p4774_p10  ;;  %p4487_p4 = por %p4486_p3, %p4485_p0 }
  0x4c   : > { %p4481_p13 = pneg %p4480_p12 }
  0x4e   : > { %p4488_p7 = pnand %p4487_p4, %p4481_p13 }
  0x50   : > { %4491 = shalt.err (!%p4488_p7)
}
  0x51   : > { %4188 = dma.hbm_to_vmem [thread:$0]  (!%p4760_p8), %s6353_s5, 4096, %s4764_s15, [#allocation5], %s4628_s10, %s4628_s10, %s4629_s11  }
  0x52   : > { %s4630_s20 = smov [#allocation7]   ;;  %s6354_s7 = sld [smem:[#allocation21_spill]] }
  0x53   : > { %s374_s21 = sshll.u32 %s4630_s20, 4  ;;  %s375_s21 = int_to_ptr.vmem [resolvable:$true] %s374_s21 }
  0x58   : > { %s4492_s25 = scalar_lea.hbm %s6354_s7, 4096 }
  0x59   : > { %p4493_p1 = scmp.ne.s32.totalorder %s6354_s7, %s4492_s25  ;;  %p4499_p6 = scmp.lt.u32.totalorder %s4492_s25, %s6354_s7 }
  0x5b   : > { %p4495_p2 = pnand %p4493_p1, %p4774_p10 }
  0x5d   : > { %p4496_p5 = pneg %p4495_p2 }
  0x5f   : > { %p4501_p9 = pnand %p4499_p6, %p4496_p5 }
  0x61   : > { %4504 = shalt.err (!%p4501_p9)
}
  0x62   : > { %s4505_s15 = scalar_lea.vmem %s375_s21, 4096  ;;  %p4513_p0 = scmp.lt.s32.totalorder %s375_s21, %s375_s21 }
  0x63   : > { %p4506_p11 = scmp.ne.s32.totalorder %s375_s21, %s4505_s15  ;;  %p4514_p3 = scmp.lt.s32.totalorder %s4505_s15, %s4505_s15 }
  0x65   : > { %p4508_p12 = pnand %p4506_p11, %p4774_p10  ;;  %p4515_p4 = por %p4514_p3, %p4513_p0 }
  0x67   : > { %p4509_p13 = pneg %p4508_p12 }
  0x69   : > { %p4516_p7 = pnand %p4515_p4, %p4509_p13 }
  0x6b   : > { %4519 = shalt.err (!%p4516_p7)
}
  0x6c   : > { %4191 = dma.hbm_to_vmem [thread:$0]  (!%p4760_p8), %s6354_s7, 4096, %s375_s21, [#allocation8], %s4628_s10, %s4628_s10, %s4629_s11  }
  0x6d   : > { %s36_s30 = sadd.s32 1, %s4616_s22  ;;  %s39_s13 = sadd.s32 1, %s4620_s23 }
  0x6e   : > { %p37_p10 = scmp.ge.s32.totalorder %s36_s30, 2  ;;  %s48_s8 = sadd.s32 1, %s4604_s19 }
  0x6f   : > { %p55_p1 = scmp.ne.s32.totalorder %s4604_s19, %s4600_s18  ;;  %p56_p2 = scmp.eq.s32.totalorder %s4624_s24, 0 }
  0x70   : > { %s6383_s30 = smov (%p37_p10, %s36_s30), 0  ;;  %s6385_s13 = smov (!%p37_p10, %s39_s13), %s4620_s23 }
  0x71   : > { %6355 = sst [smem:[#allocation17_spill]] %s6383_s30  ;;  %s44_s20 = ssub.s32 %s4616_s22, %s6383_s30 }
  0x72   : > { %p4851_p5 = por %p56_p2, %p55_p1  ;;  %p41_p8 = scmp.ge.s32.totalorder %s6385_s13, 2 }
  0x73   : > { %p6357_p6 = scmp.ne.s32.totalorder %s6347_s27, 0  ;;  %p4199_p11 = scmp.lt.s32.totalorder %s4624_s24, 4 }
  0x74   : > { %s391_s11 = sand.u32 1, %s4604_s19   ;;  %s6387_s13 = smov (%p41_p8, %s6385_s13), 0 }
  0x75   : > { %p4857_p9 = por %p6357_p6, %p55_p1  ;;  %s3684_s21 = sshll.u32 %s391_s11, 6 }
  0x76   : > { %s43_s17 = ssub.s32 %s4620_s23, %s6387_s13  ;;  %s3685_s14 = sshll.u32 %s4616_s22, 3 }
  0x77   : > { %s45_s25 = sor.u32 %s44_s20, %s43_s17  ;;  %s3686_s16 = sshll.u32 %s4620_s23, 4 }
  0x78   : > { %p46_p12 = scmp.eq.s32.totalorder %s45_s25, 0  ;;  %s401_s12 = sadd.s32 %s3686_s16, %s3685_s14 }
  0x79   : > { %s395_s15 = scalar_lea.vmem [#allocation2], %s3684_s21  ;;  %s3687_s6 = sshll.u32 %s401_s12, 7 }
  0x7a   : > { %s404_s27 = sshll.u32 %s395_s15, 4  ;;  %s4877_s30 = scalar_lea.hbm %s6319_s0, %s3687_s6  ;;  %s4872_s27 = int_to_ptr.vmem [resolvable:$true] %s404_s27 }
  0x7b   : > { %s4870_s3 = scalar_select %p46_p12, %s4604_s19, %s48_s8  }
  0x7c   : > { %p4883_p13 = pnand %p4199_p11, %p4851_p5  ;;  %s4887_s8 = scalar_lea.sflag [#allocation3], %s391_s11 }
  0x7d   : > { %s4520_s21 = scalar_lea.hbm %s4877_s30, 1024  ;;  %s4525_s9 = scalar_lea.hbm %s6319_s0, 4096 }
  0x7e   : > { %p4521_p0 = scmp.ne.s32.totalorder %s4877_s30, %s4520_s21  ;;  %p4522_p3 = pneg %p4883_p13 }
  0x7f   : > { %p4526_p10 = scmp.lt.u32.totalorder %s4877_s30, %s6319_s0  ;;  %p4527_p1 = scmp.lt.u32.totalorder %s4525_s9, %s4520_s21 }
  0x80   : > { %p4523_p4 = pnand %p4522_p3, %p4521_p0  ;;  %p4529_p5 = scmp.lt.u32.totalorder %s4520_s21, %s4877_s30 }
  0x81   : > { %p4528_p2 = por %p4527_p1, %p4526_p10 }
  0x82   : > { %p4524_p7 = pneg %p4523_p4 }
  0x83   : > { %p4530_p8 = por %p4529_p5, %p4528_p2 }
  0x85   : > { %p4531_p6 = pnand %p4530_p8, %p4524_p7 }
  0x87   : > { %4534 = shalt.err (!%p4531_p6)
}
  0x88   : > { %s4535_s11 = scalar_lea.vmem %s4872_s27, 1024  ;;  %s4631_s14 = smov [#allocation2]  }
  0x89   : > { %p4536_p11 = scmp.ne.s32.totalorder %s4872_s27, %s4535_s11  ;;  %s4540_s16 = sshll.u32 %s4631_s14, 4  ;;  %s4541_s16 = int_to_ptr.vmem [resolvable:$false] %s4540_s16 }
  0x8a   : > { %s4542_s12 = scalar_lea.vmem %s4541_s16, 2048  ;;  %p4543_p4 = scmp.lt.s32.totalorder %s4872_s27, %s4541_s16 }
  0x8b   : > { %p4538_p12 = pnand %p4536_p11, %p4522_p3  ;;  %p4544_p10 = scmp.lt.s32.totalorder %s4542_s12, %s4535_s11 }
  0x8d   : > { %p4539_p0 = pneg %p4538_p12  ;;  %p4545_p1 = por %p4544_p10, %p4543_p4 }
  0x8f   : > { %p4546_p2 = pnand %p4545_p1, %p4539_p0 }
  0x91   : > { %4549 = shalt.err (!%p4546_p2)
}
  0x92   : > { %s4632_s15 = smov 128   ;;  %s4633_s6 = smov 8  }
  0x93   : > { %4195 = dma.hbm_to_vmem [thread:$0]  (!%p4883_p13), %s4877_s30, 1024, %s4872_s27, %s4887_s8, %s4632_s15, %s4632_s15, %s4633_s6  }
  0x94   : > { %p6360_p3 = scmp.ne.s32.totalorder %s6349_s29, 0 }
  0x95   : > { %s4918_s21 = sand.u32 (!%p6360_p3), 1, %s4600_s18   ;;  %p6361_p7 = scmp.ne.s32.totalorder (!%p6360_p3), %s6348_s28, 0 }
  0x96   : > { %416 = sbr.rel (%p6360_p3) target bundleno = 917 (0x395), region = 56  ;;  %s3689_s5 = sshll.u32 (!%p6360_p3), %s4918_s21, 6 }
  0x97   : > { %s419_s7 = scalar_lea.sflag (!%p6360_p3), [#allocation3], %s4918_s21  ;;  %s4922_s9 = scalar_lea.vmem (!%p6360_p3), [#allocation2], %s3689_s5 }
  0x9d   : > { %4583 = dma.done.wait (%p6361_p7), %s419_s7, 1024  }
  0x9e   : > { %4585 = vsyncadd (%p6361_p7), %s419_s7, 4294966272  ;;  %p6362_p13 = scmp.ne.s32.totalorder %s6346_s26, 0 }
  0xa0   : > { %4587 = dma.done.wait (%p6362_p13), [#allocation5], 8192  }
  0xa1   : > { %4589 = vsyncadd (%p6362_p13), [#allocation5], 4294959104 }
  0xa2   : > { %4591 = dma.done.wait (%p6362_p13), [#allocation8], 4096  }
  0xa3   : > { %4593 = vsyncadd (%p6362_p13), [#allocation8], 4294963200  ;;  %v4937_v0 = vld [vmem:[%s4922_s9] sm:$0xff]  ;;  %v4940_v1 = vld [vmem:[%s4922_s9 + $0x8] sm:$0xff]  ;;  %v4634_v50 = vmov 0   ;;  %s5123_s8 = sshll.u32 %s4918_s21, 8 }
  0xa4   : > { %493 = vadd.xlane.f32.xlu0 %v4937_v0  ;;  %v518_v2 = vmul.f32 %v4937_v0, %v4937_v0  ;;  %v519_v3 = vmul.f32 %v4940_v1, %v4940_v1  ;;  %v4276_v4 = vld [vmem:[#allocation4 + $0x4] ss:$16 sps:$4 sm:$0xff]   ;;  %v4278_v6 = vld [vmem:[#allocation4 + $0xc] ss:$16 sps:$4 sm:$0xff]   ;;  %v4280_v11 = vld [vmem:[#allocation4] ss:$16 sps:$4 sm:$0xff]   ;;  %878 = vmatprep.mubr.bf16.mxu0 %v4634_v50 }
  0xa5   : > { %v4948_v5 = vld [vmem:[%s4922_s9 + $0x10] sm:$0xff]  ;;  %846 = vmatprep.subr.bf16.mxu0 %v4276_v4  ;;  %v4952_v7 = vld [vmem:[%s4922_s9 + $0x18] sm:$0xff]  ;;  %919 = vmatprep.subr.bf16.mxu1 %v4278_v6  ;;  %v4961_v10 = vld [vmem:[%s4922_s9 + $0x20] sm:$0xff]  ;;  %vm1036_vm0 = vcmask 519168   ;;  %s5134_s17 = scalar_lea.vmem [#allocation9], %s5123_s8  ;;  %s4635_s25 = smov 64  }
  0xa6   : > { %526 = vadd.xlane.f32.xlu1 %v518_v2  ;;  %v520_v8 = vmul.f32 %v4948_v5, %v4948_v5  ;;  %v521_v9 = vmul.f32 %v4952_v7, %v4952_v7  ;;  %v4281_v12 = vld [vmem:[#allocation4 + $0x8] ss:$16 sps:$4 sm:$0xff]   ;;  %847 = vmatpush1.bf16.msra.mxu0 %v4280_v11  ;;  %v4282_v14 = vld [vmem:[#allocation4 + $0x24] ss:$16 sps:$4 sm:$0xff]   ;;  %v4284_v15 = vld [vmem:[#allocation4 + $0x2c] ss:$16 sps:$4 sm:$0xff]   ;;  %v522_v16 = vmul.f32 %v4961_v10, %v4961_v10 }
  0xa7   : > { %v4964_v13 = vld [vmem:[%s4922_s9 + $0x28] sm:$0xff]  ;;  %920 = vmatpush1.bf16.msra.mxu1 %v4281_v12  ;;  %v4286_v17 = vld [vmem:[#allocation4 + $0x20] ss:$16 sps:$4 sm:$0xff]   ;;  %848 = vmatprep.subr.bf16.mxu0 %v4282_v14  ;;  %v4288_v21 = vld [vmem:[#allocation4 + $0x44] ss:$16 sps:$4 sm:$0xff]   ;;  %s6363_s16 = sld [smem:[#allocation20_spill]] }
  0xa8   : > { %495 = vadd.xlane.f32.xlu0 %v4940_v1  ;;  %v4287_v18 = vld [vmem:[#allocation4 + $0x28] ss:$16 sps:$4 sm:$0xff]   ;;  %921 = vmatprep.subr.bf16.mxu1 %v4284_v15  ;;  %v523_v19 = vmul.f32 %v4964_v13, %v4964_v13  ;;  %v4973_v20 = vld [vmem:[%s4922_s9 + $0x30] sm:$0xff]  ;;  %v4290_v22 = vld [vmem:[#allocation4 + $0x4c] ss:$16 sps:$4 sm:$0xff]   ;;  %s5336_s12 = scalar_lea.vmem [#allocation10], %s5123_s8 }
  0xa9   : > { %v4292_v23 = vld [vmem:[#allocation4 + $0x40] ss:$16 sps:$4 sm:$0xff]   ;;  %v4293_v24 = vld [vmem:[#allocation4 + $0x48] ss:$16 sps:$4 sm:$0xff]   ;;  %v4294_v26 = vld [vmem:[#allocation4 + $0x64] ss:$16 sps:$4 sm:$0xff]   ;;  %v524_v28 = vmul.f32 %v4973_v20, %v4973_v20  ;;  %951 = vmatprep.mubr.bf16.mxu1 %v4634_v50 }
  0xaa   : > { %528 = vadd.xlane.f32.xlu1 %v519_v3  ;;  %849 = vmatpush1.bf16.msra.mxu0 %v4286_v17  ;;  %v4976_v25 = vld [vmem:[%s4922_s9 + $0x38] sm:$0xff]  ;;  %v4298_v29 = vld [vmem:[#allocation4 + $0x60] ss:$16 sps:$4 sm:$0xff]   ;;  %v4300_v32 = vld [vmem:[#allocation4 + $0x84] ss:$16 sps:$4 sm:$0xff]   ;;  %s6364_s21 = sld [smem:[#allocation22_spill]] }
  0xab   : > { %922 = vmatpush1.bf16.msra.mxu1 %v4287_v18  ;;  %850 = vmatprep.subr.bf16.mxu0 %v4288_v21  ;;  %v4296_v27 = vld [vmem:[#allocation4 + $0x6c] ss:$16 sps:$4 sm:$0xff]   ;;  %v4299_v30 = vld [vmem:[#allocation4 + $0x68] ss:$16 sps:$4 sm:$0xff]   ;;  %v525_v31 = vmul.f32 %v4976_v25, %v4976_v25  ;;  %v4304_v34 = vld [vmem:[#allocation4 + $0x80] ss:$16 sps:$4 sm:$0xff]  }
  0xac   : > { %497 = vadd.xlane.f32.xlu0 %v4948_v5  ;;  %923 = vmatprep.subr.bf16.mxu1 %v4290_v22  ;;  %v4302_v33 = vld [vmem:[#allocation4 + $0x8c] ss:$16 sps:$4 sm:$0xff]   ;;  %v4305_v35 = vld [vmem:[#allocation4 + $0x88] ss:$16 sps:$4 sm:$0xff]   ;;  %v4306_v36 = vld [vmem:[#allocation4 + $0xa4] ss:$16 sps:$4 sm:$0xff]  }
  0xad   : > { %v4308_v37 = vld [vmem:[#allocation4 + $0xac] ss:$16 sps:$4 sm:$0xff]   ;;  %v4310_v38 = vld [vmem:[#allocation4 + $0xa0] ss:$16 sps:$4 sm:$0xff]   ;;  %v4311_v39 = vld [vmem:[#allocation4 + $0xa8] ss:$16 sps:$4 sm:$0xff]  }
  0xae   : > { %499 = vadd.xlane.f32.xlu1 %v4952_v7  ;;  %851 = vmatpush1.bf16.msra.mxu0 %v4292_v23  ;;  %v4312_v40 = vld [vmem:[#allocation4 + $0xc4] ss:$16 sps:$4 sm:$0xff]   ;;  %v4314_v41 = vld [vmem:[#allocation4 + $0xcc] ss:$16 sps:$4 sm:$0xff]   ;;  %v4316_v42 = vld [vmem:[#allocation4 + $0xc0] ss:$16 sps:$4 sm:$0xff]  }
  0xaf   : > { %924 = vmatpush1.bf16.msra.mxu1 %v4293_v24  ;;  %852 = vmatprep.subr.bf16.mxu0 %v4294_v26  ;;  %v4317_v43 = vld [vmem:[#allocation4 + $0xc8] ss:$16 sps:$4 sm:$0xff]   ;;  %v4318_v44 = vld [vmem:[#allocation4 + $0xe4] ss:$16 sps:$4 sm:$0xff]   ;;  %v4320_v45 = vld [vmem:[#allocation4 + $0xec] ss:$16 sps:$4 sm:$0xff]  }
  0xb0   : > { %530 = vadd.xlane.f32.xlu0 %v520_v8  ;;  %925 = vmatprep.subr.bf16.mxu1 %v4296_v27  ;;  %v4322_v46 = vld [vmem:[#allocation4 + $0xe0] ss:$16 sps:$4 sm:$0xff]   ;;  %v4323_v47 = vld [vmem:[#allocation4 + $0xe8] ss:$16 sps:$4 sm:$0xff]   ;;  %v4326_v48 = vld [vmem:[#allocation6 + $0x4] ss:$16 sps:$4 sm:$0xff]  }
  0xb1   : > { %v4329_v49 = vld [vmem:[#allocation6 + $0xc] ss:$16 sps:$4 sm:$0xff]   ;;  %s5578_s5 = scalar_lea.vmem [#allocation11], %s5123_s8  ;;  %s6365_s7 = sld [smem:[#allocation15_spill]] (%p4857_p9) }
  0xb2   : > { %532 = vadd.xlane.f32.xlu1 %v521_v9  ;;  %853 = vmatpush1.bf16.msra.mxu0 %v4298_v29  ;;  %s6366_s9 = sld [smem:[#allocation16_spill]] (%p4857_p9)  ;;  %s6367_s8 = sld [smem:[#allocation23_spill]] (%p4857_p9) }
  0xb3   : > { %926 = vmatpush1.bf16.msra.mxu1 %v4299_v30  ;;  %854 = vmatprep.subr.bf16.mxu0 %v4300_v32  ;;  %v5000_v32 = vld [vmem:[%s6320_s1] ss:$0 sm:$0xff] }
  0xb4   : > { %501 = vadd.xlane.f32.xlu0 %v4961_v10  ;;  %927 = vmatprep.subr.bf16.mxu1 %v4302_v33 }
  0xb6   : > { %503 = vadd.xlane.f32.xlu1 %v4964_v13  ;;  %855 = vmatpush1.bf16.msra.mxu0 %v4304_v34 }
  0xb7   : > { %928 = vmatpush1.bf16.msra.mxu1 %v4305_v35  ;;  %856 = vmatprep.subr.bf16.mxu0 %v4306_v36  ;;  %s4061_s26 = sshll.u32 (%p4857_p9), %s6365_s7, 3 }
  0xb8   : > { %534 = vadd.xlane.f32.xlu0 %v522_v16  ;;  %929 = vmatprep.subr.bf16.mxu1 %v4308_v37  ;;  %s4062_s28 = sshll.u32 (%p4857_p9), %s6366_s9, 7 }
  0xb9   : > { %s2615_s29 = sadd.s32 (%p4857_p9), %s4062_s28, %s4061_s26 }
  0xba   : > { %536 = vadd.xlane.f32.xlu1 %v523_v19  ;;  %857 = vmatpush1.bf16.msra.mxu0 %v4310_v38  ;;  %s4063_s30 = sshll.u32 (%p4857_p9), %s2615_s29, 2 }
  0xbb   : > { %930 = vmatpush1.bf16.msra.mxu1 %v4311_v39  ;;  %858 = vmatprep.subr.bf16.mxu0 %v4312_v40 }
  0xbc   : > { %505 = vadd.xlane.f32.xlu0 %v4973_v20  ;;  %931 = vmatprep.subr.bf16.mxu1 %v4314_v41 }
  0xbe   : > { %507 = vadd.xlane.f32.xlu1 %v4976_v25  ;;  %859 = vmatpush1.bf16.msra.mxu0 %v4316_v42 }
  0xbf   : > { %932 = vmatpush1.bf16.msra.mxu1 %v4317_v43  ;;  %860 = vmatprep.subr.bf16.mxu0 %v4318_v44 }
  0xc0   : > { %538 = vadd.xlane.f32.xlu0 %v524_v28  ;;  %933 = vmatprep.subr.bf16.mxu1 %v4320_v45  ;;  %v5011_v45 = vld [vmem:[%s6321_s2] ss:$0 sm:$0xff] }
  0xc2   : > { %540 = vadd.xlane.f32.xlu1 %v525_v31  ;;  %861 = vmatpush1.bf16.msra.mxu0 %v4322_v46 }
  0xc3   : > { %934 = vmatpush1.bf16.msra.mxu1 %v4323_v47  ;;  %1502 = vmatprep.subr.bf16.mxu0 %v4326_v48 }
  0xc4   : > { %1575 = vmatprep.subr.bf16.mxu1 %v4329_v49 }
 0x131   : > { %v494_v51 = vpop.xlane.xlu0 %493 }
 0x132   : > { %v510_v52 = vmul.f32 0.0078125, %v494_v51 }
 0x133   : > { %v527_v53 = vpop.xlane.xlu1 %526 }
 0x134   : > { %v550_v54 = vmul.f32 %v510_v52, %v510_v52  ;;  %v542_v55 = vmul.f32 0.0078125, %v527_v53  ;;  %v566_v23 = vsub.f32 %v4937_v0, %v510_v52 }
 0x135   : > { %v496_v56 = vpop.xlane.xlu0 %495 }
 0x136   : > { %v558_v57 = vsub.f32 %v542_v55, %v550_v54  ;;  %v511_v58 = vmul.f32 0.0078125, %v496_v56 }
 0x137   : > { %v529_v59 = vpop.xlane.xlu1 %528 }
 0x138   : > { %v574_v60 = vadd.f32 1e-05, %v558_v57  ;;  %v551_v61 = vmul.f32 %v511_v58, %v511_v58  ;;  %v543_v62 = vmul.f32 0.0078125, %v529_v59  ;;  %v567_v0 = vsub.f32 %v4940_v1, %v511_v58  ;;  %v4324_v57 = vld [vmem:[#allocation6] ss:$16 sps:$4 sm:$0xff]  }
 0x139   : > { %v498_v63 = vpop.xlane.xlu0 %497  ;;  %v4327_v58 = vld [vmem:[#allocation6 + $0x8] ss:$16 sps:$4 sm:$0xff]  }
 0x13a   : > { %4420 = vrsqrt.f32 %v574_v60  ;;  %v559_v2 = vsub.f32 %v543_v62, %v551_v61  ;;  %v512_v3 = vmul.f32 0.0078125, %v498_v63  ;;  %v4332_v63 = vld [vmem:[#allocation6 + $0x24] ss:$16 sps:$4 sm:$0xff]  }
 0x13b   : > { %v500_v4 = vpop.xlane.xlu1 %499 }
 0x13c   : > { %v575_v6 = vadd.f32 1e-05, %v559_v2  ;;  %v552_v8 = vmul.f32 %v512_v3, %v512_v3  ;;  %v4986_v9 = vmul.f32 0.0078125, %v500_v4  ;;  %v568_v49 = vsub.f32 %v4948_v5, %v512_v3  ;;  %v4335_v2 = vld [vmem:[#allocation6 + $0x2c] ss:$16 sps:$4 sm:$0xff]  }
 0x13d   : > { %v531_v11 = vpop.xlane.xlu0 %530 }
 0x13e   : > { %4422 = vrsqrt.f32 %v575_v6  ;;  %v553_v12 = vmul.f32 %v4986_v9, %v4986_v9  ;;  %v544_v14 = vmul.f32 0.0078125, %v531_v11  ;;  %v569_v59 = vsub.f32 %v4952_v7, %v4986_v9 }
 0x13f   : > { %v533_v15 = vpop.xlane.xlu1 %532 }
 0x140   : > { %v560_v16 = vsub.f32 %v544_v14, %v552_v8  ;;  %v545_v17 = vmul.f32 0.0078125, %v533_v15  ;;  %v4333_v14 = vld [vmem:[#allocation6 + $0x28] ss:$16 sps:$4 sm:$0xff]  }
 0x141   : > { %v502_v18 = vpop.xlane.xlu0 %501 }
 0x142   : > { %v576_v19 = vadd.f32 1e-05, %v560_v16  ;;  %v561_v21 = vsub.f32 %v545_v17, %v553_v12  ;;  %v4990_v22 = vmul.f32 0.0078125, %v502_v18  ;;  %v4330_v12 = vld [vmem:[#allocation6 + $0x20] ss:$16 sps:$4 sm:$0xff]  }
 0x143   : > { %v504_v24 = vpop.xlane.xlu1 %503  ;;  %v4338_v17 = vld [vmem:[#allocation6 + $0x44] ss:$16 sps:$4 sm:$0xff]   ;;  %v4341_v18 = vld [vmem:[#allocation6 + $0x4c] ss:$16 sps:$4 sm:$0xff]  }
 0x144   : > { %v4421_v26 = vpop.eup %4420  ;;  %4424 = vrsqrt.f32 %v576_v19  ;;  %v577_v27 = vadd.f32 1e-05, %v561_v21  ;;  %v554_v28 = vmul.f32 %v4990_v22, %v4990_v22  ;;  %v4995_v30 = vmul.f32 0.0078125, %v504_v24 }
 0x145   : > { %v590_v29 = vmul.f32 %v4421_v26, %v566_v23  ;;  %v535_v31 = vpop.xlane.xlu0 %534  ;;  %v570_v16 = vsub.f32 %v4961_v10, %v4990_v22  ;;  %v4336_v10 = vld [vmem:[#allocation6 + $0x40] ss:$16 sps:$4 sm:$0xff]   ;;  %v4339_v22 = vld [vmem:[#allocation6 + $0x48] ss:$16 sps:$4 sm:$0xff]  }
 0x146   : > { %4426 = vrsqrt.f32 %v577_v27  ;;  %v546_v33 = vmul.f32 0.0078125, %v535_v31  ;;  %v555_v34 = vmul.f32 %v4995_v30, %v4995_v30  ;;  %v571_v21 = vsub.f32 %v4964_v13, %v4995_v30  ;;  %v4347_v31 = vld [vmem:[#allocation6 + $0x6c] ss:$16 sps:$4 sm:$0xff]  }
 0x147   : > { %v537_v35 = vpop.xlane.xlu1 %536  ;;  %v605_v39 = vmul.f32 %v5000_v32, %v590_v29  ;;  %v4344_v29 = vld [vmem:[#allocation6 + $0x64] ss:$16 sps:$4 sm:$0xff]  }
 0x148   : > { %v4423_v36 = vpop.eup %4422  ;;  %v562_v37 = vsub.f32 %v546_v33, %v554_v28  ;;  %v547_v38 = vmul.f32 0.0078125, %v537_v35 }
 0x149   : > { %v591_v40 = vmul.f32 %v4423_v36, %v567_v0  ;;  %v506_v41 = vpop.xlane.xlu0 %505  ;;  %v620_v53 = vadd.f32 %v5011_v45, %v605_v39  ;;  %v4342_v0 = vld [vmem:[#allocation6 + $0x60] ss:$16 sps:$4 sm:$0xff]   ;;  %v4353_v39 = vld [vmem:[#allocation6 + $0x8c] ss:$16 sps:$4 sm:$0xff]  }
 0x14a   : > { %v578_v42 = vadd.f32 1e-05, %v562_v37  ;;  %v563_v43 = vsub.f32 %v547_v38, %v555_v34  ;;  %v5006_v44 = vmul.f32 0.0078125, %v506_v41  ;;  %v4345_v34 = vld [vmem:[#allocation6 + $0x68] ss:$16 sps:$4 sm:$0xff]  }
 0x14b   : > { %v606_v1 = vmul.f32 %v5000_v32, %v591_v40  ;;  %v508_v46 = vpop.xlane.xlu1 %507  ;;  %v4350_v38 = vld [vmem:[#allocation6 + $0x84] ss:$16 sps:$4 sm:$0xff]  }
 0x14c   : > { %4428 = vrsqrt.f32 %v578_v42  ;;  %v579_v47 = vadd.f32 1e-05, %v563_v43  ;;  %v556_v48 = vmul.f32 %v5006_v44, %v5006_v44  ;;  %v5017_v51 = vmul.f32 0.0078125, %v508_v46  ;;  %v4348_v43 = vld [vmem:[#allocation6 + $0x80] ss:$16 sps:$4 sm:$0xff]  }
 0x14d   : > { %v539_v52 = vpop.xlane.xlu0 %538  ;;  %v621_v54 = vadd.f32 %v5011_v45, %v606_v1  ;;  %v572_v36 = vsub.f32 %v4973_v20, %v5006_v44  ;;  %v4351_v20 = vld [vmem:[#allocation6 + $0x88] ss:$16 sps:$4 sm:$0xff]   ;;  %v4356_v46 = vld [vmem:[#allocation6 + $0xa4] ss:$16 sps:$4 sm:$0xff]  }
 0x14e   : > { %v4425_v55 = vpop.eup %4424  ;;  %4430 = vrsqrt.f32 %v579_v47  ;;  %v548_v56 = vmul.f32 0.0078125, %v539_v52  ;;  %v557_v61 = vmul.f32 %v5017_v51, %v5017_v51  ;;  %v573_v40 = vsub.f32 %v4976_v25, %v5017_v51  ;;  %v4359_v47 = vld [vmem:[#allocation6 + $0xac] ss:$16 sps:$4 sm:$0xff]   ;;  %v4354_v25 = vld [vmem:[#allocation6 + $0xa0] ss:$16 sps:$4 sm:$0xff]  }
 0x14f   : > { %v592_v60 = vmul.f32 %v4425_v55, %v568_v49  ;;  %v541_v5 = vpop.xlane.xlu1 %540  ;;  %v5025_v62 = vpack.c.bf16 %v621_v54, %v620_v53  ;;  %v4357_v51 = vld [vmem:[#allocation6 + $0xa8] ss:$16 sps:$4 sm:$0xff]   ;;  %v4362_v55 = vld [vmem:[#allocation6 + $0xc4] ss:$16 sps:$4 sm:$0xff]  }
 0x150   : > { %v4427_v3 = vpop.eup %4426  ;;  %v564_v4 = vsub.f32 %v548_v56, %v556_v48  ;;  %v549_v6 = vmul.f32 0.0078125, %v541_v5  ;;  %v4365_v56 = vld [vmem:[#allocation6 + $0xcc] ss:$16 sps:$4 sm:$0xff]   ;;  %v4366_v5 = vld [vmem:[#allocation6 + $0xe0] ss:$16 sps:$4 sm:$0xff]  }
 0x151   : > { %v607_v8 = vmul.f32 %v5000_v32, %v592_v60  ;;  %v593_v11 = vmul.f32 %v4427_v3, %v569_v59  ;;  %879 = vmatmul.mubr.bf16.vlgmr.msra.gmra.mrb[0].mxu0 %v5025_v62  ;;  %952 = vmatmul.mubr.bf16.vlgmr.msra.gmra.mrb[0].mxu1 %v5025_v62  ;;  %v4363_v59 = vld [vmem:[#allocation6 + $0xc8] ss:$16 sps:$4 sm:$0xff]   ;;  %v4372_v3 = vld [vmem:[#allocation7] ss:$16 sps:$4 sm:$0xff]  }
 0x152   : > { %v580_v7 = vadd.f32 1e-05, %v564_v4  ;;  %v565_v9 = vsub.f32 %v549_v6, %v557_v61  ;;  %1503 = vmatpush1.bf16.msra.mxu0 %v4324_v57  ;;  %1576 = vmatpush1.bf16.msra.mxu1 %v4327_v58  ;;  %v4360_v58 = vld [vmem:[#allocation6 + $0xc0] ss:$16 sps:$4 sm:$0xff]   ;;  %v4368_v61 = vld [vmem:[#allocation6 + $0xe4] ss:$16 sps:$4 sm:$0xff]  }
 0x153   : > { %v608_v15 = vmul.f32 %v5000_v32, %v593_v11  ;;  %1504 = vmatprep.subr.bf16.mxu0 %v4332_v63  ;;  %1577 = vmatprep.subr.bf16.mxu1 %v4335_v2  ;;  %v622_v23 = vadd.f32 %v5011_v45, %v607_v8  ;;  %v4369_v63 = vld [vmem:[#allocation6 + $0xe8] ss:$16 sps:$4 sm:$0xff]   ;;  %v4377_v2 = vld [vmem:[#allocation7 + $0xc] ss:$16 sps:$4 sm:$0xff]   ;;  %v4380_v6 = vld [vmem:[#allocation7 + $0x24] ss:$16 sps:$4 sm:$0xff]  }
 0x154   : > { %4432 = vrsqrt.f32 %v580_v7  ;;  %v581_v19 = vadd.f32 1e-05, %v565_v9  ;;  %888 = vmatprep.mubr.bf16.mxu0 %v4634_v50  ;;  %961 = vmatprep.mubr.bf16.mxu1 %v4634_v50  ;;  %v4375_v4 = vld [vmem:[#allocation7 + $0x8] ss:$16 sps:$4 sm:$0xff]   ;;  %v4383_v8 = vld [vmem:[#allocation7 + $0x2c] ss:$16 sps:$4 sm:$0xff]  }
 0x155   : > { %v623_v24 = vadd.f32 %v5011_v45, %v608_v15  ;;  %v4378_v11 = vld [vmem:[#allocation7 + $0x20] ss:$16 sps:$4 sm:$0xff]   ;;  %v4381_v7 = vld [vmem:[#allocation7 + $0x28] ss:$16 sps:$4 sm:$0xff]   ;;  %v4386_v9 = vld [vmem:[#allocation7 + $0x44] ss:$16 sps:$4 sm:$0xff]  }
 0x156   : > { %v4429_v26 = vpop.eup %4428  ;;  %4434 = vrsqrt.f32 %v581_v19  ;;  %1505 = vmatpush1.bf16.msra.mxu0 %v4330_v12  ;;  %1578 = vmatpush1.bf16.msra.mxu1 %v4333_v14  ;;  %v4389_v12 = vld [vmem:[#allocation7 + $0x4c] ss:$16 sps:$4 sm:$0xff]   ;;  %v4384_v14 = vld [vmem:[#allocation7 + $0x40] ss:$16 sps:$4 sm:$0xff]   ;;  %v4387_v15 = vld [vmem:[#allocation7 + $0x48] ss:$16 sps:$4 sm:$0xff]  }
 0x157   : > { %v594_v27 = vmul.f32 %v4429_v26, %v570_v16  ;;  %v5039_v28 = vpack.c.bf16 %v623_v24, %v622_v23  ;;  %1506 = vmatprep.subr.bf16.mxu0 %v4338_v17  ;;  %1579 = vmatprep.subr.bf16.mxu1 %v4341_v18  ;;  %v4392_v16 = vld [vmem:[#allocation7 + $0x64] ss:$16 sps:$4 sm:$0xff]   ;;  %v4395_v17 = vld [vmem:[#allocation7 + $0x6c] ss:$16 sps:$4 sm:$0xff]   ;;  %v4390_v18 = vld [vmem:[#allocation7 + $0x60] ss:$16 sps:$4 sm:$0xff]  }
 0x158   : > { %v4431_v33 = vpop.eup %4430  ;;  %v4393_v19 = vld [vmem:[#allocation7 + $0x68] ss:$16 sps:$4 sm:$0xff]   ;;  %v4401_v23 = vld [vmem:[#allocation7 + $0x8c] ss:$16 sps:$4 sm:$0xff]   ;;  %v4396_v24 = vld [vmem:[#allocation7 + $0x80] ss:$16 sps:$4 sm:$0xff]  }
 0x159   : > { %v609_v13 = vmul.f32 %v5000_v32, %v594_v27  ;;  %v595_v30 = vmul.f32 %v4431_v33, %v571_v21  ;;  %889 = vmatmul.mubr.bf16.gmra.mrb[4].mxu0 %v5039_v28  ;;  %962 = vmatmul.mubr.bf16.gmra.mrb[4].mxu1 %v5039_v28  ;;  %v4398_v21 = vld [vmem:[#allocation7 + $0x84] ss:$16 sps:$4 sm:$0xff]   ;;  %v4399_v26 = vld [vmem:[#allocation7 + $0x88] ss:$16 sps:$4 sm:$0xff]   ;;  %v4402_v27 = vld [vmem:[#allocation7 + $0xa0] ss:$16 sps:$4 sm:$0xff]  }
 0x15a   : > { %1507 = vmatpush1.bf16.msra.mxu0 %v4336_v10  ;;  %1580 = vmatpush1.bf16.msra.mxu1 %v4339_v22  ;;  %v4404_v10 = vld [vmem:[#allocation7 + $0xa4] ss:$16 sps:$4 sm:$0xff]   ;;  %v4407_v22 = vld [vmem:[#allocation7 + $0xac] ss:$16 sps:$4 sm:$0xff]  }
 0x15b   : > { %v610_v35 = vmul.f32 %v5000_v32, %v595_v30  ;;  %1508 = vmatprep.subr.bf16.mxu0 %v4344_v29  ;;  %1581 = vmatprep.subr.bf16.mxu1 %v4347_v31  ;;  %v624_v37 = vadd.f32 %v5011_v45, %v609_v13  ;;  %v4405_v29 = vld [vmem:[#allocation7 + $0xa8] ss:$16 sps:$4 sm:$0xff]   ;;  %v4410_v31 = vld [vmem:[#allocation7 + $0xc4] ss:$16 sps:$4 sm:$0xff]   ;;  %v4413_v33 = vld [vmem:[#allocation7 + $0xcc] ss:$16 sps:$4 sm:$0xff]  }
 0x15c   : > { %898 = vmatprep.mubr.bf16.mxu0 %v4634_v50  ;;  %971 = vmatprep.mubr.bf16.mxu1 %v4634_v50  ;;  %v4408_v13 = vld [vmem:[#allocation7 + $0xc0] ss:$16 sps:$4 sm:$0xff]   ;;  %v4411_v30 = vld [vmem:[#allocation7 + $0xc8] ss:$16 sps:$4 sm:$0xff]  }
 0x15d   : > { %v625_v41 = vadd.f32 %v5011_v45, %v610_v35  ;;  %v4414_v35 = vld [vmem:[#allocation7 + $0xe0] ss:$16 sps:$4 sm:$0xff]  }
 0x15e   : > { %v4433_v42 = vpop.eup %4432  ;;  %1509 = vmatpush1.bf16.msra.mxu0 %v4342_v0  ;;  %1582 = vmatpush1.bf16.msra.mxu1 %v4345_v34  ;;  %v4416_v0 = vld [vmem:[#allocation7 + $0xe4] ss:$16 sps:$4 sm:$0xff]   ;;  %v4419_v34 = vld [vmem:[#allocation7 + $0xec] ss:$16 sps:$4 sm:$0xff]  }
 0x15f   : > { %v596_v44 = vmul.f32 %v4433_v42, %v572_v36  ;;  %v5053_v1 = vpack.c.bf16 %v625_v41, %v624_v37  ;;  %1510 = vmatprep.subr.bf16.mxu0 %v4350_v38  ;;  %1583 = vmatprep.subr.bf16.mxu1 %v4353_v39  ;;  %v4417_v36 = vld [vmem:[#allocation7 + $0xe8] ss:$16 sps:$4 sm:$0xff]   ;;  %v664_v39 = vld [vmem:[%s6323_s4] sm:$0xf] }
 0x160   : > { %v4435_v48 = vpop.eup %4434 }
 0x161   : > { %v611_v49 = vmul.f32 %v5000_v32, %v596_v44  ;;  %v597_v52 = vmul.f32 %v4435_v48, %v573_v40  ;;  %899 = vmatmul.mubr.bf16.gmra.mrb[8].mxu0 %v5053_v1  ;;  %972 = vmatmul.mubr.bf16.gmra.mrb[8].mxu1 %v5053_v1 }
 0x162   : > { %1511 = vmatpush1.bf16.msra.mxu0 %v4348_v43  ;;  %1584 = vmatpush1.bf16.msra.mxu1 %v4351_v20 }
 0x163   : > { %v626_v53 = vadd.f32 %v5011_v45, %v611_v49  ;;  %v612_v54 = vmul.f32 %v5000_v32, %v597_v52  ;;  %1512 = vmatprep.subr.bf16.mxu0 %v4356_v46  ;;  %1585 = vmatprep.subr.bf16.mxu1 %v4359_v47  ;;  %v4371_v32 = vld [vmem:[#allocation6 + $0xec] ss:$16 sps:$4 sm:$0xff]  }
 0x164   : > { %908 = vmatprep.mubr.bf16.mxu0 %v4634_v50  ;;  %981 = vmatprep.mubr.bf16.mxu1 %v4634_v50 }
 0x165   : > { %v627_v57 = vadd.f32 %v5011_v45, %v612_v54  ;;  %v4374_v45 = vld [vmem:[#allocation7 + $0x4] ss:$16 sps:$4 sm:$0xff]  }
 0x166   : > { %1513 = vmatpush1.bf16.msra.mxu0 %v4354_v25  ;;  %1586 = vmatpush1.bf16.msra.mxu1 %v4357_v51 }
 0x167   : > { %v5063_v60 = vpack.c.bf16 %v627_v57, %v626_v53  ;;  %1514 = vmatprep.subr.bf16.mxu0 %v4362_v55  ;;  %1587 = vmatprep.subr.bf16.mxu1 %v4365_v56 }
 0x169   : > { %909 = vmatmul.mubr.bf16.gmra.mrb[12].mxu0 %v5063_v60  ;;  %982 = vmatmul.mubr.bf16.gmra.mrb[12].mxu1 %v5063_v60 }
 0x16a   : > { %1515 = vmatpush1.bf16.msra.mxu0 %v4360_v58  ;;  %1588 = vmatpush1.bf16.msra.mxu1 %v4363_v59 }
 0x16b   : > { %1516 = vmatprep.subr.bf16.mxu0 %v4368_v61  ;;  %1589 = vmatprep.subr.bf16.mxu1 %v4371_v32 }
 0x16c   : > { %1534 = vmatprep.mubr.bf16.mxu0 %v4634_v50  ;;  %1607 = vmatprep.mubr.bf16.mxu1 %v4634_v50 }
 0x16e   : > { %1517 = vmatpush1.bf16.msra.mxu0 %v4366_v5  ;;  %1590 = vmatpush1.bf16.msra.mxu1 %v4369_v63 }
 0x16f   : > { %2157 = vmatprep.subr.bf16.mxu0 %v4374_v45  ;;  %2230 = vmatprep.subr.bf16.mxu1 %v4377_v2 }
 0x171   : > { %1535 = vmatmul.mubr.bf16.vlgmr.msra.gmra.mrb[16].mxu0 %v5025_v62  ;;  %1608 = vmatmul.mubr.bf16.vlgmr.msra.gmra.mrb[16].mxu1 %v5025_v62 }
 0x172   : > { %2158 = vmatpush1.bf16.msra.mxu0 %v4372_v3  ;;  %2231 = vmatpush1.bf16.msra.mxu1 %v4375_v4 }
 0x173   : > { %2159 = vmatprep.subr.bf16.mxu0 %v4380_v6  ;;  %2232 = vmatprep.subr.bf16.mxu1 %v4383_v8 }
 0x174   : > { %1544 = vmatprep.mubr.bf16.mxu0 %v4634_v50  ;;  %1617 = vmatprep.mubr.bf16.mxu1 %v4634_v50 }
 0x176   : > { %2160 = vmatpush1.bf16.msra.mxu0 %v4378_v11  ;;  %2233 = vmatpush1.bf16.msra.mxu1 %v4381_v7 }
 0x177   : > { %2161 = vmatprep.subr.bf16.mxu0 %v4386_v9  ;;  %2234 = vmatprep.subr.bf16.mxu1 %v4389_v12 }
 0x179   : > { %1545 = vmatmul.mubr.bf16.gmra.mrb[20].mxu0 %v5039_v28  ;;  %1618 = vmatmul.mubr.bf16.gmra.mrb[20].mxu1 %v5039_v28 }
 0x17a   : > { %2162 = vmatpush1.bf16.msra.mxu0 %v4384_v14  ;;  %2235 = vmatpush1.bf16.msra.mxu1 %v4387_v15 }
 0x17b   : > { %2163 = vmatprep.subr.bf16.mxu0 %v4392_v16  ;;  %2236 = vmatprep.subr.bf16.mxu1 %v4395_v17 }
 0x17c   : > { %1554 = vmatprep.mubr.bf16.mxu0 %v4634_v50  ;;  %1627 = vmatprep.mubr.bf16.mxu1 %v4634_v50 }
 0x17e   : > { %2164 = vmatpush1.bf16.msra.mxu0 %v4390_v18  ;;  %2237 = vmatpush1.bf16.msra.mxu1 %v4393_v19 }
 0x17f   : > { %2165 = vmatprep.subr.bf16.mxu0 %v4398_v21  ;;  %2238 = vmatprep.subr.bf16.mxu1 %v4401_v23 }
 0x181   : > { %1555 = vmatmul.mubr.bf16.gmra.mrb[24].mxu0 %v5053_v1  ;;  %1628 = vmatmul.mubr.bf16.gmra.mrb[24].mxu1 %v5053_v1 }
 0x182   : > { %2166 = vmatpush1.bf16.msra.mxu0 %v4396_v24  ;;  %2239 = vmatpush1.bf16.msra.mxu1 %v4399_v26 }
 0x183   : > { %2167 = vmatprep.subr.bf16.mxu0 %v4404_v10  ;;  %2240 = vmatprep.subr.bf16.mxu1 %v4407_v22 }
 0x184   : > { %1564 = vmatprep.mubr.bf16.mxu0 %v4634_v50  ;;  %1637 = vmatprep.mubr.bf16.mxu1 %v4634_v50 }
 0x186   : > { %2168 = vmatpush1.bf16.msra.mxu0 %v4402_v27  ;;  %2241 = vmatpush1.bf16.msra.mxu1 %v4405_v29 }
 0x187   : > { %2169 = vmatprep.subr.bf16.mxu0 %v4410_v31  ;;  %2242 = vmatprep.subr.bf16.mxu1 %v4413_v33 }
 0x189   : > { %1565 = vmatmul.mubr.bf16.gmra.mrb[28].mxu0 %v5063_v60  ;;  %1638 = vmatmul.mubr.bf16.gmra.mrb[28].mxu1 %v5063_v60 }
 0x18a   : > { %2170 = vmatpush1.bf16.msra.mxu0 %v4408_v13  ;;  %2243 = vmatpush1.bf16.msra.mxu1 %v4411_v30 }
 0x18b   : > { %2171 = vmatprep.subr.bf16.mxu0 %v4416_v0  ;;  %2244 = vmatprep.subr.bf16.mxu1 %v4419_v34 }
 0x18c   : > { %2189 = vmatprep.mubr.bf16.mxu0 %v4634_v50  ;;  %2262 = vmatprep.mubr.bf16.mxu1 %v4634_v50 }
 0x18e   : > { %2172 = vmatpush1.bf16.msra.mxu0 %v4414_v35  ;;  %2245 = vmatpush1.bf16.msra.mxu1 %v4417_v36 }
 0x191   : > { %2190 = vmatmul.mubr.bf16.vlgmr.msra.gmra.mrb[32].mxu0 %v5025_v62  ;;  %2263 = vmatmul.mubr.bf16.vlgmr.msra.gmra.mrb[32].mxu1 %v5025_v62  ;;  %v666_v62 = vlaneseq }
 0x192   : > { %2199 = vmatprep.mubr.bf16.mxu0 %v4634_v50  ;;  %2272 = vmatprep.mubr.bf16.mxu1 %v4634_v50 }
 0x193   : > { %v667_v37 = vshrl.u32 %v666_v62, 7 }
 0x195   : > { %v5101_v38 = vsub.s32 2, %v667_v37  ;;  %v5106_v40 = vsub.s32 1, %v667_v37  ;;  %v5108_v41 = vsub.s32 3, %v667_v37 }
 0x197   : > { %v5114_v42 = vrot.slane %v664_v39, %v5101_v38  ;;  %v5117_v43 = vrot.slane %v664_v39, %v5106_v40  ;;  %v5120_v20 = vrot.slane %v664_v39, %v5108_v41 }
 0x199   : > { %2200 = vmatmul.mubr.bf16.gmra.mrb[36].mxu0 %v5039_v28  ;;  %2273 = vmatmul.mubr.bf16.gmra.mrb[36].mxu1 %v5039_v28  ;;  %v5099_v28 = vsub.s32 0, %v667_v37 }
 0x19a   : > { %2209 = vmatprep.mubr.bf16.mxu0 %v4634_v50  ;;  %2282 = vmatprep.mubr.bf16.mxu1 %v4634_v50 }
 0x1a1   : > { %2210 = vmatmul.mubr.bf16.gmra.mrb[40].mxu0 %v5053_v1  ;;  %2283 = vmatmul.mubr.bf16.gmra.mrb[40].mxu1 %v5053_v1 }
 0x1a2   : > { %2219 = vmatprep.mubr.bf16.mxu0 %v4634_v50  ;;  %2292 = vmatprep.mubr.bf16.mxu1 %v4634_v50  ;;  %v5111_v50 = vrot.slane %v664_v39, %v5099_v28 }
 0x1a9   : > { %2220 = vmatmul.mubr.bf16.gmra.mrb[44].mxu0 %v5063_v60  ;;  %2293 = vmatmul.mubr.bf16.gmra.mrb[44].mxu1 %v5063_v60 }
 0x224   : > { %v880_v44 = vpop.f32.mrb[0].mxu0  ;;  %v953_v1 = vpop.f32.mrb[0].mxu1 }
 0x225   : > { %v881_v46 = vadd.f32 %v880_v44, %v5111_v50  ;;  %v954_v47 = vadd.f32 %v953_v1, %v5114_v42  ;;  %v882_v48 = vpop.f32.mrb[1].mxu0  ;;  %v955_v49 = vpop.f32.mrb[1].mxu1 }
 0x226   : > { %v883_v52 = vadd.f32 %v882_v48, %v5117_v43  ;;  %v956_v25 = vadd.f32 %v955_v49, %v5120_v20  ;;  %v884_v51 = vpop.f32.mrb[2].mxu0  ;;  %v957_v53 = vpop.f32.mrb[2].mxu1 }
 0x227   : > { %v4072_v54 = vpack.c.bf16 %v881_v46, %v881_v46  ;;  %v4088_v55 = vpack.c.bf16 %v954_v47, %v954_v47  ;;  %v885_v56 = vadd.f32 %v884_v51, %v5111_v50  ;;  %v958_v57 = vadd.f32 %v957_v53, %v5114_v42  ;;  %v886_v58 = vpop.f32.mrb[3].mxu0  ;;  %v959_v59 = vpop.f32.mrb[3].mxu1 }
 0x228   : > { %v4080_v60 = vpack.c.bf16 %v883_v52, %v883_v52  ;;  %v4096_v61 = vpack.c.bf16 %v956_v25, %v956_v25  ;;  %v887_v32 = vadd.f32 %v886_v58, %v5117_v43  ;;  %v960_v5 = vadd.f32 %v959_v59, %v5120_v20 }
 0x229   : > { %1037 = vst.msk [vmem:[%s5134_s17] sm:$0xf] %vm1036_vm0, %v4072_v54  ;;  %3778 = vst.msk [vmem:[%s5134_s17 + $0x80] sm:$0xf] %vm1036_vm0, %v4088_v55  ;;  %v4073_v63 = vpack.c.bf16 %v885_v56, %v885_v56  ;;  %v4089_v45 = vpack.c.bf16 %v958_v57, %v958_v57  ;;  %1045 = vrot.lane.b32.xlu0 %v4072_v54, %s4635_s25 }
 0x22a   : > { %3754 = vst.msk [vmem:[%s5134_s17 + $0x40] sm:$0xf] %vm1036_vm0, %v4080_v60  ;;  %3802 = vst.msk [vmem:[%s5134_s17 + $0xc0] sm:$0xf] %vm1036_vm0, %v4096_v61  ;;  %v4081_v2 = vpack.c.bf16 %v887_v32, %v887_v32  ;;  %v4097_v3 = vpack.c.bf16 %v960_v5, %v960_v5 }
 0x22b   : > { %1038 = vst.msk [vmem:[%s5134_s17 + $0x4] sm:$0xf] %vm1036_vm0, %v4073_v63  ;;  %3779 = vst.msk [vmem:[%s5134_s17 + $0x84] sm:$0xf] %vm1036_vm0, %v4089_v45  ;;  %1047 = vrot.lane.b32.xlu1 %v4073_v63, %s4635_s25 }
 0x22c   : > { %3755 = vst.msk [vmem:[%s5134_s17 + $0x44] sm:$0xf] %vm1036_vm0, %v4081_v2  ;;  %3803 = vst.msk [vmem:[%s5134_s17 + $0xc4] sm:$0xf] %vm1036_vm0, %v4097_v3  ;;  %v890_v4 = vpop.f32.mrb[4].mxu0  ;;  %v963_v6 = vpop.f32.mrb[4].mxu1 }
 0x22d   : > { %v891_v8 = vadd.f32 %v890_v4, %v5111_v50  ;;  %v964_v11 = vadd.f32 %v963_v6, %v5114_v42  ;;  %1185 = vrot.lane.b32.xlu0 %v4088_v55, %s4635_s25  ;;  %v892_v7 = vpop.f32.mrb[5].mxu0  ;;  %v965_v9 = vpop.f32.mrb[5].mxu1 }
 0x22e   : > { %v893_v12 = vadd.f32 %v892_v7, %v5117_v43  ;;  %v966_v14 = vadd.f32 %v965_v9, %v5120_v20  ;;  %v894_v15 = vpop.f32.mrb[6].mxu0  ;;  %v967_v16 = vpop.f32.mrb[6].mxu1 }
 0x22f   : > { %v4074_v17 = vpack.c.bf16 %v891_v8, %v891_v8  ;;  %v4090_v18 = vpack.c.bf16 %v964_v11, %v964_v11  ;;  %v895_v19 = vadd.f32 %v894_v15, %v5111_v50  ;;  %v968_v21 = vadd.f32 %v967_v16, %v5114_v42  ;;  %1187 = vrot.lane.b32.xlu1 %v4089_v45, %s4635_s25  ;;  %v896_v23 = vpop.f32.mrb[7].mxu0  ;;  %v969_v24 = vpop.f32.mrb[7].mxu1  ;;  %v1320_v8 = vld [vmem:[%s6363_s16] sm:$0xf] }
 0x230   : > { %v4082_v26 = vpack.c.bf16 %v893_v12, %v893_v12  ;;  %v5162_v10 = vpack.c.bf16 %v966_v14, %v966_v14  ;;  %v897_v22 = vadd.f32 %v896_v23, %v5117_v43  ;;  %v970_v27 = vadd.f32 %v969_v24, %v5120_v20 }
 0x231   : > { %1039 = vst.msk [vmem:[%s5134_s17 + $0x8] sm:$0xf] %vm1036_vm0, %v4074_v17  ;;  %3780 = vst.msk [vmem:[%s5134_s17 + $0x88] sm:$0xf] %vm1036_vm0, %v4090_v18  ;;  %v4075_v29 = vpack.c.bf16 %v895_v19, %v895_v19  ;;  %v5170_v31 = vpack.c.bf16 %v968_v21, %v968_v21  ;;  %1115 = vrot.lane.b32.xlu0 %v4080_v60, %s4635_s25  ;;  %v5296_v24 = vrot.slane %v1320_v8, %v5106_v40 }
 0x232   : > { %3756 = vst.msk [vmem:[%s5134_s17 + $0x48] sm:$0xf] %vm1036_vm0, %v4082_v26  ;;  %3804 = vst.msk [vmem:[%s5134_s17 + $0xc8] sm:$0xf] %vm1036_vm0, %v5162_v10  ;;  %v5178_v33 = vpack.c.bf16 %v897_v22, %v897_v22  ;;  %v5180_v13 = vpack.c.bf16 %v970_v27, %v970_v27 }
 0x233   : > { %1040 = vst.msk [vmem:[%s5134_s17 + $0xc] sm:$0xf] %vm1036_vm0, %v4075_v29  ;;  %3781 = vst.msk [vmem:[%s5134_s17 + $0x8c] sm:$0xf] %vm1036_vm0, %v5170_v31  ;;  %1117 = vrot.lane.b32.xlu1 %v4081_v2, %s4635_s25 }
 0x234   : > { %3757 = vst.msk [vmem:[%s5134_s17 + $0x4c] sm:$0xf] %vm1036_vm0, %v5178_v33  ;;  %3805 = vst.msk [vmem:[%s5134_s17 + $0xcc] sm:$0xf] %vm1036_vm0, %v5180_v13  ;;  %v900_v30 = vpop.f32.mrb[8].mxu0  ;;  %v973_v0 = vpop.f32.mrb[8].mxu1 }
 0x235   : > { %v901_v34 = vadd.f32 %v900_v30, %v5111_v50  ;;  %v974_v35 = vadd.f32 %v973_v0, %v5114_v42  ;;  %1255 = vrot.lane.b32.xlu0 %v4096_v61, %s4635_s25  ;;  %v902_v36 = vpop.f32.mrb[9].mxu0  ;;  %v975_v62 = vpop.f32.mrb[9].mxu1 }
 0x236   : > { %v903_v37 = vadd.f32 %v902_v36, %v5117_v43  ;;  %v976_v39 = vadd.f32 %v975_v62, %v5120_v20  ;;  %v904_v44 = vpop.f32.mrb[10].mxu0  ;;  %v977_v1 = vpop.f32.mrb[10].mxu1 }
 0x237   : > { %v5199_v46 = vpack.c.bf16 %v901_v34, %v901_v34  ;;  %v5201_v47 = vpack.c.bf16 %v974_v35, %v974_v35  ;;  %v905_v48 = vadd.f32 %v904_v44, %v5111_v50  ;;  %v978_v49 = vadd.f32 %v977_v1, %v5114_v42  ;;  %1257 = vrot.lane.b32.xlu1 %v4097_v3, %s4635_s25  ;;  %v906_v52 = vpop.f32.mrb[11].mxu0  ;;  %v979_v25 = vpop.f32.mrb[11].mxu1 }
 0x238   : > { %v5206_v51 = vpack.c.bf16 %v903_v37, %v903_v37  ;;  %v5208_v53 = vpack.c.bf16 %v976_v39, %v976_v39  ;;  %v907_v54 = vadd.f32 %v906_v52, %v5117_v43  ;;  %v980_v55 = vadd.f32 %v979_v25, %v5120_v20 }
 0x239   : > { %1041 = vst.msk [vmem:[%s5134_s17 + $0x10] sm:$0xf] %vm1036_vm0, %v5199_v46  ;;  %3782 = vst.msk [vmem:[%s5134_s17 + $0x90] sm:$0xf] %vm1036_vm0, %v5201_v47  ;;  %v5218_v56 = vpack.c.bf16 %v905_v48, %v905_v48  ;;  %v5220_v57 = vpack.c.bf16 %v978_v49, %v978_v49  ;;  %1189 = vrot.lane.b32.xlu0 %v4090_v18, %s4635_s25 }
 0x23a   : > { %3758 = vst.msk [vmem:[%s5134_s17 + $0x50] sm:$0xf] %vm1036_vm0, %v5206_v51  ;;  %3806 = vst.msk [vmem:[%s5134_s17 + $0xd0] sm:$0xf] %vm1036_vm0, %v5208_v53  ;;  %v5229_v58 = vpack.c.bf16 %v907_v54, %v907_v54  ;;  %v5231_v59 = vpack.c.bf16 %v980_v55, %v980_v55 }
 0x23b   : > { %1042 = vst.msk [vmem:[%s5134_s17 + $0x14] sm:$0xf] %vm1036_vm0, %v5218_v56  ;;  %3783 = vst.msk [vmem:[%s5134_s17 + $0x94] sm:$0xf] %vm1036_vm0, %v5220_v57  ;;  %1049 = vrot.lane.b32.xlu1 %v4074_v17, %s4635_s25 }
 0x23c   : > { %3759 = vst.msk [vmem:[%s5134_s17 + $0x54] sm:$0xf] %vm1036_vm0, %v5229_v58  ;;  %3807 = vst.msk [vmem:[%s5134_s17 + $0xd4] sm:$0xf] %vm1036_vm0, %v5231_v59  ;;  %v910_v60 = vpop.f32.mrb[12].mxu0  ;;  %v983_v61 = vpop.f32.mrb[12].mxu1 }
 0x23d   : > { %1119 = vrot.lane.b32.xlu0 %v4082_v26, %s4635_s25  ;;  %v911_v32 = vadd.f32 %v910_v60, %v5111_v50  ;;  %v984_v5 = vadd.f32 %v983_v61, %v5114_v42  ;;  %v912_v63 = vpop.f32.mrb[13].mxu0  ;;  %v985_v45 = vpop.f32.mrb[13].mxu1  ;;  %v5299_v26 = vrot.slane %v1320_v8, %v5108_v41 }
 0x23e   : > { %v913_v2 = vadd.f32 %v912_v63, %v5117_v43  ;;  %v986_v3 = vadd.f32 %v985_v45, %v5120_v20  ;;  %v914_v4 = vpop.f32.mrb[14].mxu0  ;;  %v987_v6 = vpop.f32.mrb[14].mxu1 }
 0x23f   : > { %1051 = vrot.lane.b32.xlu1 %v4075_v29, %s4635_s25  ;;  %v5255_v11 = vpack.c.bf16 %v911_v32, %v911_v32  ;;  %v5257_v7 = vpack.c.bf16 %v984_v5, %v984_v5  ;;  %v915_v9 = vadd.f32 %v914_v4, %v5111_v50  ;;  %v988_v12 = vadd.f32 %v987_v6, %v5114_v42  ;;  %v916_v14 = vpop.f32.mrb[15].mxu0  ;;  %v989_v15 = vpop.f32.mrb[15].mxu1 }
 0x240   : > { %v5261_v16 = vpack.c.bf16 %v913_v2, %v913_v2  ;;  %v5263_v17 = vpack.c.bf16 %v986_v3, %v986_v3  ;;  %v917_v18 = vadd.f32 %v916_v14, %v5117_v43  ;;  %v990_v19 = vadd.f32 %v989_v15, %v5120_v20 }
 0x241   : > { %1043 = vst.msk [vmem:[%s5134_s17 + $0x18] sm:$0xf] %vm1036_vm0, %v5255_v11  ;;  %3784 = vst.msk [vmem:[%s5134_s17 + $0x98] sm:$0xf] %vm1036_vm0, %v5257_v7  ;;  %1259 = vrot.lane.b32.xlu0 %v5162_v10, %s4635_s25  ;;  %v5275_v50 = vpack.c.bf16 %v915_v9, %v915_v9  ;;  %v5277_v42 = vpack.c.bf16 %v988_v12, %v988_v12  ;;  %v5280_v43 = vrot.slane %v1320_v8, %v5099_v28 }
 0x242   : > { %v5283_v20 = vrot.slane %v1320_v8, %v5101_v38  ;;  %3760 = vst.msk [vmem:[%s5134_s17 + $0x58] sm:$0xf] %vm1036_vm0, %v5261_v16  ;;  %3808 = vst.msk [vmem:[%s5134_s17 + $0xd8] sm:$0xf] %vm1036_vm0, %v5263_v17  ;;  %v5291_v21 = vpack.c.bf16 %v917_v18, %v917_v18  ;;  %v5293_v23 = vpack.c.bf16 %v990_v19, %v990_v19 }
 0x243   : > { %1044 = vst.msk [vmem:[%s5134_s17 + $0x1c] sm:$0xf] %vm1036_vm0, %v5275_v50  ;;  %3785 = vst.msk [vmem:[%s5134_s17 + $0x9c] sm:$0xf] %vm1036_vm0, %v5277_v42  ;;  %1191 = vrot.lane.b32.xlu1 %v5170_v31, %s4635_s25 }
 0x244   : > { %3761 = vst.msk [vmem:[%s5134_s17 + $0x5c] sm:$0xf] %vm1036_vm0, %v5291_v21  ;;  %3809 = vst.msk [vmem:[%s5134_s17 + $0xdc] sm:$0xf] %vm1036_vm0, %v5293_v23  ;;  %v1536_v10 = vpop.f32.mrb[16].mxu0  ;;  %v1609_v22 = vpop.f32.mrb[16].mxu1 }
 0x245   : > { %v1537_v27 = vadd.f32 %v1536_v10, %v5280_v43  ;;  %v1610_v29 = vadd.f32 %v1609_v22, %v5283_v20  ;;  %1053 = vrot.lane.b32.xlu0 %v5199_v46, %s4635_s25  ;;  %v1538_v30 = vpop.f32.mrb[17].mxu0  ;;  %v1611_v0 = vpop.f32.mrb[17].mxu1 }
 0x246   : > { %v1539_v31 = vadd.f32 %v1538_v30, %v5296_v24  ;;  %v1612_v34 = vadd.f32 %v1611_v0, %v5299_v26  ;;  %v1540_v35 = vpop.f32.mrb[18].mxu0  ;;  %v1613_v36 = vpop.f32.mrb[18].mxu1 }
 0x247   : > { %v5321_v62 = vpack.c.bf16 %v1537_v27, %v1537_v27  ;;  %v5323_v37 = vpack.c.bf16 %v1610_v29, %v1610_v29  ;;  %v1541_v39 = vadd.f32 %v1540_v35, %v5280_v43  ;;  %v1614_v44 = vadd.f32 %v1613_v36, %v5283_v20  ;;  %1121 = vrot.lane.b32.xlu1 %v5178_v33, %s4635_s25  ;;  %v1542_v1 = vpop.f32.mrb[19].mxu0  ;;  %v1615_v46 = vpop.f32.mrb[19].mxu1 }
 0x248   : > { %v5329_v48 = vpack.c.bf16 %v1539_v31, %v1539_v31  ;;  %v5331_v49 = vpack.c.bf16 %v1612_v34, %v1612_v34  ;;  %v1543_v52 = vadd.f32 %v1542_v1, %v5296_v24  ;;  %v1616_v25 = vadd.f32 %v1615_v46, %v5299_v26 }
 0x249   : > { %1692 = vst.msk [vmem:[%s5336_s12] sm:$0xf] %vm1036_vm0, %v5321_v62  ;;  %3898 = vst.msk [vmem:[%s5336_s12 + $0x80] sm:$0xf] %vm1036_vm0, %v5323_v37  ;;  %v5344_v33 = vpack.c.bf16 %v1541_v39, %v1541_v39  ;;  %v5346_v54 = vpack.c.bf16 %v1614_v44, %v1614_v44  ;;  %1193 = vrot.lane.b32.xlu0 %v5201_v47, %s4635_s25 }
 0x24a   : > { %3874 = vst.msk [vmem:[%s5336_s12 + $0x40] sm:$0xf] %vm1036_vm0, %v5329_v48  ;;  %3922 = vst.msk [vmem:[%s5336_s12 + $0xc0] sm:$0xf] %vm1036_vm0, %v5331_v49  ;;  %v5356_v55 = vpack.c.bf16 %v1543_v52, %v1543_v52  ;;  %v5358_v60 = vpack.c.bf16 %v1616_v25, %v1616_v25 }
 0x24b   : > { %1693 = vst.msk [vmem:[%s5336_s12 + $0x4] sm:$0xf] %vm1036_vm0, %v5344_v33  ;;  %3899 = vst.msk [vmem:[%s5336_s12 + $0x84] sm:$0xf] %vm1036_vm0, %v5346_v54  ;;  %1261 = vrot.lane.b32.xlu1 %v5180_v13, %s4635_s25 }
 0x24c   : > { %3875 = vst.msk [vmem:[%s5336_s12 + $0x44] sm:$0xf] %vm1036_vm0, %v5356_v55  ;;  %3923 = vst.msk [vmem:[%s5336_s12 + $0xc4] sm:$0xf] %vm1036_vm0, %v5358_v60  ;;  %v1546_v47 = vpop.f32.mrb[20].mxu0  ;;  %v1619_v61 = vpop.f32.mrb[20].mxu1 }
 0x24d   : > { %v1547_v32 = vadd.f32 %v1546_v47, %v5280_v43  ;;  %v1620_v5 = vadd.f32 %v1619_v61, %v5283_v20  ;;  %1123 = vrot.lane.b32.xlu0 %v5206_v51, %s4635_s25  ;;  %v1548_v63 = vpop.f32.mrb[21].mxu0  ;;  %v1621_v45 = vpop.f32.mrb[21].mxu1 }
 0x24e   : > { %v1549_v13 = vadd.f32 %v1548_v63, %v5296_v24  ;;  %v1622_v2 = vadd.f32 %v1621_v45, %v5299_v26  ;;  %v1550_v3 = vpop.f32.mrb[22].mxu0  ;;  %v1623_v4 = vpop.f32.mrb[22].mxu1 }
 0x24f   : > { %v5380_v6 = vpack.c.bf16 %v1547_v32, %v1547_v32  ;;  %v5382_v8 = vpack.c.bf16 %v1620_v5, %v1620_v5  ;;  %v1551_v9 = vadd.f32 %v1550_v3, %v5280_v43  ;;  %v1624_v51 = vadd.f32 %v1623_v4, %v5283_v20  ;;  %1055 = vrot.lane.b32.xlu1 %v5218_v56, %s4635_s25  ;;  %v1552_v12 = vpop.f32.mrb[23].mxu0  ;;  %v1625_v14 = vpop.f32.mrb[23].mxu1 }
 0x250   : > { %v5388_v15 = vpack.c.bf16 %v1549_v13, %v1549_v13  ;;  %v5390_v18 = vpack.c.bf16 %v1622_v2, %v1622_v2  ;;  %v1553_v19 = vadd.f32 %v1552_v12, %v5296_v24  ;;  %v1626_v10 = vadd.f32 %v1625_v14, %v5299_v26 }
 0x251   : > { %1694 = vst.msk [vmem:[%s5336_s12 + $0x8] sm:$0xf] %vm1036_vm0, %v5380_v6  ;;  %3900 = vst.msk [vmem:[%s5336_s12 + $0x88] sm:$0xf] %vm1036_vm0, %v5382_v8  ;;  %v5400_v56 = vpack.c.bf16 %v1551_v9, %v1551_v9  ;;  %v5402_v22 = vpack.c.bf16 %v1624_v51, %v1624_v51  ;;  %1263 = vrot.lane.b32.xlu0 %v5208_v53, %s4635_s25 }
 0x252   : > { %3876 = vst.msk [vmem:[%s5336_s12 + $0x48] sm:$0xf] %vm1036_vm0, %v5388_v15  ;;  %3924 = vst.msk [vmem:[%s5336_s12 + $0xc8] sm:$0xf] %vm1036_vm0, %v5390_v18  ;;  %v5412_v27 = vpack.c.bf16 %v1553_v19, %v1553_v19  ;;  %v5414_v29 = vpack.c.bf16 %v1626_v10, %v1626_v10 }
 0x253   : > { %1695 = vst.msk [vmem:[%s5336_s12 + $0xc] sm:$0xf] %vm1036_vm0, %v5400_v56  ;;  %3901 = vst.msk [vmem:[%s5336_s12 + $0x8c] sm:$0xf] %vm1036_vm0, %v5402_v22  ;;  %1195 = vrot.lane.b32.xlu1 %v5220_v57, %s4635_s25 }
 0x254   : > { %3877 = vst.msk [vmem:[%s5336_s12 + $0x4c] sm:$0xf] %vm1036_vm0, %v5412_v27  ;;  %3925 = vst.msk [vmem:[%s5336_s12 + $0xcc] sm:$0xf] %vm1036_vm0, %v5414_v29  ;;  %v1556_v53 = vpop.f32.mrb[24].mxu0  ;;  %v1629_v30 = vpop.f32.mrb[24].mxu1 }
 0x255   : > { %v1557_v0 = vadd.f32 %v1556_v53, %v5280_v43  ;;  %v1630_v31 = vadd.f32 %v1629_v30, %v5283_v20  ;;  %v1558_v34 = vpop.f32.mrb[25].mxu0  ;;  %v1631_v35 = vpop.f32.mrb[25].mxu1  ;;  %1057 = vrot.lane.b32.xlu0 %v5255_v11, %s4635_s25  ;;  %v1975_v53 = vld [vmem:[%s6364_s21] sm:$0xf] }
 0x256   : > { %v1559_v57 = vadd.f32 %v1558_v34, %v5296_v24  ;;  %v1632_v36 = vadd.f32 %v1631_v35, %v5299_v26  ;;  %v1560_v39 = vpop.f32.mrb[26].mxu0  ;;  %v1633_v44 = vpop.f32.mrb[26].mxu1 }
 0x257   : > { %v5436_v1 = vpack.c.bf16 %v1557_v0, %v1557_v0  ;;  %v5438_v46 = vpack.c.bf16 %v1630_v31, %v1630_v31  ;;  %v1561_v52 = vadd.f32 %v1560_v39, %v5280_v43  ;;  %v1634_v25 = vadd.f32 %v1633_v44, %v5283_v20  ;;  %1125 = vrot.lane.b32.xlu1 %v5229_v58, %s4635_s25  ;;  %v1562_v11 = vpop.f32.mrb[27].mxu0  ;;  %v1635_v47 = vpop.f32.mrb[27].mxu1 }
 0x258   : > { %v5444_v61 = vpack.c.bf16 %v1559_v57, %v1559_v57  ;;  %v5446_v32 = vpack.c.bf16 %v1632_v36, %v1632_v36  ;;  %v1563_v5 = vadd.f32 %v1562_v11, %v5296_v24  ;;  %v1636_v63 = vadd.f32 %v1635_v47, %v5299_v26 }
 0x259   : > { %1696 = vst.msk [vmem:[%s5336_s12 + $0x10] sm:$0xf] %vm1036_vm0, %v5436_v1  ;;  %3902 = vst.msk [vmem:[%s5336_s12 + $0x90] sm:$0xf] %vm1036_vm0, %v5438_v46  ;;  %v5456_v58 = vpack.c.bf16 %v1561_v52, %v1561_v52  ;;  %v5458_v45 = vpack.c.bf16 %v1634_v25, %v1634_v25  ;;  %1197 = vrot.lane.b32.xlu0 %v5257_v7, %s4635_s25  ;;  %v5538_v25 = vrot.slane %v1975_v53, %v5106_v40 }
 0x25a   : > { %3878 = vst.msk [vmem:[%s5336_s12 + $0x50] sm:$0xf] %vm1036_vm0, %v5444_v61  ;;  %3926 = vst.msk [vmem:[%s5336_s12 + $0xd0] sm:$0xf] %vm1036_vm0, %v5446_v32  ;;  %v5468_v13 = vpack.c.bf16 %v1563_v5, %v1563_v5  ;;  %v5470_v2 = vpack.c.bf16 %v1636_v63, %v1636_v63 }
 0x25b   : > { %1697 = vst.msk [vmem:[%s5336_s12 + $0x14] sm:$0xf] %vm1036_vm0, %v5456_v58  ;;  %3903 = vst.msk [vmem:[%s5336_s12 + $0x94] sm:$0xf] %vm1036_vm0, %v5458_v45  ;;  %1265 = vrot.lane.b32.xlu1 %v5231_v59, %s4635_s25 }
 0x25c   : > { %3879 = vst.msk [vmem:[%s5336_s12 + $0x54] sm:$0xf] %vm1036_vm0, %v5468_v13  ;;  %3927 = vst.msk [vmem:[%s5336_s12 + $0xd4] sm:$0xf] %vm1036_vm0, %v5470_v2  ;;  %v1566_v7 = vpop.f32.mrb[28].mxu0  ;;  %v1639_v3 = vpop.f32.mrb[28].mxu1 }
 0x25d   : > { %v1567_v4 = vadd.f32 %v1566_v7, %v5280_v43  ;;  %v1640_v9 = vadd.f32 %v1639_v3, %v5283_v20  ;;  %v1568_v51 = vpop.f32.mrb[29].mxu0  ;;  %v1641_v12 = vpop.f32.mrb[29].mxu1  ;;  %1127 = vrot.lane.b32.xlu0 %v5261_v16, %s4635_s25 }
 0x25e   : > { %v1569_v14 = vadd.f32 %v1568_v51, %v5296_v24  ;;  %v1642_v59 = vadd.f32 %v1641_v12, %v5299_v26  ;;  %v1570_v19 = vpop.f32.mrb[30].mxu0  ;;  %v1643_v10 = vpop.f32.mrb[30].mxu1 }
 0x25f   : > { %v5495_v30 = vpack.c.bf16 %v1567_v4, %v1567_v4  ;;  %v5497_v0 = vpack.c.bf16 %v1640_v9, %v1640_v9  ;;  %v1571_v31 = vadd.f32 %v1570_v19, %v5280_v43  ;;  %v1644_v16 = vadd.f32 %v1643_v10, %v5283_v20  ;;  %v1572_v34 = vpop.f32.mrb[31].mxu0  ;;  %v1645_v35 = vpop.f32.mrb[31].mxu1  ;;  %1059 = vrot.lane.b32.xlu1 %v5275_v50, %s4635_s25 }
 0x260   : > { %v5503_v57 = vpack.c.bf16 %v1569_v14, %v1569_v14  ;;  %v5505_v36 = vpack.c.bf16 %v1642_v59, %v1642_v59  ;;  %v1573_v39 = vadd.f32 %v1572_v34, %v5296_v24  ;;  %v1646_v44 = vadd.f32 %v1645_v35, %v5299_v26 }
 0x261   : > { %1698 = vst.msk [vmem:[%s5336_s12 + $0x18] sm:$0xf] %vm1036_vm0, %v5495_v30  ;;  %3904 = vst.msk [vmem:[%s5336_s12 + $0x98] sm:$0xf] %vm1036_vm0, %v5497_v0  ;;  %v5515_v43 = vpack.c.bf16 %v1571_v31, %v1571_v31  ;;  %v5517_v50 = vpack.c.bf16 %v1644_v16, %v1644_v16  ;;  %1267 = vrot.lane.b32.xlu0 %v5263_v17, %s4635_s25  ;;  %v5522_v20 = vrot.slane %v1975_v53, %v5099_v28 }
 0x262   : > { %v5525_v24 = vrot.slane %v1975_v53, %v5101_v38  ;;  %3880 = vst.msk [vmem:[%s5336_s12 + $0x58] sm:$0xf] %vm1036_vm0, %v5503_v57  ;;  %3928 = vst.msk [vmem:[%s5336_s12 + $0xd8] sm:$0xf] %vm1036_vm0, %v5505_v36  ;;  %v5533_v26 = vpack.c.bf16 %v1573_v39, %v1573_v39  ;;  %v5535_v52 = vpack.c.bf16 %v1646_v44, %v1646_v44 }
 0x263   : > { %v5541_v17 = vrot.slane %v1975_v53, %v5108_v41  ;;  %1699 = vst.msk [vmem:[%s5336_s12 + $0x1c] sm:$0xf] %vm1036_vm0, %v5515_v43  ;;  %3905 = vst.msk [vmem:[%s5336_s12 + $0x9c] sm:$0xf] %vm1036_vm0, %v5517_v50  ;;  %1199 = vrot.lane.b32.xlu1 %v5277_v42, %s4635_s25 }
 0x264   : > { %3881 = vst.msk [vmem:[%s5336_s12 + $0x5c] sm:$0xf] %vm1036_vm0, %v5533_v26  ;;  %3929 = vst.msk [vmem:[%s5336_s12 + $0xdc] sm:$0xf] %vm1036_vm0, %v5535_v52  ;;  %v2191_v28 = vpop.f32.mrb[32].mxu0  ;;  %v2264_v38 = vpop.f32.mrb[32].mxu1 }
 0x265   : > { %v2192_v40 = vadd.f32 %v2191_v28, %v5522_v20  ;;  %v2265_v41 = vadd.f32 %v2264_v38, %v5525_v24  ;;  %v2193_v11 = vpop.f32.mrb[33].mxu0  ;;  %v2266_v47 = vpop.f32.mrb[33].mxu1  ;;  %1700 = vrot.lane.b32.xlu0 %v5321_v62, %s4635_s25 }
 0x266   : > { %v2194_v42 = vadd.f32 %v2193_v11, %v5538_v25  ;;  %v2267_v5 = vadd.f32 %v2266_v47, %v5541_v17  ;;  %v2195_v63 = vpop.f32.mrb[34].mxu0  ;;  %v2268_v7 = vpop.f32.mrb[34].mxu1 }
 0x267   : > { %v5563_v3 = vpack.c.bf16 %v2192_v40, %v2192_v40  ;;  %v5565_v4 = vpack.c.bf16 %v2265_v41, %v2265_v41  ;;  %v2196_v9 = vadd.f32 %v2195_v63, %v5522_v20  ;;  %v2269_v51 = vadd.f32 %v2268_v7, %v5525_v24  ;;  %v2197_v12 = vpop.f32.mrb[35].mxu0  ;;  %v2270_v14 = vpop.f32.mrb[35].mxu1  ;;  %1129 = vrot.lane.b32.xlu1 %v5291_v21, %s4635_s25 }
 0x268   : > { %v5571_v62 = vpack.c.bf16 %v2194_v42, %v2194_v42  ;;  %v5573_v59 = vpack.c.bf16 %v2267_v5, %v2267_v5  ;;  %v2198_v19 = vadd.f32 %v2197_v12, %v5538_v25  ;;  %v2271_v10 = vadd.f32 %v2270_v14, %v5541_v17 }
 0x269   : > { %2347 = vst.msk [vmem:[%s5578_s5] sm:$0xf] %vm1036_vm0, %v5563_v3  ;;  %4018 = vst.msk [vmem:[%s5578_s5 + $0x80] sm:$0xf] %vm1036_vm0, %v5565_v4  ;;  %v5586_v21 = vpack.c.bf16 %v2196_v9, %v2196_v9  ;;  %v5588_v53 = vpack.c.bf16 %v2269_v51, %v2269_v51  ;;  %1840 = vrot.lane.b32.xlu0 %v5323_v37, %s4635_s25 }
 0x26a   : > { %3994 = vst.msk [vmem:[%s5578_s5 + $0x40] sm:$0xf] %vm1036_vm0, %v5571_v62  ;;  %4042 = vst.msk [vmem:[%s5578_s5 + $0xc0] sm:$0xf] %vm1036_vm0, %v5573_v59  ;;  %v5598_v31 = vpack.c.bf16 %v2198_v19, %v2198_v19  ;;  %v5600_v16 = vpack.c.bf16 %v2271_v10, %v2271_v10 }
 0x26b   : > { %2348 = vst.msk [vmem:[%s5578_s5 + $0x4] sm:$0xf] %vm1036_vm0, %v5586_v21  ;;  %4019 = vst.msk [vmem:[%s5578_s5 + $0x84] sm:$0xf] %vm1036_vm0, %v5588_v53  ;;  %1269 = vrot.lane.b32.xlu1 %v5293_v23, %s4635_s25 }
 0x26c   : > { %3995 = vst.msk [vmem:[%s5578_s5 + $0x44] sm:$0xf] %vm1036_vm0, %v5598_v31  ;;  %4043 = vst.msk [vmem:[%s5578_s5 + $0xc4] sm:$0xf] %vm1036_vm0, %v5600_v16  ;;  %v2201_v37 = vpop.f32.mrb[36].mxu0  ;;  %v2274_v34 = vpop.f32.mrb[36].mxu1 }
 0x26d   : > { %v2202_v35 = vadd.f32 %v2201_v37, %v5522_v20  ;;  %v2275_v39 = vadd.f32 %v2274_v34, %v5525_v24  ;;  %v2203_v44 = vpop.f32.mrb[37].mxu0  ;;  %v2276_v28 = vpop.f32.mrb[37].mxu1  ;;  %1770 = vrot.lane.b32.xlu0 %v5329_v48, %s4635_s25 }
 0x26e   : > { %v2204_v23 = vadd.f32 %v2203_v44, %v5538_v25  ;;  %v2277_v38 = vadd.f32 %v2276_v28, %v5541_v17  ;;  %v2205_v40 = vpop.f32.mrb[38].mxu0  ;;  %v2278_v41 = vpop.f32.mrb[38].mxu1 }
 0x26f   : > { %v5622_v11 = vpack.c.bf16 %v2202_v35, %v2202_v35  ;;  %v5624_v47 = vpack.c.bf16 %v2275_v39, %v2275_v39  ;;  %v2206_v42 = vadd.f32 %v2205_v40, %v5522_v20  ;;  %v2279_v5 = vadd.f32 %v2278_v41, %v5525_v24  ;;  %v2207_v63 = vpop.f32.mrb[39].mxu0  ;;  %v2280_v48 = vpop.f32.mrb[39].mxu1  ;;  %1702 = vrot.lane.b32.xlu1 %v5344_v33, %s4635_s25 }
 0x270   : > { %v5630_v7 = vpack.c.bf16 %v2204_v23, %v2204_v23  ;;  %v5632_v9 = vpack.c.bf16 %v2277_v38, %v2277_v38  ;;  %v2208_v51 = vadd.f32 %v2207_v63, %v5538_v25  ;;  %v2281_v12 = vadd.f32 %v2280_v48, %v5541_v17 }
 0x271   : > { %2349 = vst.msk [vmem:[%s5578_s5 + $0x8] sm:$0xf] %vm1036_vm0, %v5622_v11  ;;  %4020 = vst.msk [vmem:[%s5578_s5 + $0x88] sm:$0xf] %vm1036_vm0, %v5624_v47  ;;  %v5642_v14 = vpack.c.bf16 %v2206_v42, %v2206_v42  ;;  %v5644_v19 = vpack.c.bf16 %v2279_v5, %v2279_v5  ;;  %1910 = vrot.lane.b32.xlu0 %v5331_v49, %s4635_s25 }
 0x272   : > { %3996 = vst.msk [vmem:[%s5578_s5 + $0x48] sm:$0xf] %vm1036_vm0, %v5630_v7  ;;  %4044 = vst.msk [vmem:[%s5578_s5 + $0xc8] sm:$0xf] %vm1036_vm0, %v5632_v9  ;;  %v5654_v33 = vpack.c.bf16 %v2208_v51, %v2208_v51  ;;  %v5656_v10 = vpack.c.bf16 %v2281_v12, %v2281_v12 }
 0x273   : > { %2350 = vst.msk [vmem:[%s5578_s5 + $0xc] sm:$0xf] %vm1036_vm0, %v5642_v14  ;;  %4021 = vst.msk [vmem:[%s5578_s5 + $0x8c] sm:$0xf] %vm1036_vm0, %v5644_v19  ;;  %1842 = vrot.lane.b32.xlu1 %v5346_v54, %s4635_s25 }
 0x274   : > { %3997 = vst.msk [vmem:[%s5578_s5 + $0x4c] sm:$0xf] %vm1036_vm0, %v5654_v33  ;;  %4045 = vst.msk [vmem:[%s5578_s5 + $0xcc] sm:$0xf] %vm1036_vm0, %v5656_v10  ;;  %v2211_v49 = vpop.f32.mrb[40].mxu0  ;;  %v2284_v37 = vpop.f32.mrb[40].mxu1 }
 0x275   : > { %v2212_v34 = vadd.f32 %v2211_v49, %v5522_v20  ;;  %v2285_v35 = vadd.f32 %v2284_v37, %v5525_v24  ;;  %v2213_v39 = vpop.f32.mrb[41].mxu0  ;;  %v2286_v44 = vpop.f32.mrb[41].mxu1  ;;  %1704 = vrot.lane.b32.xlu0 %v5380_v6, %s4635_s25 }
 0x276   : > { %v2214_v54 = vadd.f32 %v2213_v39, %v5538_v25  ;;  %v2287_v28 = vadd.f32 %v2286_v44, %v5541_v17  ;;  %v2215_v23 = vpop.f32.mrb[42].mxu0  ;;  %v2288_v38 = vpop.f32.mrb[42].mxu1 }
 0x277   : > { %v5678_v40 = vpack.c.bf16 %v2212_v34, %v2212_v34  ;;  %v5680_v41 = vpack.c.bf16 %v2285_v35, %v2285_v35  ;;  %v2216_v42 = vadd.f32 %v2215_v23, %v5522_v20  ;;  %v2289_v5 = vadd.f32 %v2288_v38, %v5525_v24  ;;  %v2217_v63 = vpop.f32.mrb[43].mxu0  ;;  %v2290_v6 = vpop.f32.mrb[43].mxu1  ;;  %1772 = vrot.lane.b32.xlu1 %v5356_v55, %s4635_s25 }
 0x278   : > { %v5686_v48 = vpack.c.bf16 %v2214_v54, %v2214_v54  ;;  %v5688_v51 = vpack.c.bf16 %v2287_v28, %v2287_v28  ;;  %v2218_v12 = vadd.f32 %v2217_v63, %v5538_v25  ;;  %v2291_v49 = vadd.f32 %v2290_v6, %v5541_v17 }
 0x279   : > { %2351 = vst.msk [vmem:[%s5578_s5 + $0x10] sm:$0xf] %vm1036_vm0, %v5678_v40  ;;  %4022 = vst.msk [vmem:[%s5578_s5 + $0x90] sm:$0xf] %vm1036_vm0, %v5680_v41  ;;  %v5698_v37 = vpack.c.bf16 %v2216_v42, %v2216_v42  ;;  %v5700_v34 = vpack.c.bf16 %v2289_v5, %v2289_v5  ;;  %1844 = vrot.lane.b32.xlu0 %v5382_v8, %s4635_s25 }
 0x27a   : > { %3998 = vst.msk [vmem:[%s5578_s5 + $0x50] sm:$0xf] %vm1036_vm0, %v5686_v48  ;;  %4046 = vst.msk [vmem:[%s5578_s5 + $0xd0] sm:$0xf] %vm1036_vm0, %v5688_v51  ;;  %v5710_v55 = vpack.c.bf16 %v2218_v12, %v2218_v12  ;;  %v5712_v35 = vpack.c.bf16 %v2291_v49, %v2291_v49 }
 0x27b   : > { %2352 = vst.msk [vmem:[%s5578_s5 + $0x14] sm:$0xf] %vm1036_vm0, %v5698_v37  ;;  %4023 = vst.msk [vmem:[%s5578_s5 + $0x94] sm:$0xf] %vm1036_vm0, %v5700_v34  ;;  %1912 = vrot.lane.b32.xlu1 %v5358_v60, %s4635_s25 }
 0x27c   : > { %3999 = vst.msk [vmem:[%s5578_s5 + $0x54] sm:$0xf] %vm1036_vm0, %v5710_v55  ;;  %4047 = vst.msk [vmem:[%s5578_s5 + $0xd4] sm:$0xf] %vm1036_vm0, %v5712_v35  ;;  %v2221_v8 = vpop.f32.mrb[44].mxu0  ;;  %v2294_v39 = vpop.f32.mrb[44].mxu1 }
 0x27d   : > { %v2222_v44 = vadd.f32 %v2221_v8, %v5522_v20  ;;  %v2295_v54 = vadd.f32 %v2294_v39, %v5525_v24  ;;  %v2223_v28 = vpop.f32.mrb[45].mxu0  ;;  %v2296_v23 = vpop.f32.mrb[45].mxu1  ;;  %1774 = vrot.lane.b32.xlu0 %v5388_v15, %s4635_s25 }
 0x27e   : > { %v2224_v60 = vadd.f32 %v2223_v28, %v5538_v25  ;;  %v2297_v38 = vadd.f32 %v2296_v23, %v5541_v17  ;;  %v2225_v42 = vpop.f32.mrb[46].mxu0  ;;  %v2298_v5 = vpop.f32.mrb[46].mxu1 }
 0x27f   : > { %v5734_v63 = vpack.c.bf16 %v2222_v44, %v2222_v44  ;;  %v5736_v6 = vpack.c.bf16 %v2295_v54, %v2295_v54  ;;  %v2226_v12 = vadd.f32 %v2225_v42, %v5522_v20  ;;  %v2299_v49 = vadd.f32 %v2298_v5, %v5525_v24  ;;  %v2227_v8 = vpop.f32.mrb[47].mxu0  ;;  %v2300_v15 = vpop.f32.mrb[47].mxu1  ;;  %1706 = vrot.lane.b32.xlu1 %v5400_v56, %s4635_s25 }
 0x280   : > { %v5742_v39 = vpack.c.bf16 %v2224_v60, %v2224_v60  ;;  %v5744_v44 = vpack.c.bf16 %v2297_v38, %v2297_v38  ;;  %v2228_v54 = vadd.f32 %v2227_v8, %v5538_v25  ;;  %v2301_v28 = vadd.f32 %v2300_v15, %v5541_v17 }
 0x281   : > { %2353 = vst.msk [vmem:[%s5578_s5 + $0x18] sm:$0xf] %vm1036_vm0, %v5734_v63  ;;  %4024 = vst.msk [vmem:[%s5578_s5 + $0x98] sm:$0xf] %vm1036_vm0, %v5736_v6  ;;  %v5754_v20 = vpack.c.bf16 %v2226_v12, %v2226_v12  ;;  %v5756_v24 = vpack.c.bf16 %v2299_v49, %v2299_v49  ;;  %1914 = vrot.lane.b32.xlu0 %v5390_v18, %s4635_s25 }
 0x282   : > { %4000 = vst.msk [vmem:[%s5578_s5 + $0x58] sm:$0xf] %vm1036_vm0, %v5742_v39  ;;  %4048 = vst.msk [vmem:[%s5578_s5 + $0xd8] sm:$0xf] %vm1036_vm0, %v5744_v44  ;;  %v5766_v56 = vpack.c.bf16 %v2228_v54, %v2228_v54  ;;  %v5768_v25 = vpack.c.bf16 %v2301_v28, %v2301_v28 }
 0x283   : > { %2354 = vst.msk [vmem:[%s5578_s5 + $0x1c] sm:$0xf] %vm1036_vm0, %v5754_v20  ;;  %4025 = vst.msk [vmem:[%s5578_s5 + $0x9c] sm:$0xf] %vm1036_vm0, %v5756_v24  ;;  %1846 = vrot.lane.b32.xlu1 %v5402_v22, %s4635_s25 }
 0x284   : > { %4001 = vst.msk [vmem:[%s5578_s5 + $0x5c] sm:$0xf] %vm1036_vm0, %v5766_v56  ;;  %4049 = vst.msk [vmem:[%s5578_s5 + $0xdc] sm:$0xf] %vm1036_vm0, %v5768_v25 }
 0x285   : > { %1708 = vrot.lane.b32.xlu0 %v5436_v1, %s4635_s25 }
 0x287   : > { %1776 = vrot.lane.b32.xlu1 %v5412_v27, %s4635_s25 }
 0x289   : > { %1848 = vrot.lane.b32.xlu0 %v5438_v46, %s4635_s25 }
 0x28b   : > { %1916 = vrot.lane.b32.xlu1 %v5414_v29, %s4635_s25 }
 0x28d   : > { %1778 = vrot.lane.b32.xlu0 %v5444_v61, %s4635_s25 }
 0x28f   : > { %1710 = vrot.lane.b32.xlu1 %v5456_v58, %s4635_s25 }
 0x291   : > { %1918 = vrot.lane.b32.xlu0 %v5446_v32, %s4635_s25 }
 0x293   : > { %1850 = vrot.lane.b32.xlu1 %v5458_v45, %s4635_s25 }
 0x295   : > { %1712 = vrot.lane.b32.xlu0 %v5495_v30, %s4635_s25 }
 0x297   : > { %1780 = vrot.lane.b32.xlu1 %v5468_v13, %s4635_s25 }
 0x299   : > { %1852 = vrot.lane.b32.xlu0 %v5497_v0, %s4635_s25 }
 0x29b   : > { %v1046_v18 = vpop.permute.xlu0 %1045  ;;  %1920 = vrot.lane.b32.xlu1 %v5470_v2, %s4635_s25 }
 0x29c   : > { %3738 = vst.msk [vmem:[%s5134_s17 + $0x20] sm:$0xf] %vm1036_vm0, %v1046_v18 }
 0x29d   : > { %1782 = vrot.lane.b32.xlu0 %v5503_v57, %s4635_s25  ;;  %v1048_v22 = vpop.permute.xlu1 %1047 }
 0x29e   : > { %3739 = vst.msk [vmem:[%s5134_s17 + $0x24] sm:$0xf] %vm1036_vm0, %v1048_v22 }
 0x29f   : > { %v1186_v27 = vpop.permute.xlu0 %1185  ;;  %1714 = vrot.lane.b32.xlu1 %v5515_v43, %s4635_s25 }
 0x2a0   : > { %3786 = vst.msk [vmem:[%s5134_s17 + $0xa0] sm:$0xf] %vm1036_vm0, %v1186_v27 }
 0x2a1   : > { %1922 = vrot.lane.b32.xlu0 %v5505_v36, %s4635_s25  ;;  %v1188_v29 = vpop.permute.xlu1 %1187 }
 0x2a2   : > { %3787 = vst.msk [vmem:[%s5134_s17 + $0xa4] sm:$0xf] %vm1036_vm0, %v1188_v29 }
 0x2a3   : > { %v1116_v1 = vpop.permute.xlu0 %1115  ;;  %1854 = vrot.lane.b32.xlu1 %v5517_v50, %s4635_s25 }
 0x2a4   : > { %3762 = vst.msk [vmem:[%s5134_s17 + $0x60] sm:$0xf] %vm1036_vm0, %v1116_v1 }
 0x2a5   : > { %2355 = vrot.lane.b32.xlu0 %v5563_v3, %s4635_s25  ;;  %v1118_v46 = vpop.permute.xlu1 %1117 }
 0x2a6   : > { %3763 = vst.msk [vmem:[%s5134_s17 + $0x64] sm:$0xf] %vm1036_vm0, %v1118_v46 }
 0x2a7   : > { %v1256_v61 = vpop.permute.xlu0 %1255  ;;  %1784 = vrot.lane.b32.xlu1 %v5533_v26, %s4635_s25 }
 0x2a8   : > { %3810 = vst.msk [vmem:[%s5134_s17 + $0xe0] sm:$0xf] %vm1036_vm0, %v1256_v61 }
 0x2a9   : > { %2495 = vrot.lane.b32.xlu0 %v5565_v4, %s4635_s25  ;;  %v1258_v32 = vpop.permute.xlu1 %1257 }
 0x2aa   : > { %3811 = vst.msk [vmem:[%s5134_s17 + $0xe4] sm:$0xf] %vm1036_vm0, %v1258_v32 }
 0x2ab   : > { %v1190_v58 = vpop.permute.xlu0 %1189  ;;  %1924 = vrot.lane.b32.xlu1 %v5535_v52, %s4635_s25 }
 0x2ac   : > { %3788 = vst.msk [vmem:[%s5134_s17 + $0xa8] sm:$0xf] %vm1036_vm0, %v1190_v58 }
 0x2ad   : > { %2425 = vrot.lane.b32.xlu0 %v5571_v62, %s4635_s25  ;;  %v1050_v45 = vpop.permute.xlu1 %1049 }
 0x2ae   : > { %3740 = vst.msk [vmem:[%s5134_s17 + $0x28] sm:$0xf] %vm1036_vm0, %v1050_v45 }
 0x2af   : > { %v1120_v13 = vpop.permute.xlu0 %1119  ;;  %2357 = vrot.lane.b32.xlu1 %v5586_v21, %s4635_s25 }
 0x2b0   : > { %3764 = vst.msk [vmem:[%s5134_s17 + $0x68] sm:$0xf] %vm1036_vm0, %v1120_v13 }
 0x2b1   : > { %2565 = vrot.lane.b32.xlu0 %v5573_v59, %s4635_s25  ;;  %v1052_v2 = vpop.permute.xlu1 %1051 }
 0x2b2   : > { %3741 = vst.msk [vmem:[%s5134_s17 + $0x2c] sm:$0xf] %vm1036_vm0, %v1052_v2 }
 0x2b3   : > { %v1260_v30 = vpop.permute.xlu0 %1259  ;;  %2497 = vrot.lane.b32.xlu1 %v5588_v53, %s4635_s25 }
 0x2b4   : > { %3812 = vst.msk [vmem:[%s5134_s17 + $0xe8] sm:$0xf] %vm1036_vm0, %v1260_v30 }
 0x2b5   : > { %2359 = vrot.lane.b32.xlu0 %v5622_v11, %s4635_s25  ;;  %v1192_v0 = vpop.permute.xlu1 %1191 }
 0x2b6   : > { %3789 = vst.msk [vmem:[%s5134_s17 + $0xac] sm:$0xf] %vm1036_vm0, %v1192_v0 }
 0x2b7   : > { %v1054_v57 = vpop.permute.xlu0 %1053  ;;  %2427 = vrot.lane.b32.xlu1 %v5598_v31, %s4635_s25 }
 0x2b8   : > { %3742 = vst.msk [vmem:[%s5134_s17 + $0x30] sm:$0xf] %vm1036_vm0, %v1054_v57 }
 0x2b9   : > { %2499 = vrot.lane.b32.xlu0 %v5624_v47, %s4635_s25  ;;  %v1122_v36 = vpop.permute.xlu1 %1121 }
 0x2ba   : > { %3765 = vst.msk [vmem:[%s5134_s17 + $0x6c] sm:$0xf] %vm1036_vm0, %v1122_v36 }
 0x2bb   : > { %v1194_v43 = vpop.permute.xlu0 %1193  ;;  %2567 = vrot.lane.b32.xlu1 %v5600_v16, %s4635_s25 }
 0x2bc   : > { %3790 = vst.msk [vmem:[%s5134_s17 + $0xb0] sm:$0xf] %vm1036_vm0, %v1194_v43 }
 0x2bd   : > { %2429 = vrot.lane.b32.xlu0 %v5630_v7, %s4635_s25  ;;  %v1262_v50 = vpop.permute.xlu1 %1261 }
 0x2be   : > { %3813 = vst.msk [vmem:[%s5134_s17 + $0xec] sm:$0xf] %vm1036_vm0, %v1262_v50 }
 0x2bf   : > { %v1124_v26 = vpop.permute.xlu0 %1123  ;;  %2361 = vrot.lane.b32.xlu1 %v5642_v14, %s4635_s25 }
 0x2c0   : > { %3766 = vst.msk [vmem:[%s5134_s17 + $0x70] sm:$0xf] %vm1036_vm0, %v1124_v26 }
 0x2c1   : > { %2569 = vrot.lane.b32.xlu0 %v5632_v9, %s4635_s25  ;;  %v1056_v52 = vpop.permute.xlu1 %1055 }
 0x2c2   : > { %3743 = vst.msk [vmem:[%s5134_s17 + $0x34] sm:$0xf] %vm1036_vm0, %v1056_v52 }
 0x2c3   : > { %v1264_v17 = vpop.permute.xlu0 %1263  ;;  %2501 = vrot.lane.b32.xlu1 %v5644_v19, %s4635_s25 }
 0x2c4   : > { %3814 = vst.msk [vmem:[%s5134_s17 + $0xf0] sm:$0xf] %vm1036_vm0, %v1264_v17 }
 0x2c5   : > { %2363 = vrot.lane.b32.xlu0 %v5678_v40, %s4635_s25  ;;  %v1196_v3 = vpop.permute.xlu1 %1195 }
 0x2c6   : > { %3791 = vst.msk [vmem:[%s5134_s17 + $0xb4] sm:$0xf] %vm1036_vm0, %v1196_v3 }
 0x2c7   : > { %2431 = vrot.lane.b32.xlu1 %v5654_v33, %s4635_s25  ;;  %v1058_v4 = vpop.permute.xlu0 %1057 }
 0x2c8   : > { %3744 = vst.msk [vmem:[%s5134_s17 + $0x38] sm:$0xf] %vm1036_vm0, %v1058_v4 }
 0x2c9   : > { %2503 = vrot.lane.b32.xlu0 %v5680_v41, %s4635_s25  ;;  %v1126_v62 = vpop.permute.xlu1 %1125 }
 0x2ca   : > { %3767 = vst.msk [vmem:[%s5134_s17 + $0x74] sm:$0xf] %vm1036_vm0, %v1126_v62 }
 0x2cb   : > { %2571 = vrot.lane.b32.xlu1 %v5656_v10, %s4635_s25  ;;  %v1198_v59 = vpop.permute.xlu0 %1197 }
 0x2cc   : > { %3792 = vst.msk [vmem:[%s5134_s17 + $0xb8] sm:$0xf] %vm1036_vm0, %v1198_v59 }
 0x2cd   : > { %2433 = vrot.lane.b32.xlu0 %v5686_v48, %s4635_s25  ;;  %v1266_v21 = vpop.permute.xlu1 %1265 }
 0x2ce   : > { %3815 = vst.msk [vmem:[%s5134_s17 + $0xf4] sm:$0xf] %vm1036_vm0, %v1266_v21 }
 0x2cf   : > { %2365 = vrot.lane.b32.xlu1 %v5698_v37, %s4635_s25  ;;  %v1128_v53 = vpop.permute.xlu0 %1127 }
 0x2d0   : > { %3768 = vst.msk [vmem:[%s5134_s17 + $0x78] sm:$0xf] %vm1036_vm0, %v1128_v53 }
 0x2d1   : > { %2573 = vrot.lane.b32.xlu0 %v5688_v51, %s4635_s25  ;;  %v1060_v31 = vpop.permute.xlu1 %1059 }
 0x2d2   : > { %3745 = vst.msk [vmem:[%s5134_s17 + $0x3c] sm:$0xf] %vm1036_vm0, %v1060_v31 }
 0x2d3   : > { %2505 = vrot.lane.b32.xlu1 %v5700_v34, %s4635_s25  ;;  %v1268_v16 = vpop.permute.xlu0 %1267 }
 0x2d4   : > { %3816 = vst.msk [vmem:[%s5134_s17 + $0xf8] sm:$0xf] %vm1036_vm0, %v1268_v16 }
 0x2d5   : > { %2367 = vrot.lane.b32.xlu0 %v5734_v63, %s4635_s25  ;;  %v1200_v11 = vpop.permute.xlu1 %1199 }
 0x2d6   : > { %3793 = vst.msk [vmem:[%s5134_s17 + $0xbc] sm:$0xf] %vm1036_vm0, %v1200_v11 }
 0x2d7   : > { %2435 = vrot.lane.b32.xlu1 %v5710_v55, %s4635_s25  ;;  %v1701_v47 = vpop.permute.xlu0 %1700 }
 0x2d8   : > { %3858 = vst.msk [vmem:[%s5336_s12 + $0x20] sm:$0xf] %vm1036_vm0, %v1701_v47 }
 0x2d9   : > { %2507 = vrot.lane.b32.xlu0 %v5736_v6, %s4635_s25  ;;  %v1130_v7 = vpop.permute.xlu1 %1129 }
 0x2da   : > { %3769 = vst.msk [vmem:[%s5134_s17 + $0x7c] sm:$0xf] %vm1036_vm0, %v1130_v7 }
 0x2db   : > { %2575 = vrot.lane.b32.xlu1 %v5712_v35, %s4635_s25  ;;  %v1841_v9 = vpop.permute.xlu0 %1840 }
 0x2dc   : > { %3906 = vst.msk [vmem:[%s5336_s12 + $0xa0] sm:$0xf] %vm1036_vm0, %v1841_v9  ;;  %v2633_v9 = vld [vmem:[%s5134_s17] sm:$0xff] (%p4857_p9)  }
 0x2dd   : > { %2437 = vrot.lane.b32.xlu0 %v5742_v39, %s4635_s25  ;;  %v1270_v14 = vpop.permute.xlu1 %1269 }
 0x2de   : > { %3817 = vst.msk [vmem:[%s5134_s17 + $0xfc] sm:$0xf] %vm1036_vm0, %v1270_v14  ;;  %v2637_v14 = vld [vmem:[%s5134_s17 + $0x8] sm:$0xff] (%p4857_p9)  }
 0x2df   : > { %2369 = vrot.lane.b32.xlu1 %v5754_v20, %s4635_s25  ;;  %v1771_v19 = vpop.permute.xlu0 %1770 }
 0x2e0   : > { %3882 = vst.msk [vmem:[%s5336_s12 + $0x60] sm:$0xf] %vm1036_vm0, %v1771_v19  ;;  %v2641_v19 = vld [vmem:[%s5134_s17 + $0x10] sm:$0xff] (%p4857_p9)  }
 0x2e1   : > { %2577 = vrot.lane.b32.xlu0 %v5744_v44, %s4635_s25  ;;  %v1703_v33 = vpop.permute.xlu1 %1702 }
 0x2e2   : > { %3859 = vst.msk [vmem:[%s5336_s12 + $0x24] sm:$0xf] %vm1036_vm0, %v1703_v33  ;;  %v2645_v33 = vld [vmem:[%s5134_s17 + $0x18] sm:$0xff] (%p4857_p9)  }
 0x2e3   : > { %2509 = vrot.lane.b32.xlu1 %v5756_v24, %s4635_s25  ;;  %v1911_v10 = vpop.permute.xlu0 %1910 }
 0x2e4   : > { %3930 = vst.msk [vmem:[%s5336_s12 + $0xe0] sm:$0xf] %vm1036_vm0, %v1911_v10  ;;  %v2649_v10 = vld [vmem:[%s5134_s17 + $0x20] sm:$0xff] (%p4857_p9)  }
 0x2e5   : > { %v1843_v40 = vpop.permute.xlu1 %1842 }
 0x2e6   : > { %3907 = vst.msk [vmem:[%s5336_s12 + $0xa4] sm:$0xf] %vm1036_vm0, %v1843_v40  ;;  %v2653_v40 = vld [vmem:[%s5134_s17 + $0x28] sm:$0xff] (%p4857_p9)  }
 0x2e7   : > { %2439 = vrot.lane.b32.xlu1 %v5766_v56, %s4635_s25  ;;  %v1705_v41 = vpop.permute.xlu0 %1704 }
 0x2e8   : > { %3860 = vst.msk [vmem:[%s5336_s12 + $0x28] sm:$0xf] %vm1036_vm0, %v1705_v41  ;;  %v2657_v41 = vld [vmem:[%s5134_s17 + $0x30] sm:$0xff] (%p4857_p9)  }
 0x2e9   : > { %v1773_v48 = vpop.permute.xlu1 %1772 }
 0x2ea   : > { %3883 = vst.msk [vmem:[%s5336_s12 + $0x64] sm:$0xf] %vm1036_vm0, %v1773_v48  ;;  %v2661_v48 = vld [vmem:[%s5134_s17 + $0x38] sm:$0xff] (%p4857_p9)  }
 0x2eb   : > { %2579 = vrot.lane.b32.xlu1 %v5768_v25, %s4635_s25  ;;  %v1845_v51 = vpop.permute.xlu0 %1844  ;;  %s6092_s25 = scalar_lea.vmem (%p4857_p9), %s6367_s8, %s4063_s30 }
 0x2ec   : > { %3908 = vst.msk [vmem:[%s5336_s12 + $0xa8] sm:$0xf] %vm1036_vm0, %v1845_v51  ;;  %v2665_v51 = vld [vmem:[%s5134_s17 + $0x40] sm:$0xff] (%p4857_p9)   ;;  %2634 = vst [vmem:[%s6092_s25] sm:$0xff] (%p4857_p9), %v2633_v9  }
 0x2ed   : > { %v1913_v37 = vpop.permute.xlu1 %1912  ;;  %2638 = vst [vmem:[%s6092_s25 + $0x8] sm:$0xff] (%p4857_p9), %v2637_v14   ;;  %2642 = vst [vmem:[%s6092_s25 + $0x10] sm:$0xff] (%p4857_p9), %v2641_v19  }
 0x2ee   : > { %3931 = vst.msk [vmem:[%s5336_s12 + $0xe4] sm:$0xf] %vm1036_vm0, %v1913_v37  ;;  %v2669_v37 = vld [vmem:[%s5134_s17 + $0x48] sm:$0xff] (%p4857_p9)   ;;  %2646 = vst [vmem:[%s6092_s25 + $0x18] sm:$0xff] (%p4857_p9), %v2645_v33  }
 0x2ef   : > { %v1775_v34 = vpop.permute.xlu0 %1774  ;;  %2650 = vst [vmem:[%s6092_s25 + $0x40] sm:$0xff] (%p4857_p9), %v2649_v10   ;;  %2654 = vst [vmem:[%s6092_s25 + $0x48] sm:$0xff] (%p4857_p9), %v2653_v40  }
 0x2f0   : > { %3884 = vst.msk [vmem:[%s5336_s12 + $0x68] sm:$0xf] %vm1036_vm0, %v1775_v34  ;;  %v2673_v34 = vld [vmem:[%s5134_s17 + $0x50] sm:$0xff] (%p4857_p9)   ;;  %2658 = vst [vmem:[%s6092_s25 + $0x50] sm:$0xff] (%p4857_p9), %v2657_v41  }
 0x2f1   : > { %v1707_v55 = vpop.permute.xlu1 %1706  ;;  %2662 = vst [vmem:[%s6092_s25 + $0x58] sm:$0xff] (%p4857_p9), %v2661_v48   ;;  %2666 = vst [vmem:[%s6092_s25 + $0x80] sm:$0xff] (%p4857_p9), %v2665_v51  }
 0x2f2   : > { %3861 = vst.msk [vmem:[%s5336_s12 + $0x2c] sm:$0xf] %vm1036_vm0, %v1707_v55  ;;  %v2677_v55 = vld [vmem:[%s5134_s17 + $0x58] sm:$0xff] (%p4857_p9)   ;;  %2670 = vst [vmem:[%s6092_s25 + $0x88] sm:$0xff] (%p4857_p9), %v2669_v37  }
 0x2f3   : > { %v1915_v35 = vpop.permute.xlu0 %1914  ;;  %2674 = vst [vmem:[%s6092_s25 + $0x90] sm:$0xff] (%p4857_p9), %v2673_v34   ;;  %2678 = vst [vmem:[%s6092_s25 + $0x98] sm:$0xff] (%p4857_p9), %v2677_v55  }
 0x2f4   : > { %3932 = vst.msk [vmem:[%s5336_s12 + $0xe8] sm:$0xf] %vm1036_vm0, %v1915_v35  ;;  %v2681_v35 = vld [vmem:[%s5134_s17 + $0x60] sm:$0xff] (%p4857_p9)  }
 0x2f5   : > { %v1847_v23 = vpop.permute.xlu1 %1846  ;;  %2682 = vst [vmem:[%s6092_s25 + $0xc0] sm:$0xff] (%p4857_p9), %v2681_v35  }
 0x2f6   : > { %3909 = vst.msk [vmem:[%s5336_s12 + $0xac] sm:$0xf] %vm1036_vm0, %v1847_v23  ;;  %v2685_v23 = vld [vmem:[%s5134_s17 + $0x68] sm:$0xff] (%p4857_p9)  }
 0x2f7   : > { %v1709_v60 = vpop.permute.xlu0 %1708  ;;  %2686 = vst [vmem:[%s6092_s25 + $0xc8] sm:$0xff] (%p4857_p9), %v2685_v23  }
 0x2f8   : > { %3862 = vst.msk [vmem:[%s5336_s12 + $0x30] sm:$0xf] %vm1036_vm0, %v1709_v60  ;;  %v2689_v60 = vld [vmem:[%s5134_s17 + $0x70] sm:$0xff] (%p4857_p9)  }
 0x2f9   : > { %v1777_v38 = vpop.permute.xlu1 %1776  ;;  %2690 = vst [vmem:[%s6092_s25 + $0xd0] sm:$0xff] (%p4857_p9), %v2689_v60  }
 0x2fa   : > { %3885 = vst.msk [vmem:[%s5336_s12 + $0x6c] sm:$0xf] %vm1036_vm0, %v1777_v38  ;;  %v2693_v38 = vld [vmem:[%s5134_s17 + $0x78] sm:$0xff] (%p4857_p9)  }
 0x2fb   : > { %v1849_v42 = vpop.permute.xlu0 %1848  ;;  %2694 = vst [vmem:[%s6092_s25 + $0xd8] sm:$0xff] (%p4857_p9), %v2693_v38  }
 0x2fc   : > { %3910 = vst.msk [vmem:[%s5336_s12 + $0xb0] sm:$0xf] %vm1036_vm0, %v1849_v42  ;;  %v2697_v42 = vld [vmem:[%s5134_s17 + $0x80] sm:$0xff] (%p4857_p9)  }
 0x2fd   : > { %v1917_v5 = vpop.permute.xlu1 %1916  ;;  %2698 = vst [vmem:[%s6092_s25 + $0x100] sm:$0xff] (%p4857_p9), %v2697_v42  }
 0x2fe   : > { %3933 = vst.msk [vmem:[%s5336_s12 + $0xec] sm:$0xf] %vm1036_vm0, %v1917_v5  ;;  %v2701_v5 = vld [vmem:[%s5134_s17 + $0x88] sm:$0xff] (%p4857_p9)  }
 0x2ff   : > { %v1779_v63 = vpop.permute.xlu0 %1778  ;;  %2702 = vst [vmem:[%s6092_s25 + $0x108] sm:$0xff] (%p4857_p9), %v2701_v5  }
 0x300   : > { %3886 = vst.msk [vmem:[%s5336_s12 + $0x70] sm:$0xf] %vm1036_vm0, %v1779_v63  ;;  %v2705_v63 = vld [vmem:[%s5134_s17 + $0x90] sm:$0xff] (%p4857_p9)  }
 0x301   : > { %v1711_v6 = vpop.permute.xlu1 %1710  ;;  %2706 = vst [vmem:[%s6092_s25 + $0x110] sm:$0xff] (%p4857_p9), %v2705_v63  }
 0x302   : > { %3863 = vst.msk [vmem:[%s5336_s12 + $0x34] sm:$0xf] %vm1036_vm0, %v1711_v6  ;;  %v2709_v6 = vld [vmem:[%s5134_s17 + $0x98] sm:$0xff] (%p4857_p9)  }
 0x303   : > { %v1919_v12 = vpop.permute.xlu0 %1918  ;;  %2710 = vst [vmem:[%s6092_s25 + $0x118] sm:$0xff] (%p4857_p9), %v2709_v6  }
 0x304   : > { %3934 = vst.msk [vmem:[%s5336_s12 + $0xf0] sm:$0xf] %vm1036_vm0, %v1919_v12  ;;  %v2713_v12 = vld [vmem:[%s5134_s17 + $0xa0] sm:$0xff] (%p4857_p9)  }
 0x305   : > { %v1851_v49 = vpop.permute.xlu1 %1850  ;;  %2714 = vst [vmem:[%s6092_s25 + $0x140] sm:$0xff] (%p4857_p9), %v2713_v12  }
 0x306   : > { %3911 = vst.msk [vmem:[%s5336_s12 + $0xb4] sm:$0xf] %vm1036_vm0, %v1851_v49  ;;  %v2717_v49 = vld [vmem:[%s5134_s17 + $0xa8] sm:$0xff] (%p4857_p9)  }
 0x307   : > { %v1713_v8 = vpop.permute.xlu0 %1712  ;;  %2718 = vst [vmem:[%s6092_s25 + $0x148] sm:$0xff] (%p4857_p9), %v2717_v49  }
 0x308   : > { %3864 = vst.msk [vmem:[%s5336_s12 + $0x38] sm:$0xf] %vm1036_vm0, %v1713_v8  ;;  %v2721_v8 = vld [vmem:[%s5134_s17 + $0xb0] sm:$0xff] (%p4857_p9)  }
 0x309   : > { %v1781_v15 = vpop.permute.xlu1 %1780  ;;  %2722 = vst [vmem:[%s6092_s25 + $0x150] sm:$0xff] (%p4857_p9), %v2721_v8  }
 0x30a   : > { %3887 = vst.msk [vmem:[%s5336_s12 + $0x74] sm:$0xf] %vm1036_vm0, %v1781_v15  ;;  %v2725_v15 = vld [vmem:[%s5134_s17 + $0xb8] sm:$0xff] (%p4857_p9)  }
 0x30b   : > { %v1853_v39 = vpop.permute.xlu0 %1852  ;;  %2726 = vst [vmem:[%s6092_s25 + $0x158] sm:$0xff] (%p4857_p9), %v2725_v15  }
 0x30c   : > { %3912 = vst.msk [vmem:[%s5336_s12 + $0xb8] sm:$0xf] %vm1036_vm0, %v1853_v39  ;;  %v2729_v39 = vld [vmem:[%s5134_s17 + $0xc0] sm:$0xff] (%p4857_p9)  }
 0x30d   : > { %v1921_v44 = vpop.permute.xlu1 %1920  ;;  %2730 = vst [vmem:[%s6092_s25 + $0x180] sm:$0xff] (%p4857_p9), %v2729_v39  }
 0x30e   : > { %3935 = vst.msk [vmem:[%s5336_s12 + $0xf4] sm:$0xf] %vm1036_vm0, %v1921_v44  ;;  %v2733_v44 = vld [vmem:[%s5134_s17 + $0xc8] sm:$0xff] (%p4857_p9)  }
 0x30f   : > { %v1783_v54 = vpop.permute.xlu0 %1782  ;;  %2734 = vst [vmem:[%s6092_s25 + $0x188] sm:$0xff] (%p4857_p9), %v2733_v44  }
 0x310   : > { %3888 = vst.msk [vmem:[%s5336_s12 + $0x78] sm:$0xf] %vm1036_vm0, %v1783_v54  ;;  %v2737_v54 = vld [vmem:[%s5134_s17 + $0xd0] sm:$0xff] (%p4857_p9)  }
 0x311   : > { %v1715_v28 = vpop.permute.xlu1 %1714  ;;  %2738 = vst [vmem:[%s6092_s25 + $0x190] sm:$0xff] (%p4857_p9), %v2737_v54  }
 0x312   : > { %3865 = vst.msk [vmem:[%s5336_s12 + $0x3c] sm:$0xf] %vm1036_vm0, %v1715_v28  ;;  %v2741_v28 = vld [vmem:[%s5134_s17 + $0xd8] sm:$0xff] (%p4857_p9)  }
 0x313   : > { %v1923_v20 = vpop.permute.xlu0 %1922  ;;  %2742 = vst [vmem:[%s6092_s25 + $0x198] sm:$0xff] (%p4857_p9), %v2741_v28  }
 0x314   : > { %3936 = vst.msk [vmem:[%s5336_s12 + $0xf8] sm:$0xf] %vm1036_vm0, %v1923_v20  ;;  %v2745_v20 = vld [vmem:[%s5134_s17 + $0xe0] sm:$0xff] (%p4857_p9)  }
 0x315   : > { %v1855_v24 = vpop.permute.xlu1 %1854  ;;  %2746 = vst [vmem:[%s6092_s25 + $0x1c0] sm:$0xff] (%p4857_p9), %v2745_v20  }
 0x316   : > { %3913 = vst.msk [vmem:[%s5336_s12 + $0xbc] sm:$0xf] %vm1036_vm0, %v1855_v24  ;;  %v2749_v24 = vld [vmem:[%s5134_s17 + $0xe8] sm:$0xff] (%p4857_p9)  }
 0x317   : > { %v2356_v56 = vpop.permute.xlu0 %2355  ;;  %2750 = vst [vmem:[%s6092_s25 + $0x1c8] sm:$0xff] (%p4857_p9), %v2749_v24  }
 0x318   : > { %3978 = vst.msk [vmem:[%s5578_s5 + $0x20] sm:$0xf] %vm1036_vm0, %v2356_v56  ;;  %v2753_v56 = vld [vmem:[%s5134_s17 + $0xf0] sm:$0xff] (%p4857_p9)  }
 0x319   : > { %v1785_v25 = vpop.permute.xlu1 %1784  ;;  %2754 = vst [vmem:[%s6092_s25 + $0x1d0] sm:$0xff] (%p4857_p9), %v2753_v56  }
 0x31a   : > { %3889 = vst.msk [vmem:[%s5336_s12 + $0x7c] sm:$0xf] %vm1036_vm0, %v1785_v25  ;;  %v2757_v25 = vld [vmem:[%s5134_s17 + $0xf8] sm:$0xff] (%p4857_p9)  }
 0x31b   : > { %v2496_v18 = vpop.permute.xlu0 %2495  ;;  %2758 = vst [vmem:[%s6092_s25 + $0x1d8] sm:$0xff] (%p4857_p9), %v2757_v25  }
 0x31c   : > { %4026 = vst.msk [vmem:[%s5578_s5 + $0xa0] sm:$0xf] %vm1036_vm0, %v2496_v18 }
 0x31d   : > { %v1925_v22 = vpop.permute.xlu1 %1924 }
 0x31e   : > { %3937 = vst.msk [vmem:[%s5336_s12 + $0xfc] sm:$0xf] %vm1036_vm0, %v1925_v22 }
 0x31f   : > { %v2426_v27 = vpop.permute.xlu0 %2425 }
 0x320   : > { %4002 = vst.msk [vmem:[%s5578_s5 + $0x60] sm:$0xf] %vm1036_vm0, %v2426_v27 }
 0x321   : > { %v2358_v29 = vpop.permute.xlu1 %2357 }
 0x322   : > { %3979 = vst.msk [vmem:[%s5578_s5 + $0x24] sm:$0xf] %vm1036_vm0, %v2358_v29 }
 0x323   : > { %v2566_v1 = vpop.permute.xlu0 %2565 }
 0x324   : > { %4050 = vst.msk [vmem:[%s5578_s5 + $0xe0] sm:$0xf] %vm1036_vm0, %v2566_v1 }
 0x325   : > { %v2498_v46 = vpop.permute.xlu1 %2497 }
 0x326   : > { %4027 = vst.msk [vmem:[%s5578_s5 + $0xa4] sm:$0xf] %vm1036_vm0, %v2498_v46 }
 0x327   : > { %v2360_v61 = vpop.permute.xlu0 %2359 }
 0x328   : > { %3980 = vst.msk [vmem:[%s5578_s5 + $0x28] sm:$0xf] %vm1036_vm0, %v2360_v61 }
 0x329   : > { %v2428_v32 = vpop.permute.xlu1 %2427 }
 0x32a   : > { %4003 = vst.msk [vmem:[%s5578_s5 + $0x64] sm:$0xf] %vm1036_vm0, %v2428_v32 }
 0x32b   : > { %v2500_v58 = vpop.permute.xlu0 %2499 }
 0x32c   : > { %4028 = vst.msk [vmem:[%s5578_s5 + $0xa8] sm:$0xf] %vm1036_vm0, %v2500_v58 }
 0x32d   : > { %v2568_v45 = vpop.permute.xlu1 %2567 }
 0x32e   : > { %4051 = vst.msk [vmem:[%s5578_s5 + $0xe4] sm:$0xf] %vm1036_vm0, %v2568_v45 }
 0x32f   : > { %v2430_v13 = vpop.permute.xlu0 %2429 }
 0x330   : > { %4004 = vst.msk [vmem:[%s5578_s5 + $0x68] sm:$0xf] %vm1036_vm0, %v2430_v13 }
 0x331   : > { %v2362_v2 = vpop.permute.xlu1 %2361 }
 0x332   : > { %3981 = vst.msk [vmem:[%s5578_s5 + $0x2c] sm:$0xf] %vm1036_vm0, %v2362_v2 }
 0x333   : > { %v2570_v30 = vpop.permute.xlu0 %2569 }
 0x334   : > { %4052 = vst.msk [vmem:[%s5578_s5 + $0xe8] sm:$0xf] %vm1036_vm0, %v2570_v30 }
 0x335   : > { %v2502_v0 = vpop.permute.xlu1 %2501 }
 0x336   : > { %4029 = vst.msk [vmem:[%s5578_s5 + $0xac] sm:$0xf] %vm1036_vm0, %v2502_v0 }
 0x337   : > { %v2364_v57 = vpop.permute.xlu0 %2363 }
 0x338   : > { %3982 = vst.msk [vmem:[%s5578_s5 + $0x30] sm:$0xf] %vm1036_vm0, %v2364_v57 }
 0x339   : > { %v2432_v36 = vpop.permute.xlu1 %2431 }
 0x33a   : > { %4005 = vst.msk [vmem:[%s5578_s5 + $0x6c] sm:$0xf] %vm1036_vm0, %v2432_v36 }
 0x33b   : > { %v2504_v43 = vpop.permute.xlu0 %2503 }
 0x33c   : > { %4030 = vst.msk [vmem:[%s5578_s5 + $0xb0] sm:$0xf] %vm1036_vm0, %v2504_v43 }
 0x33d   : > { %v2572_v50 = vpop.permute.xlu1 %2571 }
 0x33e   : > { %4053 = vst.msk [vmem:[%s5578_s5 + $0xec] sm:$0xf] %vm1036_vm0, %v2572_v50 }
 0x33f   : > { %v2434_v26 = vpop.permute.xlu0 %2433 }
 0x340   : > { %4006 = vst.msk [vmem:[%s5578_s5 + $0x70] sm:$0xf] %vm1036_vm0, %v2434_v26 }
 0x341   : > { %v2366_v52 = vpop.permute.xlu1 %2365 }
 0x342   : > { %3983 = vst.msk [vmem:[%s5578_s5 + $0x34] sm:$0xf] %vm1036_vm0, %v2366_v52 }
 0x343   : > { %v2574_v17 = vpop.permute.xlu0 %2573 }
 0x344   : > { %4054 = vst.msk [vmem:[%s5578_s5 + $0xf0] sm:$0xf] %vm1036_vm0, %v2574_v17 }
 0x345   : > { %v2506_v3 = vpop.permute.xlu1 %2505 }
 0x346   : > { %4031 = vst.msk [vmem:[%s5578_s5 + $0xb4] sm:$0xf] %vm1036_vm0, %v2506_v3 }
 0x347   : > { %v2368_v4 = vpop.permute.xlu0 %2367 }
 0x348   : > { %3984 = vst.msk [vmem:[%s5578_s5 + $0x38] sm:$0xf] %vm1036_vm0, %v2368_v4 }
 0x349   : > { %v2436_v62 = vpop.permute.xlu1 %2435 }
 0x34a   : > { %4007 = vst.msk [vmem:[%s5578_s5 + $0x74] sm:$0xf] %vm1036_vm0, %v2436_v62 }
 0x34b   : > { %v2508_v59 = vpop.permute.xlu0 %2507 }
 0x34c   : > { %4032 = vst.msk [vmem:[%s5578_s5 + $0xb8] sm:$0xf] %vm1036_vm0, %v2508_v59 }
 0x34d   : > { %v2576_v21 = vpop.permute.xlu1 %2575 }
 0x34e   : > { %4055 = vst.msk [vmem:[%s5578_s5 + $0xf4] sm:$0xf] %vm1036_vm0, %v2576_v21 }
 0x34f   : > { %v2438_v53 = vpop.permute.xlu0 %2437 }
 0x350   : > { %4008 = vst.msk [vmem:[%s5578_s5 + $0x78] sm:$0xf] %vm1036_vm0, %v2438_v53 }
 0x351   : > { %v2370_v31 = vpop.permute.xlu1 %2369 }
 0x352   : > { %3985 = vst.msk [vmem:[%s5578_s5 + $0x3c] sm:$0xf] %vm1036_vm0, %v2370_v31 }
 0x353   : > { %v2578_v16 = vpop.permute.xlu0 %2577 }
 0x354   : > { %4056 = vst.msk [vmem:[%s5578_s5 + $0xf8] sm:$0xf] %vm1036_vm0, %v2578_v16 }
 0x355   : > { %v2510_v11 = vpop.permute.xlu1 %2509 }
 0x356   : > { %4033 = vst.msk [vmem:[%s5578_s5 + $0xbc] sm:$0xf] %vm1036_vm0, %v2510_v11 }
 0x358   : > { %2612 = sbr.rel (!%p4857_p9) target bundleno = 863 (0x35f), region = 76 }
 0x359   : > { %v2440_v47 = vpop.permute.xlu1 %2439 }
 0x35a   : > { %4009 = vst.msk [vmem:[%s5578_s5 + $0x7c] sm:$0xf] %vm1036_vm0, %v2440_v47 }
 0x35d   : > { %v2580_v7 = vpop.permute.xlu1 %2579 }
 0x35e   : > { %4057 = vst.msk [vmem:[%s5578_s5 + $0xfc] sm:$0xf] %vm1036_vm0, %v2580_v7 }
 0x35f PF: > { %2911 = sbr.rel (!%p4857_p9) target bundleno = 890 (0x37a), region = 117  ;;  %s6368_s11 = sld [smem:[#allocation15_spill]] (%p4857_p9)  ;;  %v2932_v18 = vld [vmem:[%s5336_s12] sm:$0xff] (%p4857_p9)   ;;  %v2936_v22 = vld [vmem:[%s5336_s12 + $0x8] sm:$0xff] (%p4857_p9)   ;;  %v2940_v27 = vld [vmem:[%s5336_s12 + $0x10] sm:$0xff] (%p4857_p9)  }
 0x360   : > { %s6369_s14 = sld [smem:[#allocation16_spill]] (%p4857_p9)  ;;  %v2944_v29 = vld [vmem:[%s5336_s12 + $0x18] sm:$0xff] (%p4857_p9)   ;;  %v2948_v1 = vld [vmem:[%s5336_s12 + $0x20] sm:$0xff] (%p4857_p9)   ;;  %v2952_v46 = vld [vmem:[%s5336_s12 + $0x28] sm:$0xff] (%p4857_p9)   ;;  %s6370_s9 = sld [smem:[#allocation24_spill]] (%p4857_p9) }
 0x361   : > { %v2956_v61 = vld [vmem:[%s5336_s12 + $0x30] sm:$0xff] (%p4857_p9)   ;;  %v2960_v32 = vld [vmem:[%s5336_s12 + $0x38] sm:$0xff] (%p4857_p9)   ;;  %v2964_v58 = vld [vmem:[%s5336_s12 + $0x40] sm:$0xff] (%p4857_p9)  }
 0x362   : > { %v2968_v45 = vld [vmem:[%s5336_s12 + $0x48] sm:$0xff] (%p4857_p9)   ;;  %v2972_v13 = vld [vmem:[%s5336_s12 + $0x50] sm:$0xff] (%p4857_p9)   ;;  %v2976_v2 = vld [vmem:[%s5336_s12 + $0x58] sm:$0xff] (%p4857_p9)  }
 0x363   : > { %v2980_v30 = vld [vmem:[%s5336_s12 + $0x60] sm:$0xff] (%p4857_p9)   ;;  %v2984_v0 = vld [vmem:[%s5336_s12 + $0x68] sm:$0xff] (%p4857_p9)   ;;  %v2988_v57 = vld [vmem:[%s5336_s12 + $0x70] sm:$0xff] (%p4857_p9)  }
 0x364   : > { %v2992_v36 = vld [vmem:[%s5336_s12 + $0x78] sm:$0xff] (%p4857_p9)   ;;  %v2996_v43 = vld [vmem:[%s5336_s12 + $0x80] sm:$0xff] (%p4857_p9)   ;;  %v3000_v50 = vld [vmem:[%s5336_s12 + $0x88] sm:$0xff] (%p4857_p9)  }
 0x365   : > { %s4064_s17 = sshll.u32 (%p4857_p9), %s6368_s11, 3  ;;  %v3004_v26 = vld [vmem:[%s5336_s12 + $0x90] sm:$0xff] (%p4857_p9)   ;;  %v3008_v52 = vld [vmem:[%s5336_s12 + $0x98] sm:$0xff] (%p4857_p9)   ;;  %v3012_v17 = vld [vmem:[%s5336_s12 + $0xa0] sm:$0xff] (%p4857_p9)  }
 0x366   : > { %s4065_s16 = sshll.u32 %s6369_s14, 7  ;;  %v3016_v3 = vld [vmem:[%s5336_s12 + $0xa8] sm:$0xff]   ;;  %v3020_v4 = vld [vmem:[%s5336_s12 + $0xb0] sm:$0xff]   ;;  %v3024_v62 = vld [vmem:[%s5336_s12 + $0xb8] sm:$0xff]  }
 0x367   : > { %s2914_s15 = sadd.s32 %s4065_s16, %s4064_s17  ;;  %v3028_v59 = vld [vmem:[%s5336_s12 + $0xc0] sm:$0xff]   ;;  %v3032_v21 = vld [vmem:[%s5336_s12 + $0xc8] sm:$0xff]   ;;  %v3036_v53 = vld [vmem:[%s5336_s12 + $0xd0] sm:$0xff]  }
 0x368   : > { %s4066_s6 = sshll.u32 %s2914_s15, 2  ;;  %v3040_v31 = vld [vmem:[%s5336_s12 + $0xd8] sm:$0xff]   ;;  %v3044_v16 = vld [vmem:[%s5336_s12 + $0xe0] sm:$0xff]   ;;  %v3048_v11 = vld [vmem:[%s5336_s12 + $0xe8] sm:$0xff]  }
 0x369   : > { %s6165_s26 = scalar_lea.vmem %s6370_s9, %s4066_s6  ;;  %v3052_v47 = vld [vmem:[%s5336_s12 + $0xf0] sm:$0xff]   ;;  %v3056_v7 = vld [vmem:[%s5336_s12 + $0xf8] sm:$0xff]  }
 0x36a   : > { %2933 = vst [vmem:[%s6165_s26] sm:$0xff] %v2932_v18   ;;  %2937 = vst [vmem:[%s6165_s26 + $0x8] sm:$0xff] %v2936_v22  }
 0x36b   : > { %2941 = vst [vmem:[%s6165_s26 + $0x10] sm:$0xff] %v2940_v27   ;;  %2945 = vst [vmem:[%s6165_s26 + $0x18] sm:$0xff] %v2944_v29  }
 0x36c   : > { %2949 = vst [vmem:[%s6165_s26 + $0x40] sm:$0xff] %v2948_v1   ;;  %2953 = vst [vmem:[%s6165_s26 + $0x48] sm:$0xff] %v2952_v46  }
 0x36d   : > { %2957 = vst [vmem:[%s6165_s26 + $0x50] sm:$0xff] %v2956_v61   ;;  %2961 = vst [vmem:[%s6165_s26 + $0x58] sm:$0xff] %v2960_v32  }
 0x36e   : > { %2965 = vst [vmem:[%s6165_s26 + $0x80] sm:$0xff] %v2964_v58   ;;  %2969 = vst [vmem:[%s6165_s26 + $0x88] sm:$0xff] %v2968_v45  }
 0x36f   : > { %2973 = vst [vmem:[%s6165_s26 + $0x90] sm:$0xff] %v2972_v13   ;;  %2977 = vst [vmem:[%s6165_s26 + $0x98] sm:$0xff] %v2976_v2  }
 0x370   : > { %2981 = vst [vmem:[%s6165_s26 + $0xc0] sm:$0xff] %v2980_v30   ;;  %2985 = vst [vmem:[%s6165_s26 + $0xc8] sm:$0xff] %v2984_v0  }
 0x371   : > { %2989 = vst [vmem:[%s6165_s26 + $0xd0] sm:$0xff] %v2988_v57   ;;  %2993 = vst [vmem:[%s6165_s26 + $0xd8] sm:$0xff] %v2992_v36  }
 0x372   : > { %2997 = vst [vmem:[%s6165_s26 + $0x100] sm:$0xff] %v2996_v43   ;;  %3001 = vst [vmem:[%s6165_s26 + $0x108] sm:$0xff] %v3000_v50  }
 0x373   : > { %3005 = vst [vmem:[%s6165_s26 + $0x110] sm:$0xff] %v3004_v26   ;;  %3009 = vst [vmem:[%s6165_s26 + $0x118] sm:$0xff] %v3008_v52  }
 0x374   : > { %3013 = vst [vmem:[%s6165_s26 + $0x140] sm:$0xff] %v3012_v17   ;;  %3017 = vst [vmem:[%s6165_s26 + $0x148] sm:$0xff] %v3016_v3  }
 0x375   : > { %3021 = vst [vmem:[%s6165_s26 + $0x150] sm:$0xff] %v3020_v4   ;;  %3025 = vst [vmem:[%s6165_s26 + $0x158] sm:$0xff] %v3024_v62  }
 0x376   : > { %3029 = vst [vmem:[%s6165_s26 + $0x180] sm:$0xff] %v3028_v59   ;;  %3033 = vst [vmem:[%s6165_s26 + $0x188] sm:$0xff] %v3032_v21  }
 0x377   : > { %3037 = vst [vmem:[%s6165_s26 + $0x190] sm:$0xff] %v3036_v53   ;;  %3041 = vst [vmem:[%s6165_s26 + $0x198] sm:$0xff] %v3040_v31  }
 0x378   : > { %3045 = vst [vmem:[%s6165_s26 + $0x1c0] sm:$0xff] %v3044_v16   ;;  %3049 = vst [vmem:[%s6165_s26 + $0x1c8] sm:$0xff] %v3048_v11  }
 0x379   : > { %3053 = vst [vmem:[%s6165_s26 + $0x1d0] sm:$0xff] %v3052_v47   ;;  %3057 = vst [vmem:[%s6165_s26 + $0x1d8] sm:$0xff] %v3056_v7  }
 0x37a PF: > { %3210 = sbr.rel (!%p4857_p9) target bundleno = 917 (0x395), region = 158  ;;  %s6371_s28 = sld [smem:[#allocation15_spill]] (%p4857_p9)  ;;  %v3231_v9 = vld [vmem:[%s5578_s5] sm:$0xff] (%p4857_p9)   ;;  %v3235_v14 = vld [vmem:[%s5578_s5 + $0x8] sm:$0xff] (%p4857_p9)   ;;  %v3239_v19 = vld [vmem:[%s5578_s5 + $0x10] sm:$0xff] (%p4857_p9)  }
 0x37b   : > { %s6372_s29 = sld [smem:[#allocation16_spill]] (%p4857_p9)  ;;  %v3243_v33 = vld [vmem:[%s5578_s5 + $0x18] sm:$0xff] (%p4857_p9)   ;;  %v3247_v10 = vld [vmem:[%s5578_s5 + $0x20] sm:$0xff] (%p4857_p9)   ;;  %v3251_v40 = vld [vmem:[%s5578_s5 + $0x28] sm:$0xff] (%p4857_p9)   ;;  %s6373_s25 = sld [smem:[#allocation25_spill]] (%p4857_p9) }
 0x37c   : > { %v3255_v41 = vld [vmem:[%s5578_s5 + $0x30] sm:$0xff] (%p4857_p9)   ;;  %v3259_v48 = vld [vmem:[%s5578_s5 + $0x38] sm:$0xff] (%p4857_p9)   ;;  %v3263_v51 = vld [vmem:[%s5578_s5 + $0x40] sm:$0xff] (%p4857_p9)  }
 0x37d   : > { %v3267_v37 = vld [vmem:[%s5578_s5 + $0x48] sm:$0xff] (%p4857_p9)   ;;  %v3271_v34 = vld [vmem:[%s5578_s5 + $0x50] sm:$0xff] (%p4857_p9)   ;;  %v3275_v55 = vld [vmem:[%s5578_s5 + $0x58] sm:$0xff] (%p4857_p9)  }
 0x37e   : > { %v3279_v35 = vld [vmem:[%s5578_s5 + $0x60] sm:$0xff] (%p4857_p9)   ;;  %v3283_v23 = vld [vmem:[%s5578_s5 + $0x68] sm:$0xff] (%p4857_p9)   ;;  %v3287_v60 = vld [vmem:[%s5578_s5 + $0x70] sm:$0xff] (%p4857_p9)  }
 0x37f   : > { %v3291_v38 = vld [vmem:[%s5578_s5 + $0x78] sm:$0xff] (%p4857_p9)   ;;  %v3295_v42 = vld [vmem:[%s5578_s5 + $0x80] sm:$0xff] (%p4857_p9)   ;;  %v3299_v5 = vld [vmem:[%s5578_s5 + $0x88] sm:$0xff] (%p4857_p9)  }
 0x380   : > { %s4067_s12 = sshll.u32 (%p4857_p9), %s6371_s28, 3  ;;  %v3303_v63 = vld [vmem:[%s5578_s5 + $0x90] sm:$0xff] (%p4857_p9)   ;;  %v3307_v6 = vld [vmem:[%s5578_s5 + $0x98] sm:$0xff] (%p4857_p9)   ;;  %v3311_v12 = vld [vmem:[%s5578_s5 + $0xa0] sm:$0xff] (%p4857_p9)  }
 0x381   : > { %s4068_s30 = sshll.u32 %s6372_s29, 7  ;;  %v3315_v49 = vld [vmem:[%s5578_s5 + $0xa8] sm:$0xff]   ;;  %v3319_v8 = vld [vmem:[%s5578_s5 + $0xb0] sm:$0xff]   ;;  %v3323_v15 = vld [vmem:[%s5578_s5 + $0xb8] sm:$0xff]  }
 0x382   : > { %s3213_s10 = sadd.s32 %s4068_s30, %s4067_s12  ;;  %v3327_v39 = vld [vmem:[%s5578_s5 + $0xc0] sm:$0xff]   ;;  %v3331_v44 = vld [vmem:[%s5578_s5 + $0xc8] sm:$0xff]   ;;  %v3335_v54 = vld [vmem:[%s5578_s5 + $0xd0] sm:$0xff]  }
 0x383   : > { %s4069_s27 = sshll.u32 %s3213_s10, 2  ;;  %v3339_v28 = vld [vmem:[%s5578_s5 + $0xd8] sm:$0xff]   ;;  %v3343_v20 = vld [vmem:[%s5578_s5 + $0xe0] sm:$0xff]   ;;  %v3347_v24 = vld [vmem:[%s5578_s5 + $0xe8] sm:$0xff]  }
 0x384   : > { %s6238_s11 = scalar_lea.vmem %s6373_s25, %s4069_s27  ;;  %v3351_v56 = vld [vmem:[%s5578_s5 + $0xf0] sm:$0xff]   ;;  %v3355_v25 = vld [vmem:[%s5578_s5 + $0xf8] sm:$0xff]  }
 0x385   : > { %3232 = vst [vmem:[%s6238_s11] sm:$0xff] %v3231_v9   ;;  %3236 = vst [vmem:[%s6238_s11 + $0x8] sm:$0xff] %v3235_v14  }
 0x386   : > { %3240 = vst [vmem:[%s6238_s11 + $0x10] sm:$0xff] %v3239_v19   ;;  %3244 = vst [vmem:[%s6238_s11 + $0x18] sm:$0xff] %v3243_v33  }
 0x387   : > { %3248 = vst [vmem:[%s6238_s11 + $0x40] sm:$0xff] %v3247_v10   ;;  %3252 = vst [vmem:[%s6238_s11 + $0x48] sm:$0xff] %v3251_v40  }
 0x388   : > { %3256 = vst [vmem:[%s6238_s11 + $0x50] sm:$0xff] %v3255_v41   ;;  %3260 = vst [vmem:[%s6238_s11 + $0x58] sm:$0xff] %v3259_v48  }
 0x389   : > { %3264 = vst [vmem:[%s6238_s11 + $0x80] sm:$0xff] %v3263_v51   ;;  %3268 = vst [vmem:[%s6238_s11 + $0x88] sm:$0xff] %v3267_v37  }
 0x38a   : > { %3272 = vst [vmem:[%s6238_s11 + $0x90] sm:$0xff] %v3271_v34   ;;  %3276 = vst [vmem:[%s6238_s11 + $0x98] sm:$0xff] %v3275_v55  }
 0x38b   : > { %3280 = vst [vmem:[%s6238_s11 + $0xc0] sm:$0xff] %v3279_v35   ;;  %3284 = vst [vmem:[%s6238_s11 + $0xc8] sm:$0xff] %v3283_v23  }
 0x38c   : > { %3288 = vst [vmem:[%s6238_s11 + $0xd0] sm:$0xff] %v3287_v60   ;;  %3292 = vst [vmem:[%s6238_s11 + $0xd8] sm:$0xff] %v3291_v38  }
 0x38d   : > { %3296 = vst [vmem:[%s6238_s11 + $0x100] sm:$0xff] %v3295_v42   ;;  %3300 = vst [vmem:[%s6238_s11 + $0x108] sm:$0xff] %v3299_v5  }
 0x38e   : > { %3304 = vst [vmem:[%s6238_s11 + $0x110] sm:$0xff] %v3303_v63   ;;  %3308 = vst [vmem:[%s6238_s11 + $0x118] sm:$0xff] %v3307_v6  }
 0x38f   : > { %3312 = vst [vmem:[%s6238_s11 + $0x140] sm:$0xff] %v3311_v12   ;;  %3316 = vst [vmem:[%s6238_s11 + $0x148] sm:$0xff] %v3315_v49  }
 0x390   : > { %3320 = vst [vmem:[%s6238_s11 + $0x150] sm:$0xff] %v3319_v8   ;;  %3324 = vst [vmem:[%s6238_s11 + $0x158] sm:$0xff] %v3323_v15  }
 0x391   : > { %3328 = vst [vmem:[%s6238_s11 + $0x180] sm:$0xff] %v3327_v39   ;;  %3332 = vst [vmem:[%s6238_s11 + $0x188] sm:$0xff] %v3331_v44  }
 0x392   : > { %3336 = vst [vmem:[%s6238_s11 + $0x190] sm:$0xff] %v3335_v54   ;;  %3340 = vst [vmem:[%s6238_s11 + $0x198] sm:$0xff] %v3339_v28  }
 0x393   : > { %3344 = vst [vmem:[%s6238_s11 + $0x1c0] sm:$0xff] %v3343_v20   ;;  %3348 = vst [vmem:[%s6238_s11 + $0x1c8] sm:$0xff] %v3347_v24  }
 0x394   : > { %3352 = vst [vmem:[%s6238_s11 + $0x1d0] sm:$0xff] %v3351_v56   ;;  %3356 = vst [vmem:[%s6238_s11 + $0x1d8] sm:$0xff] %v3355_v25  }
 0x395 PF: > { %s27_s24 = sadd.s32 1, %s4624_s24   ;;  %s6374_s14 = sld [smem:[#allocation17_spill]] }
 0x396   : > { %p24_p9 = scmp.ge.s32.totalorder %s27_s24, 6   ;;  %s6375_s17 = smov %s4600_s18 }
 0x397   : > { %s6376_s18 = smov %s4604_s19  ;;  %s6377_s19 = smov %s4870_s3 }
 0x398   : > { %s6378_s20 = smov %s4616_s22  ;;  %s6379_s21 = smov %s4620_s23 }
 0x399   : > { %s6381_s23 = smov %s6387_s13  ;;  %26 = sbr.rel (!%p24_p9) target bundleno = 16 (0x10), region = 276 }
 0x39b   : > { %s6380_s22 = smov %s6374_s14 }
 0x3a0   :  { %3533 = vsyncpa [#allocation3], 1 }
 0x3a1   :  { %3535 = vsyncpa [#allocation3 + $0x1], 1 }
 0x3a2   :  { %3536 = vsyncpa [#allocation5], 1 }
 0x3a3   :  { %3537 = vsyncpa [#allocation8], 1 }

</bundles_post_ra>
